<compile_context>
chip_gen: v7x
topology: tpu7x:2x2x1
jax: 0.10.0
libtpu: 0.0.40
codegen_flags: <defaults>
</compile_context>

<pallas_src>
import math

import jax
import jax.numpy as jnp
from jax import lax
from jax.experimental import pallas as pl
from jax.experimental.pallas import tpu as pltpu

VMEM_LIMIT = 32 * 1024 * 1024  # explicit scoped-VMEM budget, safe on v5e/v6e/v7x


# -----------------------------------------------------------------------------
# Pallas kernel 1: 3x3 conv feature extractor, channel-last, in-kernel tap accum
# -----------------------------------------------------------------------------
def conv3x3_nhwc(x_nhwc, w_oihw, bias, out_dtype=jnp.bfloat16):
    """Conv2d(Cin, Cout, 3, padding=1) on channel-last input.

    x_nhwc: (N, H, W, Cin) -> (N, H, W, Cout) in `out_dtype` (bf16 for the
    downstream MXU kernels).  Semantics match F.conv2d (f32 accumulation)."""
    N, H, W, Cin = x_nhwc.shape
    Cout = w_oihw.shape[0]
    HW = H * W

    # one small pad pass (halo); NO 9x im2col slab in HBM.
    xp = jnp.pad(x_nhwc.astype(jnp.bfloat16), ((0, 0), (1, 1), (1, 1), (0, 0)))
    # weight (Cout, Cin, 3, 3) -> per-tap (9, Cin, Cout), bf16
    w = jnp.transpose(w_oihw, (2, 3, 1, 0)).reshape(9, Cin, Cout).astype(jnp.bfloat16)
    b = bias.reshape(1, Cout).astype(jnp.float32)

    def kernel(x_ref, w_ref, b_ref, o_ref):
        acc = jnp.zeros((HW, Cout), jnp.float32)
        t = 0
        for ky in range(3):                       # 9 shifted MXU dots, f32 accum
            for kx in range(3):
                patch = x_ref[ky:ky + H, kx:kx + W, :].reshape(HW, Cin)
                acc = acc + jnp.dot(patch, w_ref[t],
                                    preferred_element_type=jnp.float32)
                t += 1
        o_ref[...] = (acc + b_ref[...]).astype(o_ref.dtype)

    out = pl.pallas_call(
        kernel,
        out_shape=jax.ShapeDtypeStruct((N, HW, Cout), out_dtype),
        grid=(N,),                                # one image per step -> N pipelined steps
        in_specs=[
            pl.BlockSpec((None, H + 2, W + 2, Cin), lambda n: (n, 0, 0, 0)),
            pl.BlockSpec((9, Cin, Cout), lambda n: (0, 0, 0)),
            pl.BlockSpec((1, Cout), lambda n: (0, 0)),
        ],
        out_specs=pl.BlockSpec((None, HW, Cout), lambda n: (n, 0, 0)),
        compiler_params=pltpu.CompilerParams(
            dimension_semantics=("parallel",),
            vmem_limit_bytes=VMEM_LIMIT),
    )(xp, w, b)
    return out.reshape(N, H, W, Cout)


# -----------------------------------------------------------------------------
# Pallas kernel 2: residual attention (Nq-tiled, in-kernel K^T, fused label mask)
# -----------------------------------------------------------------------------
def residual_attention(q, k, v, mask=None, out_dtype=jnp.bfloat16):
    """out = q + softmax(q k^T / sqrt(C)) (v * mask).

    q: (S, Nq, C), k/v: (S, Nk, C), mask: optional (S, Nk, 1).
    bf16 MXU inputs, f32 softmax/accumulation, residual added in f32."""
    S, Nq, C = q.shape
    Nk = k.shape[1]
    scale = 1.0 / math.sqrt(C)
    tq = 128 if Nq % 128 == 0 else Nq             # several grid steps per sequence
    grid = (S, Nq // tq)

    def body(q_ref, k_ref, v_ref, m_ref, o_ref):
        qb = q_ref[...]                                            # (tq, C) bf16
        # contract last dims of q and k — no materialized K transpose anywhere
        s = lax.dot_general(qb, k_ref[...], (((1,), (1,)), ((), ())),
                            preferred_element_type=jnp.float32) * scale
        m = jnp.max(s, axis=-1, keepdims=True)
        p = jnp.exp(s - m)                                         # f32 softmax
        inv = pl.reciprocal(jnp.sum(p, axis=-1, keepdims=True), approx=True)
        vb = v_ref[...]
        if m_ref is not None:
            vb = vb * m_ref[...]                                   # fused label mask (VPU)
        attn = jnp.dot(p.astype(jnp.bfloat16), vb,
                       preferred_element_type=jnp.float32) * inv   # (tq, C) f32
        o_ref[...] = (qb.astype(jnp.float32) + attn).astype(o_ref.dtype)

    operands = [q.astype(jnp.bfloat16), k.astype(jnp.bfloat16), v.astype(jnp.bfloat16)]
    in_specs = [
        pl.BlockSpec((None, tq, C), lambda s, qi: (s, qi, 0)),
        pl.BlockSpec((None, Nk, C), lambda s, qi: (s, 0, 0)),
        pl.BlockSpec((None, Nk, C), lambda s, qi: (s, 0, 0)),
    ]
    if mask is not None:
        operands.append(mask.astype(jnp.bfloat16))
        in_specs.append(pl.BlockSpec((None, Nk, 1), lambda s, qi: (s, 0, 0)))
        kernel = lambda qr, kr, vr, mr, orf: body(qr, kr, vr, mr, orf)
    else:
        kernel = lambda qr, kr, vr, orf: body(qr, kr, vr, None, orf)

    return pl.pallas_call(
        kernel,
        out_shape=jax.ShapeDtypeStruct((S, Nq, C), out_dtype),
        grid=grid,
        in_specs=in_specs,
        out_specs=pl.BlockSpec((None, tq, C), lambda s, qi: (s, qi, 0)),
        compiler_params=pltpu.CompilerParams(
            dimension_semantics=("parallel", "arbitrary"),
            vmem_limit_bytes=VMEM_LIMIT),
    )(*operands)


def transformer_sl(train_sl, test_sl, train_label):
    """TrDiMP-style transformer stand-in on channel-last (seq-major) features.

    train_sl: (S, It, H, W, C), test_sl: (S, Ie, H, W, C), train_label: (It, S, H, W).
    Returns encoded (S, It, H, W, C) and decoded (S, Ie, H, W, C), both bf16."""
    S, It, H, W, C = train_sl.shape
    Ie = test_sl.shape[1]
    tr = train_sl.reshape(S, It * H * W, C)        # free reshapes (channel-last tokens)
    te = test_sl.reshape(S, Ie * H * W, C)
    lab = jnp.transpose(train_label, (1, 0, 2, 3)).reshape(S, It * H * W, 1)

    encoded = residual_attention(tr, tr, tr)                       # encoder self-attn
    decoded = residual_attention(te, encoded, encoded, mask=lab)   # decoder cross-attn,
    return (encoded.reshape(S, It, H, W, C),                       # label mask fused in-kernel
            decoded.reshape(S, Ie, H, W, C))


# -----------------------------------------------------------------------------
# Filter initializer (plain-JAX glue)
# -----------------------------------------------------------------------------
def initialize_filter(encoded_sl, train_bb, filter_size, feat_stride):
    """weights (S, fs, fs, C): crop at the bb center, averaged over train images."""
    # TODO(synk): FilterInitializerLinear uses PrRoIPool2D over train_bb; no clean
    # Pallas equivalent, approximated by a center crop at the box center.
    S, It, H, W, C = encoded_sl.shape
    fs = filter_size
    cx = (train_bb[..., 0] + 0.5 * train_bb[..., 2]) / feat_stride     # (It, S)
    cy = (train_bb[..., 1] + 0.5 * train_bb[..., 3]) / feat_stride
    x0 = jnp.clip(jnp.round(cx - fs / 2).astype(jnp.int32), 0, W - fs).T   # (S, It)
    y0 = jnp.clip(jnp.round(cy - fs / 2).astype(jnp.int32), 0, H - fs).T

    feat = encoded_sl.astype(jnp.float32)

    def crop(feat_hwc, yy, xx):
        return lax.dynamic_slice(feat_hwc, (yy, xx, 0), (fs, fs, C))

    crops = jax.vmap(jax.vmap(crop))(feat, y0, x0)    # (S, It, fs, fs, C)
    return crops.mean(axis=1)                         # (S, fs, fs, C) f32


# -----------------------------------------------------------------------------
# Pallas kernel 3: filter_layer.apply_filter — per-sequence grouped correlation
# -----------------------------------------------------------------------------
def apply_filter(feat_sl, weights_sl):
    """feat_sl: (S, I, H, W, C) bf16 (channel-last), weights_sl: (S, fH, fW, C) f32.
    Returns scores (I, S, Ho, Wo) f32 — conv2d(groups=S, padding=filter_size//2)."""
    S, I_, H, W, C = feat_sl.shape
    fH, fW = weights_sl.shape[1], weights_sl.shape[2]
    py, px = fH // 2, fW // 2
    Ho = H + 2 * py - fH + 1
    Wo = W + 2 * px - fW + 1

    fpad = jnp.pad(feat_sl, ((0, 0), (0, 0), (py, py), (px, px), (0, 0)))
    w = weights_sl.reshape(S, fH * fW, C).astype(jnp.float32)

    def kernel(w_ref, f_ref, o_ref):
        wb = w_ref[...]                                # (fH*fW, C) f32, tiny, resident
        acc = jnp.zeros((Ho, Wo), jnp.float32)
        for t in range(fH * fW):                       # per-tap contraction over C
            dy, dx = divmod(t, fW)
            patch = f_ref[dy:dy + Ho, dx:dx + Wo, :].astype(jnp.float32)   # (Ho, Wo, C)
            acc = acc + jnp.sum(patch * wb[t:t + 1, :], axis=-1)
        o_ref[...] = acc

    out = pl.pallas_call(
        kernel,
        out_shape=jax.ShapeDtypeStruct((S, I_, Ho, Wo), jnp.float32),
        grid=(S, I_),                                  # weight block constant across images
        in_specs=[
            pl.BlockSpec((None, fH * fW, C), lambda s, i: (s, 0, 0)),
            pl.BlockSpec((None, None, H + 2 * py, W + 2 * px, C),
                         lambda s, i: (s, i, 0, 0, 0)),
        ],
        out_specs=pl.BlockSpec((None, None, Ho, Wo), lambda s, i: (s, i, 0, 0)),
        compiler_params=pltpu.CompilerParams(
            dimension_semantics=("parallel", "arbitrary"),
            vmem_limit_bytes=VMEM_LIMIT),
    )(w, fpad)
    return jnp.transpose(out, (1, 0, 2, 3))            # (I, S, Ho, Wo) — tiny tensor


# -----------------------------------------------------------------------------
# TransLinearFilter.forward
# -----------------------------------------------------------------------------
def trans_linear_filter_forward(params, train_feat, test_feat, train_label,
                                test_label, train_bb, *,
                                filter_size=3, feat_stride=16):
    assert train_bb.ndim == 3
    num_sequences = train_bb.shape[1]
    H, W = train_feat.shape[-2:]

    def extract(feat5):
        # single layout pass: (I, S, Cin, H, W) -> (S, I, H, W, Cin); channel-last
        # is then kept through conv -> transformer -> apply_filter.
        I_, S_, Cin, H_, W_ = feat5.shape
        x = jnp.transpose(feat5, (1, 0, 3, 4, 2)).reshape(S_ * I_, H_, W_, Cin)
        y = conv3x3_nhwc(x, params["w"], params["b"])              # bf16 out
        return y.reshape(S_, I_, H_, W_, -1)

    tr = extract(train_feat)                                       # (S, It, H, W, Cout)
    te = extract(test_feat)                                        # (S, Ie, H, W, Cout)

    # transformer -> encoded (train) / decoded (test) features (channel-last, bf16)
    encoded_sl, decoded_sl = transformer_sl(tr, te, train_label)

    # get_filter: initializer only (filter_optimizer is None -> single iterate)
    weights = initialize_filter(encoded_sl, train_bb, filter_size, feat_stride)
    weights_iter = [weights]

    # classify each filter iterate on the decoded test features
    test_scores = [apply_filter(decoded_sl, f) for f in weights_iter]
    return test_scores


# -----------------------------------------------------------------------------
if __name__ == "__main__":
    key = jax.random.PRNGKey(0)
    k1, k2, k3, k4, k5, k6, k7 = jax.random.split(key, 7)

    num_img_train, num_img_test, num_seq = 2, 2, 2
    Cin, Cout, H, W = 8, 16, 16, 16
    filter_size, feat_stride = 3, 16

    train_feat = jax.random.normal(k1, (num_img_train, num_seq, Cin, H, W), jnp.float32)
    test_feat = jax.random.normal(k2, (num_img_test, num_seq, Cin, H, W), jnp.float32)
    train_label = jax.random.uniform(k3, (num_img_train, num_seq, H, W), jnp.float32)
    test_label = jax.random.uniform(k4, (num_img_test, num_seq, H, W), jnp.float32)
    xy = jax.random.uniform(k5, (num_img_train, num_seq, 2), minval=0.0, maxval=180.0)
    wh = jax.random.uniform(k6, (num_img_train, num_seq, 2), minval=30.0, maxval=80.0)
    train_bb = jnp.concatenate([xy, wh], axis=-1)                  # (img, seq, 4) x,y,w,h

    # feature_extractor Conv2d init exactly as in TransLinearFilter.__init__
    n_fan = 3 * 3 * Cout
    conv_w = jax.random.normal(k7, (Cout, Cin, 3, 3), jnp.float32) * math.sqrt(2.0 / n_fan)
    conv_b = jnp.zeros((Cout,), jnp.float32)
    params = {"w": conv_w, "b": conv_b}

    scores = trans_linear_filter_forward(
        params, train_feat, test_feat, train_label, test_label, train_bb,
        filter_size=filter_size, feat_stride=feat_stride)
    jax.block_until_ready(scores)
    assert scores[0].shape == (num_img_test, num_seq, H, W)
    print("KERNEL_OK")
</pallas_src>

<mosaic_0001>
module attributes {stable_mosaic.version = 11 : i64} {
  func.func @kernel(%arg0: i32, %arg1: memref<1x18x18x8xbf16, #tpu.memory_space<vmem>>, %arg2: memref<9x8x16xbf16, #tpu.memory_space<vmem>>, %arg3: memref<1x16xf32, #tpu.memory_space<vmem>>, %arg4: memref<1x256x16xbf16, #tpu.memory_space<vmem>>) attributes {dimension_semantics = [#tpu.dimension_semantics<parallel>], iteration_bounds = array<i64: 4>, scalar_prefetch = 0 : i64, scratch_operands = 0 : i64, tpu.core_type = #tpu.core_type<tc>, window_params = [{transform_indices = @transform_0, window_bounds = array<i64: 1, 18, 18, 8>}, {pipeline_mode = #tpu.pipeline_mode<synchronous>, transform_indices = @transform_1, window_bounds = array<i64: 9, 8, 16>}, {pipeline_mode = #tpu.pipeline_mode<synchronous>, transform_indices = @transform_2, window_bounds = array<i64: 1, 16>}, {transform_indices = @transform_3, window_bounds = array<i64: 1, 256, 16>}]} {
    %cst = arith.constant 0.000000e+00 : f32
    %0 = vector.broadcast %cst : f32 to vector<256x16xf32>
    %c0 = arith.constant 0 : index
    %c0_0 = arith.constant 0 : index
    %c0_1 = arith.constant 0 : index
    %c0_2 = arith.constant 0 : index
    %1 = vector.load %arg1[%c0, %c0_0, %c0_1, %c0_2] : memref<1x18x18x8xbf16, #tpu.memory_space<vmem>>, vector<1x16x16x8xbf16>
    %2 = vector.shape_cast %1 : vector<1x16x16x8xbf16> to vector<16x16x8xbf16>
    %3 = vector.shape_cast %2 : vector<16x16x8xbf16> to vector<256x8xbf16>
    %c0_3 = arith.constant 0 : index
    %c0_4 = arith.constant 0 : index
    %c0_5 = arith.constant 0 : index
    %4 = vector.load %arg2[%c0_3, %c0_4, %c0_5] : memref<9x8x16xbf16, #tpu.memory_space<vmem>>, vector<1x8x16xbf16>
    %5 = vector.shape_cast %4 : vector<1x8x16xbf16> to vector<8x16xbf16>
    %cst_6 = arith.constant dense<0.000000e+00> : vector<256x16xf32>
    %6 = tpu.matmul %3, %5, %cst_6 {dimension_numbers = #tpu.dot_dimension_numbers<[1], [0], [0], [1], [0, 0, 1, 1], [], []>} : vector<256x8xbf16>, vector<8x16xbf16>, vector<256x16xf32> -> vector<256x16xf32>
    %7 = arith.addf %0, %6 : vector<256x16xf32>
    %c0_7 = arith.constant 0 : index
    %c0_8 = arith.constant 0 : index
    %c1 = arith.constant 1 : index
    %c0_9 = arith.constant 0 : index
    %8 = vector.load %arg1[%c0_7, %c0_8, %c1, %c0_9] : memref<1x18x18x8xbf16, #tpu.memory_space<vmem>>, vector<1x16x16x8xbf16>
    %9 = vector.shape_cast %8 : vector<1x16x16x8xbf16> to vector<16x16x8xbf16>
    %10 = vector.shape_cast %9 : vector<16x16x8xbf16> to vector<256x8xbf16>
    %c1_10 = arith.constant 1 : index
    %c0_11 = arith.constant 0 : index
    %c0_12 = arith.constant 0 : index
    %11 = vector.load %arg2[%c1_10, %c0_11, %c0_12] : memref<9x8x16xbf16, #tpu.memory_space<vmem>>, vector<1x8x16xbf16>
    %12 = vector.shape_cast %11 : vector<1x8x16xbf16> to vector<8x16xbf16>
    %cst_13 = arith.constant dense<0.000000e+00> : vector<256x16xf32>
    %13 = tpu.matmul %10, %12, %cst_13 {dimension_numbers = #tpu.dot_dimension_numbers<[1], [0], [0], [1], [0, 0, 1, 1], [], []>} : vector<256x8xbf16>, vector<8x16xbf16>, vector<256x16xf32> -> vector<256x16xf32>
    %14 = arith.addf %7, %13 : vector<256x16xf32>
    %c0_14 = arith.constant 0 : index
    %c0_15 = arith.constant 0 : index
    %c2 = arith.constant 2 : index
    %c0_16 = arith.constant 0 : index
    %15 = vector.load %arg1[%c0_14, %c0_15, %c2, %c0_16] : memref<1x18x18x8xbf16, #tpu.memory_space<vmem>>, vector<1x16x16x8xbf16>
    %16 = vector.shape_cast %15 : vector<1x16x16x8xbf16> to vector<16x16x8xbf16>
    %17 = vector.shape_cast %16 : vector<16x16x8xbf16> to vector<256x8xbf16>
    %c2_17 = arith.constant 2 : index
    %c0_18 = arith.constant 0 : index
    %c0_19 = arith.constant 0 : index
    %18 = vector.load %arg2[%c2_17, %c0_18, %c0_19] : memref<9x8x16xbf16, #tpu.memory_space<vmem>>, vector<1x8x16xbf16>
    %19 = vector.shape_cast %18 : vector<1x8x16xbf16> to vector<8x16xbf16>
    %cst_20 = arith.constant dense<0.000000e+00> : vector<256x16xf32>
    %20 = tpu.matmul %17, %19, %cst_20 {dimension_numbers = #tpu.dot_dimension_numbers<[1], [0], [0], [1], [0, 0, 1, 1], [], []>} : vector<256x8xbf16>, vector<8x16xbf16>, vector<256x16xf32> -> vector<256x16xf32>
    %21 = arith.addf %14, %20 : vector<256x16xf32>
    %c0_21 = arith.constant 0 : index
    %c1_22 = arith.constant 1 : index
    %c0_23 = arith.constant 0 : index
    %c0_24 = arith.constant 0 : index
    %22 = vector.load %arg1[%c0_21, %c1_22, %c0_23, %c0_24] : memref<1x18x18x8xbf16, #tpu.memory_space<vmem>>, vector<1x16x16x8xbf16>
    %23 = vector.shape_cast %22 : vector<1x16x16x8xbf16> to vector<16x16x8xbf16>
    %24 = vector.shape_cast %23 : vector<16x16x8xbf16> to vector<256x8xbf16>
    %c3 = arith.constant 3 : index
    %c0_25 = arith.constant 0 : index
    %c0_26 = arith.constant 0 : index
    %25 = vector.load %arg2[%c3, %c0_25, %c0_26] : memref<9x8x16xbf16, #tpu.memory_space<vmem>>, vector<1x8x16xbf16>
    %26 = vector.shape_cast %25 : vector<1x8x16xbf16> to vector<8x16xbf16>
    %cst_27 = arith.constant dense<0.000000e+00> : vector<256x16xf32>
    %27 = tpu.matmul %24, %26, %cst_27 {dimension_numbers = #tpu.dot_dimension_numbers<[1], [0], [0], [1], [0, 0, 1, 1], [], []>} : vector<256x8xbf16>, vector<8x16xbf16>, vector<256x16xf32> -> vector<256x16xf32>
    %28 = arith.addf %21, %27 : vector<256x16xf32>
    %c0_28 = arith.constant 0 : index
    %c1_29 = arith.constant 1 : index
    %c1_30 = arith.constant 1 : index
    %c0_31 = arith.constant 0 : index
    %29 = vector.load %arg1[%c0_28, %c1_29, %c1_30, %c0_31] : memref<1x18x18x8xbf16, #tpu.memory_space<vmem>>, vector<1x16x16x8xbf16>
    %30 = vector.shape_cast %29 : vector<1x16x16x8xbf16> to vector<16x16x8xbf16>
    %31 = vector.shape_cast %30 : vector<16x16x8xbf16> to vector<256x8xbf16>
    %c4 = arith.constant 4 : index
    %c0_32 = arith.constant 0 : index
    %c0_33 = arith.constant 0 : index
    %32 = vector.load %arg2[%c4, %c0_32, %c0_33] : memref<9x8x16xbf16, #tpu.memory_space<vmem>>, vector<1x8x16xbf16>
    %33 = vector.shape_cast %32 : vector<1x8x16xbf16> to vector<8x16xbf16>
    %cst_34 = arith.constant dense<0.000000e+00> : vector<256x16xf32>
    %34 = tpu.matmul %31, %33, %cst_34 {dimension_numbers = #tpu.dot_dimension_numbers<[1], [0], [0], [1], [0, 0, 1, 1], [], []>} : vector<256x8xbf16>, vector<8x16xbf16>, vector<256x16xf32> -> vector<256x16xf32>
    %35 = arith.addf %28, %34 : vector<256x16xf32>
    %c0_35 = arith.constant 0 : index
    %c1_36 = arith.constant 1 : index
    %c2_37 = arith.constant 2 : index
    %c0_38 = arith.constant 0 : index
    %36 = vector.load %arg1[%c0_35, %c1_36, %c2_37, %c0_38] : memref<1x18x18x8xbf16, #tpu.memory_space<vmem>>, vector<1x16x16x8xbf16>
    %37 = vector.shape_cast %36 : vector<1x16x16x8xbf16> to vector<16x16x8xbf16>
    %38 = vector.shape_cast %37 : vector<16x16x8xbf16> to vector<256x8xbf16>
    %c5 = arith.constant 5 : index
    %c0_39 = arith.constant 0 : index
    %c0_40 = arith.constant 0 : index
    %39 = vector.load %arg2[%c5, %c0_39, %c0_40] : memref<9x8x16xbf16, #tpu.memory_space<vmem>>, vector<1x8x16xbf16>
    %40 = vector.shape_cast %39 : vector<1x8x16xbf16> to vector<8x16xbf16>
    %cst_41 = arith.constant dense<0.000000e+00> : vector<256x16xf32>
    %41 = tpu.matmul %38, %40, %cst_41 {dimension_numbers = #tpu.dot_dimension_numbers<[1], [0], [0], [1], [0, 0, 1, 1], [], []>} : vector<256x8xbf16>, vector<8x16xbf16>, vector<256x16xf32> -> vector<256x16xf32>
    %42 = arith.addf %35, %41 : vector<256x16xf32>
    %c0_42 = arith.constant 0 : index
    %c2_43 = arith.constant 2 : index
    %c0_44 = arith.constant 0 : index
    %c0_45 = arith.constant 0 : index
    %43 = vector.load %arg1[%c0_42, %c2_43, %c0_44, %c0_45] : memref<1x18x18x8xbf16, #tpu.memory_space<vmem>>, vector<1x16x16x8xbf16>
    %44 = vector.shape_cast %43 : vector<1x16x16x8xbf16> to vector<16x16x8xbf16>
    %45 = vector.shape_cast %44 : vector<16x16x8xbf16> to vector<256x8xbf16>
    %c6 = arith.constant 6 : index
    %c0_46 = arith.constant 0 : index
    %c0_47 = arith.constant 0 : index
    %46 = vector.load %arg2[%c6, %c0_46, %c0_47] : memref<9x8x16xbf16, #tpu.memory_space<vmem>>, vector<1x8x16xbf16>
    %47 = vector.shape_cast %46 : vector<1x8x16xbf16> to vector<8x16xbf16>
    %cst_48 = arith.constant dense<0.000000e+00> : vector<256x16xf32>
    %48 = tpu.matmul %45, %47, %cst_48 {dimension_numbers = #tpu.dot_dimension_numbers<[1], [0], [0], [1], [0, 0, 1, 1], [], []>} : vector<256x8xbf16>, vector<8x16xbf16>, vector<256x16xf32> -> vector<256x16xf32>
    %49 = arith.addf %42, %48 : vector<256x16xf32>
    %c0_49 = arith.constant 0 : index
    %c2_50 = arith.constant 2 : index
    %c1_51 = arith.constant 1 : index
    %c0_52 = arith.constant 0 : index
    %50 = vector.load %arg1[%c0_49, %c2_50, %c1_51, %c0_52] : memref<1x18x18x8xbf16, #tpu.memory_space<vmem>>, vector<1x16x16x8xbf16>
    %51 = vector.shape_cast %50 : vector<1x16x16x8xbf16> to vector<16x16x8xbf16>
    %52 = vector.shape_cast %51 : vector<16x16x8xbf16> to vector<256x8xbf16>
    %c7 = arith.constant 7 : index
    %c0_53 = arith.constant 0 : index
    %c0_54 = arith.constant 0 : index
    %53 = vector.load %arg2[%c7, %c0_53, %c0_54] : memref<9x8x16xbf16, #tpu.memory_space<vmem>>, vector<1x8x16xbf16>
    %54 = vector.shape_cast %53 : vector<1x8x16xbf16> to vector<8x16xbf16>
    %cst_55 = arith.constant dense<0.000000e+00> : vector<256x16xf32>
    %55 = tpu.matmul %52, %54, %cst_55 {dimension_numbers = #tpu.dot_dimension_numbers<[1], [0], [0], [1], [0, 0, 1, 1], [], []>} : vector<256x8xbf16>, vector<8x16xbf16>, vector<256x16xf32> -> vector<256x16xf32>
    %56 = arith.addf %49, %55 : vector<256x16xf32>
    %c0_56 = arith.constant 0 : index
    %c2_57 = arith.constant 2 : index
    %c2_58 = arith.constant 2 : index
    %c0_59 = arith.constant 0 : index
    %57 = vector.load %arg1[%c0_56, %c2_57, %c2_58, %c0_59] : memref<1x18x18x8xbf16, #tpu.memory_space<vmem>>, vector<1x16x16x8xbf16>
    %58 = vector.shape_cast %57 : vector<1x16x16x8xbf16> to vector<16x16x8xbf16>
    %59 = vector.shape_cast %58 : vector<16x16x8xbf16> to vector<256x8xbf16>
    %c8 = arith.constant 8 : index
    %c0_60 = arith.constant 0 : index
    %c0_61 = arith.constant 0 : index
    %60 = vector.load %arg2[%c8, %c0_60, %c0_61] : memref<9x8x16xbf16, #tpu.memory_space<vmem>>, vector<1x8x16xbf16>
    %61 = vector.shape_cast %60 : vector<1x8x16xbf16> to vector<8x16xbf16>
    %cst_62 = arith.constant dense<0.000000e+00> : vector<256x16xf32>
    %62 = tpu.matmul %59, %61, %cst_62 {dimension_numbers = #tpu.dot_dimension_numbers<[1], [0], [0], [1], [0, 0, 1, 1], [], []>} : vector<256x8xbf16>, vector<8x16xbf16>, vector<256x16xf32> -> vector<256x16xf32>
    %63 = arith.addf %56, %62 : vector<256x16xf32>
    %c0_63 = arith.constant 0 : index
    %c0_64 = arith.constant 0 : index
    %64 = vector.load %arg3[%c0_63, %c0_64] : memref<1x16xf32, #tpu.memory_space<vmem>>, vector<1x16xf32>
    %65 = vector.broadcast %64 : vector<1x16xf32> to vector<256x16xf32>
    %66 = arith.addf %63, %65 : vector<256x16xf32>
    %67 = arith.truncf %66 : vector<256x16xf32> to vector<256x16xbf16>
    %c0_65 = arith.constant 0 : index
    %c0_66 = arith.constant 0 : index
    %c0_67 = arith.constant 0 : index
    %68 = vector.load %arg4[%c0_65, %c0_66, %c0_67] : memref<1x256x16xbf16, #tpu.memory_space<vmem>>, vector<1x256x16xbf16>
    %69 = vector.shape_cast %68 : vector<1x256x16xbf16> to vector<256x16xbf16>
    %70 = vector.shape_cast %67 : vector<256x16xbf16> to vector<1x256x16xbf16>
    tpu.vector_store %arg4[%c0_65, %c0_66, %c0_67], %70 {strides = array<i32>} : memref<1x256x16xbf16, #tpu.memory_space<vmem>>, vector<1x256x16xbf16>,
    return
  }
  func.func @transform_0(%arg0: i32) -> (i32, i32, i32, i32) {
    %c0_i32 = arith.constant 0 : i32
    %c0_i32_0 = arith.constant 0 : i32
    %c0_i32_1 = arith.constant 0 : i32
    %c0_i32_2 = arith.constant 0 : i32
    return %arg0, %c0_i32, %c0_i32_0, %c0_i32_1 : i32, i32, i32, i32
  }
  func.func @transform_1(%arg0: i32) -> (i32, i32, i32) {
    %c0_i32 = arith.constant 0 : i32
    %c0_i32_0 = arith.constant 0 : i32
    %c0_i32_1 = arith.constant 0 : i32
    %c0_i32_2 = arith.constant 0 : i32
    return %c0_i32, %c0_i32_0, %c0_i32_1 : i32, i32, i32
  }
  func.func @transform_2(%arg0: i32) -> (i32, i32) {
    %c0_i32 = arith.constant 0 : i32
    %c0_i32_0 = arith.constant 0 : i32
    %c0_i32_1 = arith.constant 0 : i32
    return %c0_i32, %c0_i32_0 : i32, i32
  }
  func.func @transform_3(%arg0: i32) -> (i32, i32, i32) {
    %c0_i32 = arith.constant 0 : i32
    %c0_i32_0 = arith.constant 0 : i32
    %c0_i32_1 = arith.constant 0 : i32
    return %arg0, %c0_i32, %c0_i32_0 : i32, i32, i32
  }
}

</mosaic_0001>

<bundles_post_ra>
// kernel: tpu_custom_call.1
= control target key start
LH: loop header
LB: loop body
LE: loop exit
PB: predicated region body
PF: predicated region fallthrough
CT: control target
= control target key end

     0   :  { %s6467_s12 = smov 0   ;;  %s8300_s0 = inlined_call_operand.vmem [shape: bf16[4,18,18,8], index: 0, kind: input, shape index: {}]   ;;  %s8301_s1 = inlined_call_operand.vmem [shape: bf16[9,8,16], index: 1, kind: input, shape index: {}]   ;;  %s8302_s2 = inlined_call_operand.vmem [shape: f32[1,16], index: 2, kind: input, shape index: {}]   ;;  %s8303_s3 = inlined_call_operand.vmem [shape: bf16[4,256,16], index: 3, kind: output, shape index: {}]  }
   0x1 LB: > { %s4986_s13 = sadd.s32 4294967295, %s6445_s12   ;;  %p4990_p0 = scmp.ge.s32.totalorder %s6445_s12, 1  ;;  %s6445_s12 = sphi %s6467_s12, %s13_s12  }
   0x2   : > { %p137_p1 = scmp.lt.s32.totalorder %s6445_s12, 5 }
   0x4   : > { %p138_p2 = pnand %p4990_p0, %p137_p1 }
   0x6   : > { %141 = sbr.rel (%p138_p2) target bundleno = 587 (0x24b), region = 32 }
   0xd   : > { %v4994_v0 = vld [vmem:[%s8301_s1 + $0x4] sm:$0xf]  ;;  %vm707_vm0 = vcmask 1043456   ;;  %v5221_v1 = vld [vmem:[%s8301_s1 + $0x10] sm:$0xf]  ;;  %p161_p3 = scmp.lt.s32.totalorder %s4986_s13, 3 }
   0xe   : > { %6315 = vmatprep.subr.msk.bf16.mxu1 %vm707_vm0, %v4994_v0  ;;  %6319 = vmatprep.subr.msk.bf16.mxu0 %vm707_vm0, %v5221_v1  ;;  %v709_v2 = vsel %vm707_vm0, %v4994_v0, 0  ;;  %v6485_v3 = vsel %vm707_vm0, %v5221_v1, 0  ;;  %v204_v4 = vld [vmem:[%s8301_s1] sm:$0xf]  ;;  %v5286_v5 = vld [vmem:[%s8301_s1 + $0x14] sm:$0xf] }
   0xf   : > { %8317 = vst [vmem:[#allocation2_spill] sm:$0xff] %v6485_v3  ;;  %5752 = vmatpush3.bf16.msra.mxu1 %v709_v2  ;;  %5888 = vmatpush3.bf16.msra.mxu0 %v6485_v3  ;;  %s8372_s13 = smov (!%p161_p3, %s4986_s13), 3  ;;  %vm221_vm1 = vsmask.f32 3328  ;;  %vm222_vm2 = vsmask.f32 7440 }
  0x10   : > { %6316 = vmatprep.subr.msk.bf16.mxu1 %vm707_vm0, %v204_v4  ;;  %6321 = vmatprep.subr.msk.bf16.mxu0 %vm707_vm0, %v5286_v5  ;;  %s6325_s22 = smul.u32 216, %s8372_s13  ;;  %vm658_vm3 = vcmask 64512   ;;  %v6515_v17 = vsel %vm707_vm0, %v204_v4, 0  ;;  %v6521_v26 = vld [vmem:[%s8301_s1 + $0x18] sm:$0xf]  ;;  %vm6528_vm4 = vmor %vm221_vm1, %vm222_vm2  ;;  %v6534_v37 = vsel %vm707_vm0, %v5286_v5, 0 }
  0x11   : > { %v6538_v41 = vsel %vm707_vm0, %v6521_v26, 0  ;;  %vm1212_vm5 = vcmask 1042432   ;;  %vm1213_vm6 = vcmask 1046532   ;;  %s5565_s17 = sshll.u32 %s8372_s13, 7  ;;  %vm4898_vm8 = vcmask 125952  }
  0x12   : > { %s6502_s25 = scalar_lea.vmem %s8300_s0, %s6325_s22  ;;  %vm6754_vm7 = vmor %vm1212_vm5, %vm1213_vm6  ;;  %s8196_s20 = scalar_lea.vmem %s8303_s3, %s5565_s17 }
  0x13   : > { %v172_v6 = vld [vmem:[%s6502_s25] sm:$0xf]  ;;  %v173_v7 = vld [vmem:[%s6502_s25 + $0x4] sm:$0xf]  ;;  %v205_v8 = vld [vmem:[%s6502_s25 + $0x8] sm:$0x1] }
  0x14   : > { %v225_v9 = vshrl.u32 %v172_v6, 16  ;;  %v228_v10 = vshll.u32 %v172_v6, 16  ;;  %v234_v11 = vshll.u32 %v173_v7, 16  ;;  %v238_v12 = vshrl.u32 %v173_v7, 16  ;;  %v5173_v13 = vld [vmem:[%s6502_s25 + $0xc] sm:$0xf] }
  0x15   : > { %v244_v14 = vshll.u32 %v205_v8, 16  ;;  %v6509_v15 = vld [vmem:[%s6502_s25 + $0x10] sm:$0xf]  ;;  %v6512_v16 = vld [vmem:[%s6502_s25 + $0x14] sm:$0x1]  ;;  %v2029_v23 = vshrl.u32 %v5173_v13, 16 }
  0x16   : > { %v227_v18 = vrot.slane %v225_v9, 4  ;;  %v230_v19 = vrot.slane %v228_v10, 5  ;;  %v236_v20 = vrot.slane %v234_v11, 5  ;;  %v240_v21 = vrot.slane %v238_v12, 4  ;;  %v174_v31 = vld [vmem:[%s6502_s25 + $0xc] sm:$0xf] }
  0x17   : > { %v246_v22 = vrot.slane %v244_v14, 5  ;;  %v2032_v24 = vshll.u32 %v5173_v13, 16  ;;  %v2038_v25 = vshll.u32 %v6509_v15, 16  ;;  %v2042_v29 = vshrl.u32 %v6509_v15, 16  ;;  %v175_v36 = vld [vmem:[%s6502_s25 + $0x10] sm:$0xf] }
  0x18   : > { %v231_v27 = vor.u32 %v230_v19, %v227_v18  ;;  %v241_v28 = vor.u32 %v240_v21, %v236_v20  ;;  %v2048_v30 = vshll.u32 %v6512_v16, 16  ;;  %v2031_v33 = vrot.slane %v2029_v23, 4  ;;  %v206_v44 = vld [vmem:[%s6502_s25 + $0x14] sm:$0x1]  ;;  %v5176_v55 = vld [vmem:[%s6502_s25 + $0x18] sm:$0xf] }
  0x19   : > { %v2034_v34 = vrot.slane %v2032_v24, 5  ;;  %v2040_v35 = vrot.slane %v2038_v25, 5  ;;  %v2044_v40 = vrot.slane %v2042_v29, 4  ;;  %v249_v45 = vshrl.u32 %v174_v31, 16  ;;  %v6547_v60 = vld [vmem:[%s6502_s25 + $0x1c] sm:$0xf] }
  0x1a   : > { %v232_v38 = vrot.slane %v231_v27, 4  ;;  %v242_v39 = vrot.slane %v241_v28, 4  ;;  %v2050_v43 = vrot.slane %v2048_v30, 5  ;;  %v252_v46 = vshll.u32 %v174_v31, 16  ;;  %v6555_v1 = vld [vmem:[%s6502_s25 + $0x20] sm:$0x1] }
  0x1b   : > { %v2035_v42 = vor.u32 %v2034_v34, %v2031_v33  ;;  %v2045_v49 = vor.u32 %v2044_v40, %v2040_v35  ;;  %v258_v50 = vshll.u32 %v175_v36, 16  ;;  %v251_v53 = vrot.slane %v249_v45, 4  ;;  %v176_v18 = vld [vmem:[%s6502_s25 + $0x18] sm:$0xf]  ;;  %v177_v23 = vld [vmem:[%s6502_s25 + $0x1c] sm:$0xf] }
  0x1c   : > { %v237_v47 = vsel %vm6528_vm4, %v232_v38, %v236_v20  ;;  %v247_v48 = vsel %vm6528_vm4, %v242_v39, %v246_v22  ;;  %v254_v54 = vrot.slane %v252_v46, 5  ;;  %v262_v58 = vshrl.u32 %v175_v36, 16  ;;  %v207_v31 = vld [vmem:[%s6502_s25 + $0x20] sm:$0x1]  ;;  %v5179_v40 = vld [vmem:[%s6502_s25 + $0x24] sm:$0xf] }
  0x1d   : > { %v4995_v51 = vcombine.low %v237_v47, %v247_v48  ;;  %v2036_v52 = vrot.slane %v2035_v42, 4  ;;  %v2046_v56 = vrot.slane %v2045_v49, 4  ;;  %v260_v57 = vrot.slane %v258_v50, 5  ;;  %v6578_v46 = vld [vmem:[%s6502_s25 + $0x28] sm:$0xf] }
  0x1e   : > { %v268_v59 = vshll.u32 %v206_v44, 16  ;;  %v2772_v62 = vrot.slane %v6509_v15, 5  ;;  %v2775_v63 = vrot.slane %v6512_v16, 5  ;;  %v255_v0 = vor.u32 %v254_v54, %v251_v53  ;;  %v6587_v54 = vld [vmem:[%s6502_s25 + $0x2c] sm:$0x1] }
  0x1f   : > { %5753 = vmatprep.mubr.msk.bf16.mxu1 %vm658_vm3, %v4995_v51  ;;  %v2041_v61 = vsel %vm6528_vm4, %v2036_v52, %v2040_v35  ;;  %v2051_v2 = vsel %vm6528_vm4, %v2046_v56, %v2050_v43  ;;  %v264_v4 = vrot.slane %v262_v58, 4  ;;  %v2053_v6 = vshrl.u32 %v5176_v55, 16  ;;  %v5075_v51 = vld [vmem:[%s8301_s1 + $0x8] sm:$0xf]  ;;  %v6787_v16 = vld [vmem:[%s6502_s25 + $0x7c] sm:$0xf] }
  0x20   : > { %v270_v5 = vrot.slane %v268_v59, 5  ;;  %v5222_v7 = vcombine.low %v2041_v61, %v2051_v2  ;;  %v256_v8 = vrot.slane %v255_v0, 4  ;;  %v2056_v9 = vshll.u32 %v5176_v55, 16  ;;  %v178_v0 = vld [vmem:[%s6502_s25 + $0x24] sm:$0xf] }
  0x21   : > { %v2062_v10 = vshll.u32 %v6547_v60, 16  ;;  %v265_v11 = vor.u32 %v264_v4, %v260_v57  ;;  %v2055_v12 = vrot.slane %v2053_v6, 4  ;;  %v2066_v13 = vshrl.u32 %v6547_v60, 16 }
  0x22   : > { %v2072_v14 = vshll.u32 %v6555_v1, 16  ;;  %5889 = vmatprep.mubr.msk.bf16.mxu0 %vm658_vm3, %v5222_v7  ;;  %v261_v19 = vsel %vm6528_vm4, %v256_v8, %v260_v57  ;;  %v2058_v20 = vrot.slane %v2056_v9, 5  ;;  %v2779_v22 = vrot.slane %v6547_v60, 5  ;;  %v179_v7 = vld [vmem:[%s6502_s25 + $0x28] sm:$0xf] }
  0x23   : > { %v2064_v21 = vrot.slane %v2062_v10, 5  ;;  %v266_v24 = vrot.slane %v265_v11, 4  ;;  %v2068_v25 = vrot.slane %v2066_v13, 4  ;;  %v2782_v28 = vrot.slane %v6555_v1, 5  ;;  %v208_v13 = vld [vmem:[%s6502_s25 + $0x2c] sm:$0x1] }
  0x24   : > { %v2074_v27 = vrot.slane %v2072_v14, 5  ;;  %v2059_v29 = vor.u32 %v2058_v20, %v2055_v12  ;;  %v6571_v30 = vrot.slane %v2779_v22, 4  ;;  %v273_v33 = vshrl.u32 %v176_v18, 16 }
  0x25   : > { %v276_v34 = vshll.u32 %v176_v18, 16  ;;  %v271_v35 = vsel %vm6528_vm4, %v266_v24, %v270_v5  ;;  %v2069_v36 = vor.u32 %v2068_v25, %v2064_v21  ;;  %v282_v38 = vshll.u32 %v177_v23, 16  ;;  %v5182_v24 = vld [vmem:[%s6502_s25 + $0x30] sm:$0xf] }
  0x26   : > { %v286_v39 = vshrl.u32 %v177_v23, 16  ;;  %v4996_v42 = vcombine.low %v261_v19, %v271_v35  ;;  %v2060_v43 = vrot.slane %v2059_v29, 4  ;;  %v275_v44 = vrot.slane %v273_v33, 4  ;;  %v6607_v33 = vld [vmem:[%s6502_s25 + $0x34] sm:$0xf] }
  0x27   : > { %v278_v45 = vrot.slane %v276_v34, 5  ;;  %v2070_v47 = vrot.slane %v2069_v36, 4  ;;  %v284_v48 = vrot.slane %v282_v38, 5  ;;  %v292_v50 = vshll.u32 %v207_v31, 16 }
  0x28   : > { %v288_v49 = vrot.slane %v286_v39, 4  ;;  %5754 = vmatmul.mubr.msk.bf16.vlgmr.msra.gmra.mrb[0].mxu1 %vm658_vm3, %v4996_v42  ;;  %v2065_v52 = vsel %vm6528_vm4, %v2060_v43, %v2064_v21  ;;  %v2077_v55 = vshrl.u32 %v5179_v40, 16  ;;  %v2080_v56 = vshll.u32 %v5179_v40, 16  ;;  %v6615_v40 = vld [vmem:[%s6502_s25 + $0x38] sm:$0x1] }
  0x29   : > { %v279_v53 = vor.u32 %v278_v45, %v275_v44  ;;  %5786 = vmatpush3.bf16.msra.mxu1 %v6515_v17  ;;  %v2075_v57 = vsel %vm6528_vm4, %v2070_v47, %v2074_v27  ;;  %v294_v59 = vrot.slane %v292_v50, 5  ;;  %v2086_v61 = vshll.u32 %v6578_v46, 16 }
  0x2a   : > { %v289_v58 = vor.u32 %v288_v49, %v284_v48  ;;  %v5223_v2 = vcombine.low %v2065_v52, %v2075_v57  ;;  %v2079_v5 = vrot.slane %v2077_v55, 4  ;;  %v2082_v6 = vrot.slane %v2080_v56, 5  ;;  %6317 = vmatprep.subr.msk.bf16.mxu1 %vm707_vm0, %v5075_v51  ;;  %v180_v52 = vld [vmem:[%s6502_s25 + $0x30] sm:$0xf] }
  0x2b   : > { %v280_v4 = vrot.slane %v279_v53, 4  ;;  %v2088_v9 = vrot.slane %v2086_v61, 5  ;;  %v2090_v17 = vshrl.u32 %v6578_v46, 16  ;;  %v2096_v10 = vshll.u32 %v6587_v54, 16 }
  0x2c   : > { %v290_v8 = vrot.slane %v289_v58, 4  ;;  %5890 = vmatmul.mubr.msk.bf16.vlgmr.msra.gmra.mrb[0].mxu0 %vm658_vm3, %v5223_v2  ;;  %v2083_v12 = vor.u32 %v2082_v6, %v2079_v5  ;;  %v297_v14 = vshrl.u32 %v178_v0, 16  ;;  %v300_v18 = vshll.u32 %v178_v0, 16  ;;  %v181_v58 = vld [vmem:[%s6502_s25 + $0x34] sm:$0xf] }
  0x2d   : > { %v285_v11 = vsel %vm6528_vm4, %v280_v4, %v284_v48  ;;  %5922 = vmatpush3.bf16.msra.mxu0 %v6534_v37  ;;  %v2092_v20 = vrot.slane %v2090_v17, 4  ;;  %v2098_v21 = vrot.slane %v2096_v10, 5  ;;  %v306_v23 = vshll.u32 %v179_v7, 16  ;;  %v209_v4 = vld [vmem:[%s6502_s25 + $0x38] sm:$0x1] }
  0x2e   : > { %v295_v19 = vsel %vm6528_vm4, %v290_v8, %v294_v59  ;;  %v2084_v27 = vrot.slane %v2083_v12, 4  ;;  %v299_v29 = vrot.slane %v297_v14, 4  ;;  %v302_v31 = vrot.slane %v300_v18, 5  ;;  %6322 = vmatprep.subr.msk.bf16.mxu0 %vm707_vm0, %v6521_v26  ;;  %v5185_v12 = vld [vmem:[%s6502_s25 + $0x3c] sm:$0xf] }
  0x2f   : > { %v4997_v25 = vcombine.low %v285_v11, %v295_v19  ;;  %v2093_v34 = vor.u32 %v2092_v20, %v2088_v9  ;;  %v308_v35 = vrot.slane %v306_v23, 5  ;;  %v310_v37 = vshrl.u32 %v179_v7, 16  ;;  %v6632_v20 = vld [vmem:[%s6502_s25 + $0x40] sm:$0xf] }
  0x30   : > { %v316_v36 = vshll.u32 %v208_v13, 16  ;;  %v2089_v38 = vsel %vm6528_vm4, %v2084_v27, %v2088_v9  ;;  %v303_v39 = vor.u32 %v302_v31, %v299_v29  ;;  %v2101_v42 = vshrl.u32 %v5182_v24, 16 }
  0x31   : > { %5757 = vmatprep.mubr.msk.bf16.mxu1 %vm658_vm3, %v4997_v25  ;;  %v2104_v43 = vshll.u32 %v5182_v24, 16  ;;  %v2094_v44 = vrot.slane %v2093_v34, 4  ;;  %v312_v45 = vrot.slane %v310_v37, 4  ;;  %v2110_v26 = vshll.u32 %v6607_v33, 16  ;;  %v6637_v34 = vld [vmem:[%s6502_s25 + $0x44] sm:$0x1] }
  0x32   : > { %v318_v47 = vrot.slane %v316_v36, 5  ;;  %v304_v48 = vrot.slane %v303_v39, 4  ;;  %v2103_v49 = vrot.slane %v2101_v42, 4  ;;  %v2114_v51 = vshrl.u32 %v6607_v33, 16  ;;  %v182_v42 = vld [vmem:[%s6502_s25 + $0x3c] sm:$0xf] }
  0x33   : > { %v2106_v50 = vrot.slane %v2104_v43, 5  ;;  %v2099_v53 = vsel %vm6528_vm4, %v2094_v44, %v2098_v21  ;;  %v313_v55 = vor.u32 %v312_v45, %v308_v35  ;;  %v2112_v56 = vrot.slane %v2110_v26, 5  ;;  %v183_v26 = vld [vmem:[%s6502_s25 + $0x40] sm:$0xf] }
  0x34   : > { %v2120_v57 = vshll.u32 %v6615_v40, 16  ;;  %v5224_v59 = vcombine.low %v2089_v38, %v2099_v53  ;;  %v309_v61 = vsel %vm6528_vm4, %v304_v48, %v308_v35  ;;  %v2116_v2 = vrot.slane %v2114_v51, 4 }
  0x35   : > { %v2107_v0 = vor.u32 %v2106_v50, %v2103_v49  ;;  %v314_v5 = vrot.slane %v313_v55, 4  ;;  %v321_v7 = vshrl.u32 %v180_v52, 16  ;;  %v324_v8 = vshll.u32 %v180_v52, 16 }
  0x36   : > { %v2122_v6 = vrot.slane %v2120_v57, 5  ;;  %5893 = vmatprep.mubr.msk.bf16.mxu0 %vm658_vm3, %v5224_v59  ;;  %v2117_v17 = vor.u32 %v2116_v2, %v2112_v56  ;;  %v330_v10 = vshll.u32 %v181_v58, 16  ;;  %v334_v11 = vshrl.u32 %v181_v58, 16  ;;  %v5188_v2 = vld [vmem:[%s6502_s25 + $0x48] sm:$0xf] }
  0x37   : > { %v2108_v9 = vrot.slane %v2107_v0, 4  ;;  %v319_v13 = vsel %vm6528_vm4, %v314_v5, %v318_v47  ;;  %v323_v14 = vrot.slane %v321_v7, 4  ;;  %v326_v18 = vrot.slane %v324_v8, 5  ;;  %v6655_v8 = vld [vmem:[%s6502_s25 + $0x4c] sm:$0xf] }
  0x38   : > { %v340_v19 = vshll.u32 %v209_v4, 16  ;;  %v4998_v21 = vcombine.low %v309_v61, %v319_v13  ;;  %v2118_v24 = vrot.slane %v2117_v17, 4  ;;  %v332_v25 = vrot.slane %v330_v10, 5  ;;  %v210_v61 = vld [vmem:[%s6502_s25 + $0x44] sm:$0x1] }
  0x39   : > { %v2113_v23 = vsel %vm6528_vm4, %v2108_v9, %v2112_v56  ;;  %v327_v27 = vor.u32 %v326_v18, %v323_v14  ;;  %v336_v29 = vrot.slane %v334_v11, 4  ;;  %v2125_v35 = vshrl.u32 %v5185_v12, 16 }
  0x3a   : > { %v342_v31 = vrot.slane %v340_v19, 5  ;;  %5758 = vmatmul.mubr.msk.bf16.gmra.mrb[4].mxu1 %vm658_vm3, %v4998_v21  ;;  %v2123_v37 = vsel %vm6528_vm4, %v2118_v24, %v2122_v6  ;;  %v2128_v36 = vshll.u32 %v5185_v12, 16  ;;  %v2134_v38 = vshll.u32 %v6632_v20, 16 }
  0x3b   : > { %v2138_v39 = vshrl.u32 %v6632_v20, 16  ;;  %v5225_v43 = vcombine.low %v2113_v23, %v2123_v37  ;;  %v328_v44 = vrot.slane %v327_v27, 4  ;;  %v337_v45 = vor.u32 %v336_v29, %v332_v25  ;;  %v6663_v23 = vld [vmem:[%s6502_s25 + $0x50] sm:$0x1]  ;;  %v6667_v27 = vld [vmem:[%s6502_s25 + $0x48] sm:$0xf] }
  0x3c   : > { %v2127_v47 = vrot.slane %v2125_v35, 4  ;;  %v2130_v48 = vrot.slane %v2128_v36, 5  ;;  %v2136_v49 = vrot.slane %v2134_v38, 5  ;;  %v2144_v51 = vshll.u32 %v6637_v34, 16  ;;  %v6670_v36 = vld [vmem:[%s6502_s25 + $0x4c] sm:$0xf] }
  0x3d   : > { %v2140_v50 = vrot.slane %v2138_v39, 4  ;;  %5894 = vmatmul.mubr.msk.bf16.gmra.mrb[4].mxu0 %vm658_vm3, %v5225_v43  ;;  %v333_v52 = vsel %vm6528_vm4, %v328_v44, %v332_v25  ;;  %v338_v53 = vrot.slane %v337_v45, 4  ;;  %v345_v55 = vshrl.u32 %v182_v42, 16 }
  0x3e   : > { %v348_v56 = vshll.u32 %v182_v42, 16  ;;  %v2131_v57 = vor.u32 %v2130_v48, %v2127_v47  ;;  %v2146_v59 = vrot.slane %v2144_v51, 5  ;;  %v354_v0 = vshll.u32 %v183_v26, 16 }
  0x3f   : > { %v2141_v58 = vor.u32 %v2140_v50, %v2136_v49  ;;  %v343_v4 = vsel %vm6528_vm4, %v338_v53, %v342_v31  ;;  %v347_v5 = vrot.slane %v345_v55, 4  ;;  %v358_v7 = vshrl.u32 %v183_v26, 16  ;;  %v211_v26 = vld [vmem:[%s6502_s25 + $0x50] sm:$0x1]  ;;  %v5191_v53 = vld [vmem:[%s6502_s25 + $0x54] sm:$0xf] }
  0x40   : > { %v350_v6 = vrot.slane %v348_v56, 5  ;;  %v4999_v9 = vcombine.low %v333_v52, %v343_v4  ;;  %v2132_v17 = vrot.slane %v2131_v57, 4  ;;  %v356_v11 = vrot.slane %v354_v0, 5  ;;  %v6686_v4 = vld [vmem:[%s6502_s25 + $0x58] sm:$0xf] }
  0x41   : > { %v2142_v10 = vrot.slane %v2141_v58, 4  ;;  %v360_v13 = vrot.slane %v358_v7, 4  ;;  %v364_v14 = vshll.u32 %v210_v61, 16  ;;  %v2149_v18 = vshrl.u32 %v5188_v2, 16 }
  0x42   : > { %v351_v12 = vor.u32 %v350_v6, %v347_v5  ;;  %5761 = vmatprep.mubr.msk.bf16.mxu1 %vm658_vm3, %v4999_v9  ;;  %v2137_v19 = vsel %vm6528_vm4, %v2132_v17, %v2136_v49  ;;  %v2152_v24 = vshll.u32 %v5188_v2, 16  ;;  %v2158_v25 = vshll.u32 %v6655_v8, 16 }
  0x43   : > { %v2147_v21 = vsel %vm6528_vm4, %v2142_v10, %v2146_v59  ;;  %v361_v35 = vor.u32 %v360_v13, %v356_v11  ;;  %v366_v37 = vrot.slane %v364_v14, 5  ;;  %v2151_v38 = vrot.slane %v2149_v18, 4 }
  0x44   : > { %v5226_v29 = vcombine.low %v2137_v19, %v2147_v21  ;;  %v352_v31 = vrot.slane %v351_v12, 4  ;;  %v2154_v39 = vrot.slane %v2152_v24, 5  ;;  %v2160_v42 = vrot.slane %v2158_v25, 5  ;;  %v6692_v12 = vld [vmem:[%s6502_s25 + $0x5c] sm:$0x1] }
  0x45   : > { %v2162_v43 = vshrl.u32 %v6655_v8, 16  ;;  %v362_v45 = vrot.slane %v361_v35, 4  ;;  %v2168_v47 = vshll.u32 %v6663_v23, 16  ;;  %v369_v48 = vshrl.u32 %v6667_v27, 16  ;;  %v6696_v24 = vld [vmem:[%s6502_s25 + $0x54] sm:$0xf] }
  0x46   : > { %5897 = vmatprep.mubr.msk.bf16.mxu0 %vm658_vm3, %v5226_v29  ;;  %v357_v44 = vsel %vm6528_vm4, %v352_v31, %v356_v11  ;;  %v2155_v49 = vor.u32 %v2154_v39, %v2151_v38  ;;  %v372_v51 = vshll.u32 %v6667_v27, 16  ;;  %v378_v52 = vshll.u32 %v6670_v36, 16 }
  0x47   : > { %v2164_v50 = vrot.slane %v2162_v43, 4  ;;  %v367_v55 = vsel %vm6528_vm4, %v362_v45, %v366_v37  ;;  %v2170_v56 = vrot.slane %v2168_v47, 5  ;;  %v371_v57 = vrot.slane %v369_v48, 4  ;;  %v6702_v37 = vld [vmem:[%s6502_s25 + $0x58] sm:$0xf] }
  0x48   : > { %v382_v58 = vshrl.u32 %v6670_v36, 16  ;;  %v5000_v59 = vcombine.low %v357_v44, %v367_v55  ;;  %v2156_v61 = vrot.slane %v2155_v49, 4  ;;  %v374_v2 = vrot.slane %v372_v51, 5 }
  0x49   : > { %v2165_v0 = vor.u32 %v2164_v50, %v2160_v42  ;;  %v380_v5 = vrot.slane %v378_v52, 5  ;;  %v388_v7 = vshll.u32 %v211_v26, 16  ;;  %v2173_v9 = vshrl.u32 %v5191_v53, 16  ;;  %v212_v26 = vld [vmem:[%s6502_s25 + $0x5c] sm:$0x1] }
  0x4a   : > { %v384_v6 = vrot.slane %v382_v58, 4  ;;  %5762 = vmatmul.mubr.msk.bf16.gmra.mrb[8].mxu1 %vm658_vm3, %v5000_v59  ;;  %v2161_v17 = vsel %vm6528_vm4, %v2156_v61, %v2160_v42  ;;  %v375_v11 = vor.u32 %v374_v2, %v371_v57  ;;  %v2176_v13 = vshll.u32 %v5191_v53, 16  ;;  %v5194_v53 = vld [vmem:[%s6502_s25 + $0x60] sm:$0xf]  ;;  %v6716_v59 = vld [vmem:[%s6502_s25 + $0x64] sm:$0xf] }
  0x4b   : > { %v2166_v10 = vrot.slane %v2165_v0, 4  ;;  %v390_v18 = vrot.slane %v388_v7, 5  ;;  %v2175_v19 = vrot.slane %v2173_v9, 4  ;;  %v2182_v21 = vshll.u32 %v6686_v4, 16  ;;  %v6723_v9 = vld [vmem:[%s6502_s25 + $0x68] sm:$0x1] }
  0x4c   : > { %v385_v14 = vor.u32 %v384_v6, %v380_v5  ;;  %v376_v29 = vrot.slane %v375_v11, 4  ;;  %v2178_v31 = vrot.slane %v2176_v13, 5  ;;  %v2186_v35 = vshrl.u32 %v6686_v4, 16 }
  0x4d   : > { %v2171_v25 = vsel %vm6528_vm4, %v2166_v10, %v2170_v56  ;;  %v2184_v42 = vrot.slane %v2182_v21, 5  ;;  %v2192_v43 = vshll.u32 %v6692_v12, 16  ;;  %v393_v48 = vshrl.u32 %v6696_v24, 16 }
  0x4e   : > { %v5227_v38 = vcombine.low %v2161_v17, %v2171_v25  ;;  %v386_v39 = vrot.slane %v385_v14, 4  ;;  %v381_v44 = vsel %vm6528_vm4, %v376_v29, %v380_v5  ;;  %v2179_v45 = vor.u32 %v2178_v31, %v2175_v19  ;;  %v6727_v19 = vld [vmem:[%s6502_s25 + $0x60] sm:$0xf] }
  0x4f   : > { %v2188_v47 = vrot.slane %v2186_v35, 4  ;;  %v2194_v50 = vrot.slane %v2192_v43, 5  ;;  %v396_v51 = vshll.u32 %v6696_v24, 16  ;;  %v402_v52 = vshll.u32 %v6702_v37, 16  ;;  %v6733_v35 = vld [vmem:[%s6502_s25 + $0x64] sm:$0xf] }
  0x50   : > { %5898 = vmatmul.mubr.msk.bf16.gmra.mrb[8].mxu0 %vm658_vm3, %v5227_v38  ;;  %v391_v49 = vsel %vm6528_vm4, %v386_v39, %v390_v18  ;;  %v2180_v56 = vrot.slane %v2179_v45, 4  ;;  %v395_v58 = vrot.slane %v393_v48, 4  ;;  %v406_v2 = vshrl.u32 %v6702_v37, 16 }
  0x51   : > { %v5001_v55 = vcombine.low %v381_v44, %v391_v49  ;;  %v2189_v57 = vor.u32 %v2188_v47, %v2184_v42  ;;  %v398_v61 = vrot.slane %v396_v51, 5  ;;  %v404_v0 = vrot.slane %v402_v52, 5 }
  0x52   : > { %v412_v5 = vshll.u32 %v212_v26, 16  ;;  %v2185_v6 = vsel %vm6528_vm4, %v2180_v56, %v2184_v42  ;;  %v2197_v17 = vshrl.u32 %v5194_v53, 16  ;;  %v2200_v10 = vshll.u32 %v5194_v53, 16 }
  0x53   : > { %5765 = vmatprep.mubr.msk.bf16.mxu1 %vm658_vm3, %v5001_v55  ;;  %v2190_v7 = vrot.slane %v2189_v57, 4  ;;  %v399_v11 = vor.u32 %v398_v61, %v395_v58  ;;  %v408_v13 = vrot.slane %v406_v2, 4  ;;  %v2206_v18 = vshll.u32 %v6716_v59, 16  ;;  %v5254_v58 = vld [vmem:[%s6502_s25 + $0xc] sm:$0xe] }
  0x54   : > { %v414_v14 = vrot.slane %v412_v5, 5  ;;  %v2199_v25 = vrot.slane %v2197_v17, 4  ;;  %v2202_v29 = vrot.slane %v2200_v10, 5  ;;  %v2210_v31 = vshrl.u32 %v6716_v59, 16 }
  0x55   : > { %v2195_v21 = vsel %vm6528_vm4, %v2190_v7, %v2194_v50  ;;  %v400_v39 = vrot.slane %v399_v11, 4  ;;  %v409_v42 = vor.u32 %v408_v13, %v404_v0  ;;  %v2208_v43 = vrot.slane %v2206_v18, 5  ;;  %v213_v50 = vld [vmem:[%s6502_s25 + $0x68] sm:$0x1] }
  0x56   : > { %v5228_v38 = vcombine.low %v2185_v6, %v2195_v21  ;;  %v2203_v44 = vor.u32 %v2202_v29, %v2199_v25  ;;  %v2212_v45 = vrot.slane %v2210_v31, 4  ;;  %v2216_v47 = vshll.u32 %v6723_v9, 16  ;;  %v6761_v29 = vld [vmem:[%s6502_s25 + $0x70] sm:$0xf] }
  0x57   : > { %v417_v26 = vshrl.u32 %v6727_v19, 16  ;;  %v405_v48 = vsel %vm6528_vm4, %v400_v39, %v404_v0  ;;  %v410_v49 = vrot.slane %v409_v42, 4  ;;  %v420_v51 = vshll.u32 %v6727_v19, 16  ;;  %v6748_v0 = vld [vmem:[%s6502_s25 + $0x6c] sm:$0xf] }
  0x58   : > { %5901 = vmatprep.mubr.msk.bf16.mxu0 %vm658_vm3, %v5228_v38  ;;  %v426_v52 = vshll.u32 %v6733_v35, 16  ;;  %v2204_v53 = vrot.slane %v2203_v44, 4  ;;  %v2213_v55 = vor.u32 %v2212_v45, %v2208_v43  ;;  %v2218_v56 = vrot.slane %v2216_v47, 5 }
  0x59   : > { %v419_v57 = vrot.slane %v417_v26, 4  ;;  %v415_v61 = vsel %vm6528_vm4, %v410_v49, %v414_v14  ;;  %v422_v2 = vrot.slane %v420_v51, 5  ;;  %v430_v6 = vshrl.u32 %v6733_v35, 16  ;;  %v214_v26 = vld [vmem:[%s6502_s25 + $0x74] sm:$0x1] }
  0x5a   : > { %v428_v5 = vrot.slane %v426_v52, 5  ;;  %v5002_v7 = vcombine.low %v405_v48, %v415_v61  ;;  %v2209_v17 = vsel %vm6528_vm4, %v2204_v53, %v2208_v43  ;;  %v2214_v10 = vrot.slane %v2213_v55, 4  ;;  %v5255_v48 = vld [vmem:[%s6502_s25 + $0x18] sm:$0xe] }
  0x5b   : > { %v436_v11 = vshll.u32 %v213_v50, 16  ;;  %v423_v14 = vor.u32 %v422_v2, %v419_v57  ;;  %v432_v18 = vrot.slane %v430_v6, 4  ;;  %v5270_v21 = vrot.slane %v5254_v58, 9  ;;  %v6780_v53 = vld [vmem:[%s6502_s25 + $0x78] sm:$0xf] }
  0x5c   : > { %v2774_v25 = vrot.slane %v2772_v62, 4  ;;  %5766 = vmatmul.mubr.msk.bf16.gmra.mrb[12].mxu1 %vm658_vm3, %v5002_v7  ;;  %v2219_v31 = vsel %vm6528_vm4, %v2214_v10, %v2218_v56  ;;  %v441_v39 = vshrl.u32 %v6748_v0, 16  ;;  %v444_v42 = vshll.u32 %v6748_v0, 16  ;;  %v215_v57 = vld [vmem:[%s6502_s25 + $0x80] sm:$0x1] }
  0x5d   : > { %v438_v38 = vrot.slane %v436_v11, 5  ;;  %v5229_v43 = vcombine.low %v2209_v17, %v2219_v31  ;;  %v424_v44 = vrot.slane %v423_v14, 4  ;;  %v433_v45 = vor.u32 %v432_v18, %v428_v5  ;;  %v5256_v10 = vld [vmem:[%s6502_s25 + $0x24] sm:$0xe] }
  0x5e   : > { %v2773_v47 = vsel %vm6754_vm7, %v5270_v21, %v2772_v62  ;;  %v2776_v49 = vsel %vm6754_vm7, %v2774_v25, %v2775_v63  ;;  %v443_v50 = vrot.slane %v441_v39, 4  ;;  %v446_v51 = vrot.slane %v444_v42, 5  ;;  %v6806_v39 = vld [vmem:[%s6502_s25 + $0x84] sm:$0xf] }
  0x5f   : > { %v450_v52 = vshll.u32 %v6761_v29, 16  ;;  %5902 = vmatmul.mubr.msk.bf16.gmra.mrb[12].mxu0 %vm658_vm3, %v5229_v43  ;;  %v429_v15 = vsel %vm6528_vm4, %v424_v44, %v428_v5  ;;  %v434_v62 = vrot.slane %v433_v45, 4  ;;  %v5287_v55 = vcombine.low %v2773_v47, %v2776_v49  ;;  %v6814_v43 = vld [vmem:[%s6502_s25 + $0x88] sm:$0xf] }
  0x60   : > { %v454_v56 = vshrl.u32 %v6761_v29, 16  ;;  %v447_v63 = vor.u32 %v446_v51, %v443_v50  ;;  %v460_v61 = vshll.u32 %v214_v26, 16  ;;  %v5271_v2 = vrot.slane %v5255_v48, 9 }
  0x61   : > { %v452_v58 = vrot.slane %v450_v52, 5  ;;  %v439_v6 = vsel %vm6528_vm4, %v434_v62, %v438_v38  ;;  %5923 = vmatprep.mubr.msk.bf16.mxu0 %vm658_vm3, %v5287_v55  ;;  %v2783_v5 = vsel %vm6754_vm7, %v6571_v30, %v2782_v28  ;;  %v465_v17 = vshrl.u32 %v6780_v53, 16  ;;  %v216_v52 = vld [vmem:[%s6502_s25 + $0x8c] sm:$0x1] }
  0x62   : > { %v456_v7 = vrot.slane %v454_v56, 4  ;;  %v5003_v11 = vcombine.low %v429_v15, %v439_v6  ;;  %v448_v14 = vrot.slane %v447_v63, 4  ;;  %v462_v18 = vrot.slane %v460_v61, 5 }
  0x63   : > { %v2780_v21 = vsel %vm6754_vm7, %v5271_v2, %v2779_v22  ;;  %v467_v38 = vrot.slane %v465_v17, 4  ;;  %v468_v1 = vshll.u32 %v6780_v53, 16  ;;  %v474_v30 = vshll.u32 %v6787_v16, 16  ;;  %v6819_v22 = vld [vmem:[%s8301_s1 + $0x1c] sm:$0xf] }
  0x64   : > { %v457_v25 = vor.u32 %v456_v7, %v452_v58  ;;  %v5288_v31 = vcombine.low %v2780_v21, %v2783_v5  ;;  %5769 = vmatprep.mubr.msk.bf16.mxu1 %vm658_vm3, %v5003_v11  ;;  %v453_v28 = vsel %vm6528_vm4, %v448_v14, %v452_v58  ;;  %v478_v60 = vshrl.u32 %v6787_v16, 16  ;;  %v6838_v5 = vld [vmem:[%s6502_s25 + $0x90] sm:$0xf] }
  0x65   : > { %v484_v42 = vshll.u32 %v215_v57, 16  ;;  %v470_v45 = vrot.slane %v468_v1, 5  ;;  %v5272_v47 = vrot.slane %v5256_v10, 9  ;;  %v2786_v26 = vrot.slane %v6578_v46, 5  ;;  %v5257_v57 = vld [vmem:[%s6502_s25 + $0x30] sm:$0xe] }
  0x66   : > { %v458_v44 = vrot.slane %v457_v25, 4  ;;  %v476_v48 = vrot.slane %v474_v30, 5  ;;  %v480_v49 = vrot.slane %v478_v60, 4  ;;  %v2789_v51 = vrot.slane %v6587_v54, 5  ;;  %v6850_v30 = vld [vmem:[%s6502_s25 + $0x94] sm:$0xf] }
  0x67   : > { %v486_v50 = vrot.slane %v484_v42, 5  ;;  %5924 = vmatmul.mubr.msk.bf16.vlgmr.msra.gmra.mrb[0].mxu0 %vm658_vm3, %v5288_v31  ;;  %v471_v62 = vor.u32 %v470_v45, %v467_v38  ;;  %v2787_v55 = vsel %vm6754_vm7, %v5272_v47, %v2786_v26  ;;  %v2788_v56 = vrot.slane %v2786_v26, 4  ;;  %v217_v60 = vld [vmem:[%s6502_s25 + $0x98] sm:$0x1]  ;;  %v5258_v26 = vld [vmem:[%s6502_s25 + $0x3c] sm:$0xe] }
  0x68   : > { %v463_v15 = vsel %vm6528_vm4, %v458_v44, %v462_v18  ;;  %5956 = vmatpush3.bf16.msra.mxu0 %v6538_v41  ;;  %v481_v46 = vor.u32 %v480_v49, %v476_v48  ;;  %v489_v58 = vshrl.u32 %v6806_v39, 16  ;;  %v492_v54 = vshll.u32 %v6806_v39, 16 }
  0x69   : > { %v5004_v63 = vcombine.low %v453_v28, %v463_v15  ;;  %v472_v61 = vrot.slane %v471_v62, 4  ;;  %v2790_v2 = vsel %vm6754_vm7, %v2788_v56, %v2789_v51  ;;  %v498_v6 = vshll.u32 %v6814_v43, 16  ;;  %6323 = vmatprep.subr.msk.bf16.mxu0 %vm707_vm0, %v6819_v22 }
  0x6a   : > { %v502_v7 = vshrl.u32 %v6814_v43, 16  ;;  %v482_v41 = vrot.slane %v481_v46, 4  ;;  %v5289_v17 = vcombine.low %v2787_v55, %v2790_v2  ;;  %v491_v10 = vrot.slane %v489_v58, 4  ;;  %v6870_v46 = vld [vmem:[%s6502_s25 + $0xa0] sm:$0xf] }
  0x6b   : > { %5770 = vmatmul.mubr.msk.bf16.gmra.mrb[16].mxu1 %vm658_vm3, %v5004_v63  ;;  %v494_v11 = vrot.slane %v492_v54, 5  ;;  %v477_v14 = vsel %vm6528_vm4, %v472_v61, %v476_v48  ;;  %v500_v18 = vrot.slane %v498_v6, 5  ;;  %v508_v25 = vshll.u32 %v216_v52, 16  ;;  %v6859_v52 = vld [vmem:[%s6502_s25 + $0x9c] sm:$0xf] }
  0x6c   : > { %v504_v21 = vrot.slane %v502_v7, 4  ;;  %v487_v31 = vsel %vm6528_vm4, %v482_v41, %v486_v50  ;;  %5927 = vmatprep.mubr.msk.bf16.mxu0 %vm658_vm3, %v5289_v17  ;;  %v5273_v1 = vrot.slane %v5257_v57, 9  ;;  %v2793_v28 = vrot.slane %v6607_v33, 5 }
  0x6d   : > { %v495_v38 = vor.u32 %v494_v11, %v491_v10  ;;  %v5005_v42 = vcombine.low %v477_v14, %v487_v31  ;;  %v510_v45 = vrot.slane %v508_v25, 5  ;;  %v2796_v47 = vrot.slane %v6615_v40, 5  ;;  %v218_v10 = vld [vmem:[%s6502_s25 + $0xa4] sm:$0x1]  ;;  %v5259_v11 = vld [vmem:[%s6502_s25 + $0x48] sm:$0xe] }
  0x6e   : > { %v505_v44 = vor.u32 %v504_v21, %v500_v18  ;;  %v2794_v49 = vsel %vm6754_vm7, %v5273_v1, %v2793_v28  ;;  %v2795_v50 = vrot.slane %v2793_v28, 4  ;;  %v513_v51 = vshrl.u32 %v6838_v5, 16 }
  0x6f   : > { %v496_v48 = vrot.slane %v495_v38, 4  ;;  %5773 = vmatprep.mubr.msk.bf16.mxu1 %vm658_vm3, %v5005_v42  ;;  %v516_v15 = vshll.u32 %v6838_v5, 16  ;;  %v522_v62 = vshll.u32 %v6850_v30, 16  ;;  %v526_v40 = vshrl.u32 %v6850_v30, 16 }
  0x70   : > { %v506_v33 = vrot.slane %v505_v44, 4  ;;  %v2797_v56 = vsel %vm6754_vm7, %v2795_v50, %v2796_v47  ;;  %v515_v57 = vrot.slane %v513_v51, 4  ;;  %v532_v63 = vshll.u32 %v217_v60, 16 }
  0x71   : > { %v501_v55 = vsel %vm6528_vm4, %v496_v48, %v500_v18  ;;  %v5290_v54 = vcombine.low %v2794_v49, %v2797_v56  ;;  %v518_v61 = vrot.slane %v516_v15, 5  ;;  %v524_v2 = vrot.slane %v522_v62, 5  ;;  %v6896_v56 = vld [vmem:[%s6502_s25 + $0xac] sm:$0xf] }
  0x72   : > { %v511_v58 = vsel %vm6528_vm4, %v506_v33, %v510_v45  ;;  %v528_v7 = vrot.slane %v526_v40, 4  ;;  %v534_v41 = vrot.slane %v532_v63, 5  ;;  %v5274_v17 = vrot.slane %v5258_v26, 9  ;;  %v6891_v33 = vld [vmem:[%s6502_s25 + $0xa8] sm:$0xf] }
  0x73   : > { %v5006_v6 = vcombine.low %v501_v55, %v511_v58  ;;  %5928 = vmatmul.mubr.msk.bf16.gmra.mrb[4].mxu0 %vm658_vm3, %v5290_v54  ;;  %v519_v14 = vor.u32 %v518_v61, %v515_v57  ;;  %v2800_v18 = vrot.slane %v6632_v20, 5  ;;  %v2803_v21 = vrot.slane %v6637_v34, 5  ;;  %v219_v61 = vld [vmem:[%s6502_s25 + $0xb0] sm:$0x1] }
  0x74   : > { %v537_v25 = vshrl.u32 %v6859_v52, 16  ;;  %v529_v31 = vor.u32 %v528_v7, %v524_v2  ;;  %v540_v38 = vshll.u32 %v6859_v52, 16  ;;  %v546_v1 = vshll.u32 %v6870_v46, 16 }
  0x75   : > { %5774 = vmatmul.mubr.msk.bf16.gmra.mrb[20].mxu1 %vm658_vm3, %v5006_v6  ;;  %v550_v28 = vshrl.u32 %v6870_v46, 16  ;;  %v520_v60 = vrot.slane %v519_v14, 4  ;;  %v2801_v42 = vsel %vm6754_vm7, %v5274_v17, %v2800_v18  ;;  %v2802_v20 = vrot.slane %v2800_v18, 4  ;;  %v6911_v14 = vld [vmem:[%s6502_s25 + $0xb4] sm:$0xf] }
  0x76   : > { %v539_v44 = vrot.slane %v537_v25, 4  ;;  %v530_v34 = vrot.slane %v529_v31, 4  ;;  %v542_v45 = vrot.slane %v540_v38, 5  ;;  %v548_v47 = vrot.slane %v546_v1, 5 }
  0x77   : > { %v552_v26 = vrot.slane %v550_v28, 4  ;;  %v525_v48 = vsel %vm6528_vm4, %v520_v60, %v524_v2  ;;  %v2804_v49 = vsel %vm6754_vm7, %v2802_v20, %v2803_v21  ;;  %v556_v50 = vshll.u32 %v218_v10, 16  ;;  %v5260_v2 = vld [vmem:[%s6502_s25 + $0x54] sm:$0xe] }
  0x78   : > { %v5275_v51 = vrot.slane %v5259_v11, 9  ;;  %v535_v15 = vsel %vm6528_vm4, %v530_v34, %v534_v41  ;;  %v5291_v62 = vcombine.low %v2801_v42, %v2804_v49  ;;  %v543_v40 = vor.u32 %v542_v45, %v539_v44  ;;  %v6920_v42 = vld [vmem:[%s6502_s25 + $0xb8] sm:$0xf]  ;;  %v220_v49 = vld [vmem:[%s6502_s25 + $0xbc] sm:$0x1] }
  0x79   : > { %v553_v55 = vor.u32 %v552_v26, %v548_v47  ;;  %v5007_v57 = vcombine.low %v525_v48, %v535_v15  ;;  %v558_v63 = vrot.slane %v556_v50, 5  ;;  %v2807_v58 = vrot.slane %v6655_v8, 5 }
  0x7a   : > { %v2810_v54 = vrot.slane %v6663_v23, 5  ;;  %5931 = vmatprep.mubr.msk.bf16.mxu0 %vm658_vm3, %v5291_v62  ;;  %v544_v6 = vrot.slane %v543_v40, 4  ;;  %v561_v41 = vshrl.u32 %v6891_v33, 16  ;;  %v564_v17 = vshll.u32 %v6891_v33, 16 }
  0x7b   : > { %v554_v7 = vrot.slane %v553_v55, 4  ;;  %5777 = vmatprep.mubr.msk.bf16.mxu1 %vm658_vm3, %v5007_v57  ;;  %v2808_v10 = vsel %vm6754_vm7, %v5275_v51, %v2807_v58  ;;  %v2809_v11 = vrot.slane %v2807_v58, 4  ;;  %v570_v8 = vshll.u32 %v6896_v56, 16  ;;  %v5261_v55 = vld [vmem:[%s6502_s25 + $0x60] sm:$0xe] }
  0x7c   : > { %v574_v23 = vshrl.u32 %v6896_v56, 16  ;;  %v549_v18 = vsel %vm6528_vm4, %v544_v6, %v548_v47  ;;  %v563_v25 = vrot.slane %v561_v41, 4  ;;  %v566_v31 = vrot.slane %v564_v17, 5  ;;  %v5262_v6 = vld [vmem:[%s6502_s25 + $0x6c] sm:$0xe] }
  0x7d   : > { %v559_v21 = vsel %vm6528_vm4, %v554_v7, %v558_v63  ;;  %v2811_v1 = vsel %vm6754_vm7, %v2809_v11, %v2810_v54  ;;  %v572_v28 = vrot.slane %v570_v8, 5  ;;  %v580_v34 = vshll.u32 %v219_v61, 16  ;;  %v5198_v11 = vld [vmem:[%s6502_s25 + $0x70] sm:$0xf]  ;;  %v5199_v8 = vld [vmem:[%s6502_s25 + $0x74] sm:$0x1] }
  0x7e   : > { %v5008_v38 = vcombine.low %v549_v18, %v559_v21  ;;  %v576_v60 = vrot.slane %v574_v23, 4  ;;  %v5292_v20 = vcombine.low %v2808_v10, %v2811_v1  ;;  %v567_v44 = vor.u32 %v566_v31, %v563_v25 }
  0x7f   : > { %v5276_v45 = vrot.slane %v5260_v2, 9  ;;  %v2814_v26 = vrot.slane %v6686_v4, 5  ;;  %v2817_v48 = vrot.slane %v6692_v12, 5  ;;  %v585_v50 = vshrl.u32 %v6911_v14, 16 }
  0x80   : > { %5778 = vmatmul.mubr.msk.bf16.gmra.mrb[24].mxu1 %vm658_vm3, %v5008_v38  ;;  %v577_v47 = vor.u32 %v576_v60, %v572_v28  ;;  %5932 = vmatmul.mubr.msk.bf16.gmra.mrb[8].mxu0 %vm658_vm3, %v5292_v20  ;;  %v568_v51 = vrot.slane %v567_v44, 4  ;;  %v582_v15 = vrot.slane %v580_v34, 5  ;;  %v588_v62 = vshll.u32 %v6911_v14, 16 }
  0x81   : > { %v594_v40 = vshll.u32 %v6920_v42, 16  ;;  %v2815_v4 = vsel %vm6754_vm7, %v5276_v45, %v2814_v26  ;;  %v2816_v12 = vrot.slane %v2814_v26, 4  ;;  %v587_v63 = vrot.slane %v585_v50, 4 }
  0x82   : > { %v578_v57 = vrot.slane %v577_v47, 4  ;;  %v573_v58 = vsel %vm6528_vm4, %v568_v51, %v572_v28  ;;  %v590_v54 = vrot.slane %v588_v62, 5  ;;  %v598_v2 = vshrl.u32 %v6920_v42, 16  ;;  %v5263_v47 = vld [vmem:[%s6502_s25 + $0x78] sm:$0xe] }
  0x83   : > { %v596_v61 = vrot.slane %v594_v40, 5  ;;  %v2818_v41 = vsel %vm6754_vm7, %v2816_v12, %v2817_v48  ;;  %v604_v17 = vshll.u32 %v220_v49, 16  ;;  %v5277_v10 = vrot.slane %v5261_v55, 9  ;;  %v6382_v51 = vld [vmem:[%s6502_s25] sm:$0xf] }
  0x84   : > { %v583_v7 = vsel %vm6528_vm4, %v578_v57, %v582_v15  ;;  %v5293_v18 = vcombine.low %v2815_v4, %v2818_v41  ;;  %v591_v21 = vor.u32 %v590_v54, %v587_v63  ;;  %v600_v25 = vrot.slane %v598_v2, 4  ;;  %v6958_v15 = vld [vmem:[%s6502_s25 + $0x4] sm:$0xf]  ;;  %v6962_v40 = vld [vmem:[%s6502_s25 + $0x7c] sm:$0xf] }
  0x85   : > { %v5009_v23 = vcombine.low %v573_v58, %v583_v7  ;;  %v606_v31 = vrot.slane %v604_v17, 5  ;;  %v2821_v38 = vrot.slane %v6716_v59, 5  ;;  %v2824_v1 = vrot.slane %v6723_v9, 5  ;;  %v6965_v55 = vld [vmem:[%s6502_s25 + $0x80] sm:$0x1] }
  0x86   : > { %v5278_v28 = vrot.slane %v5262_v6, 9  ;;  %5935 = vmatprep.mubr.msk.bf16.mxu0 %vm658_vm3, %v5293_v18  ;;  %v592_v60 = vrot.slane %v591_v21, 4  ;;  %v601_v20 = vor.u32 %v600_v25, %v596_v61  ;;  %v2828_v44 = vrot.slane %v5198_v11, 5  ;;  %v5204_v57 = vld [vmem:[%s6502_s25 + $0x88] sm:$0xf] }
  0x87   : > { %5781 = vmatprep.mubr.msk.bf16.mxu1 %vm658_vm3, %v5009_v23  ;;  %v2831_v34 = vrot.slane %v5199_v8, 5  ;;  %v2822_v45 = vsel %vm6754_vm7, %v5277_v10, %v2821_v38  ;;  %v2823_v59 = vrot.slane %v2821_v38, 4  ;;  %v5027_v62 = vcombine.low %v6382_v51, %v6958_v15  ;;  %v5205_v54 = vld [vmem:[%s6502_s25 + $0x8c] sm:$0x1]  ;;  %v5207_v17 = vld [vmem:[%s6502_s25 + $0x94] sm:$0xf] }
  0x88   : > { %v597_v9 = vsel %vm6528_vm4, %v592_v60, %v596_v61  ;;  %v602_v26 = vrot.slane %v601_v20, 4  ;;  %v2829_v48 = vsel %vm6754_vm7, %v5278_v28, %v2828_v44  ;;  %v2830_v49 = vrot.slane %v2828_v44, 4  ;;  %v5264_v61 = vld [vmem:[%s6502_s25 + $0x84] sm:$0xe]  ;;  %v5265_v23 = vld [vmem:[%s6502_s25 + $0x90] sm:$0xe] }
  0x89   : > { %v2825_v50 = vsel %vm6754_vm7, %v2823_v59, %v2824_v1  ;;  %v5279_v58 = vrot.slane %v5263_v47, 9  ;;  %v2835_v7 = vrot.slane %v6962_v40, 5  ;;  %v2838_v41 = vrot.slane %v6965_v55, 5  ;;  %v5208_v25 = vld [vmem:[%s6502_s25 + $0x98] sm:$0x1] }
  0x8a   : > { %v607_v4 = vsel %vm6528_vm4, %v602_v26, %v606_v31  ;;  %v5294_v12 = vcombine.low %v2822_v45, %v2825_v50  ;;  %v2832_v63 = vsel %vm6754_vm7, %v2830_v49, %v2831_v34  ;;  %v5280_v10 = vrot.slane %v5264_v61, 9  ;;  %v5210_v31 = vld [vmem:[%s6502_s25 + $0xa0] sm:$0xf]  ;;  %v5211_v60 = vld [vmem:[%s6502_s25 + $0xa4] sm:$0x1] }
  0x8b   : > { %v5010_v2 = vcombine.low %v597_v9, %v607_v4  ;;  %v5295_v6 = vcombine.low %v2829_v48, %v2832_v63  ;;  %v2842_v11 = vrot.slane %v5204_v57, 5  ;;  %v2845_v8 = vrot.slane %v5205_v54, 5  ;;  %v5266_v20 = vld [vmem:[%s6502_s25 + $0x9c] sm:$0xe]  ;;  %v6384_v44 = vld [vmem:[%s6502_s25 + $0xc] sm:$0xf] }
  0x8c   : > { %5936 = vmatmul.mubr.msk.bf16.gmra.mrb[12].mxu0 %vm658_vm3, %v5294_v12  ;;  %v2836_v18 = vsel %vm6754_vm7, %v5279_v58, %v2835_v7  ;;  %v2837_v21 = vrot.slane %v2835_v7, 4  ;;  %v2849_v28 = vrot.slane %v5207_v17, 5  ;;  %v6992_v34 = vld [vmem:[%s6502_s25 + $0x10] sm:$0xf]  ;;  %v6386_v47 = vld [vmem:[%s6502_s25 + $0x18] sm:$0xf] }
  0x8d   : > { %5782 = vmatmul.mubr.msk.bf16.gmra.mrb[28].mxu1 %vm658_vm3, %v5010_v2  ;;  %5939 = vmatprep.mubr.msk.bf16.mxu0 %vm658_vm3, %v5295_v6  ;;  %v2843_v38 = vsel %vm6754_vm7, %v5280_v10, %v2842_v11  ;;  %v2844_v1 = vrot.slane %v2842_v11, 4  ;;  %v5028_v45 = vcombine.low %v6384_v44, %v6992_v34  ;;  %v6999_v9 = vld [vmem:[%s6502_s25 + $0x1c] sm:$0xf]  ;;  %v5281_v48 = vrot.slane %v5265_v23, 9  ;;  %v5213_v57 = vld [vmem:[%s6502_s25 + $0xac] sm:$0xf] }
  0x8e   : > { %5787 = vmatprep.mubr.msk.bf16.mxu1 %vm658_vm3, %v5027_v62  ;;  %v2839_v59 = vsel %vm6754_vm7, %v2837_v21, %v2838_v41  ;;  %v5029_v26 = vcombine.low %v6386_v47, %v6999_v9  ;;  %v2851_v51 = vrot.slane %v2849_v28, 4  ;;  %v2852_v62 = vrot.slane %v5208_v25, 5  ;;  %v6388_v54 = vld [vmem:[%s8301_s1 + $0x8] sm:$0xf]  ;;  %v5216_v2 = vld [vmem:[%s6502_s25 + $0xb8] sm:$0xf] }
  0x8f   : > { %v5296_v49 = vcombine.low %v2836_v18, %v2839_v59  ;;  %v2846_v50 = vsel %vm6754_vm7, %v2844_v1, %v2845_v8  ;;  %v5282_v12 = vrot.slane %v5266_v20, 9  ;;  %v2856_v63 = vrot.slane %v5210_v31, 5  ;;  %v7014_v7 = vld [vmem:[%s8301_s1 + $0xc] sm:$0xf]  ;;  %v5214_v10 = vld [vmem:[%s6502_s25 + $0xb0] sm:$0x1] }
  0x90   : > { %v5297_v4 = vcombine.low %v2843_v38, %v2846_v50  ;;  %v2859_v58 = vrot.slane %v5211_v60, 5  ;;  %v1426_v61 = vsel %vm707_vm0, %v6388_v54, 0  ;;  %v2850_v41 = vsel %vm6754_vm7, %v5281_v48, %v2849_v28  ;;  %v5267_v11 = vld [vmem:[%s6502_s25 + $0xa8] sm:$0xe]  ;;  %v5217_v25 = vld [vmem:[%s6502_s25 + $0xbc] sm:$0x1] }
  0x91   : > { %v2858_v6 = vrot.slane %v2856_v63, 4  ;;  %v2853_v17 = vsel %vm6754_vm7, %v2851_v51, %v2852_v62  ;;  %v2863_v8 = vrot.slane %v5213_v57, 5  ;;  %v2857_v23 = vsel %vm6754_vm7, %v5282_v12, %v2856_v63  ;;  %v5268_v31 = vld [vmem:[%s6502_s25 + $0xb4] sm:$0xe]  ;;  %v6389_v38 = vld [vmem:[%s6502_s25 + $0x24] sm:$0xf] }
  0x92   : > { %v2870_v21 = vrot.slane %v5216_v2, 5  ;;  %v7035_v1 = vld [vmem:[%s6502_s25 + $0x28] sm:$0xf]  ;;  %v5298_v60 = vcombine.low %v2850_v41, %v2853_v17  ;;  %v5283_v44 = vrot.slane %v5267_v11, 9  ;;  %v2866_v59 = vrot.slane %v5214_v10, 5 }
  0x93   : > { %v2860_v18 = vsel %vm6754_vm7, %v2858_v6, %v2859_v58  ;;  %v5030_v28 = vcombine.low %v6389_v38, %v7035_v1  ;;  %v6391_v47 = vld [vmem:[%s6502_s25 + $0x30] sm:$0xf]  ;;  %v2873_v51 = vrot.slane %v5217_v25, 5  ;;  %v5219_v62 = vld [vmem:[%s6502_s25 + $0xc4] sm:$0xf]  ;;  %v2258_v25 = vshrl.u32 %v6962_v40, 16 }
  0x94   : > { %5940 = vmatmul.mubr.msk.bf16.gmra.mrb[16].mxu0 %vm658_vm3, %v5296_v49  ;;  %v5299_v20 = vcombine.low %v2857_v23, %v2860_v18  ;;  %v5284_v49 = vrot.slane %v5268_v31, 9  ;;  %v2872_v50 = vrot.slane %v2870_v21, 4  ;;  %v2864_v57 = vsel %vm6754_vm7, %v5283_v44, %v2863_v8  ;;  %v5269_v12 = vld [vmem:[%s6502_s25 + $0xc0] sm:$0xe]  ;;  %v6393_v41 = vld [vmem:[%s6502_s25 + $0x3c] sm:$0xf] }
  0x95   : > { %5788 = vmatmul.mubr.msk.bf16.vlgmr.msra.gmra.mrb[0].mxu1 %vm658_vm3, %v5028_v45  ;;  %5943 = vmatprep.mubr.msk.bf16.mxu0 %vm658_vm3, %v5297_v4  ;;  %v2865_v45 = vrot.slane %v2863_v8, 4  ;;  %v2877_v63 = vrot.slane %v5219_v62, 5  ;;  %v5285_v6 = vrot.slane %v5269_v12, 9  ;;  %v7060_v17 = vld [vmem:[%s6502_s25 + $0x40] sm:$0xf]  ;;  %v5033_v18 = vcombine.low %v6667_v27, %v6670_v36  ;;  %v6345_v62 = vld [vmem:[%s6502_s25 + $0x24] sm:$0xff]  }
  0x96   : > { %5820 = vmatpush3.bf16.msra.mxu1 %v1426_v61  ;;  %5791 = vmatprep.mubr.msk.bf16.mxu1 %vm658_vm3, %v5029_v26  ;;  %v7040_v26 = vld [vmem:[%s6502_s25 + $0x34] sm:$0xf]  ;;  %v2871_v58 = vsel %vm6754_vm7, %v5284_v49, %v2870_v21  ;;  %v2874_v54 = vsel %vm6754_vm7, %v2872_v50, %v2873_v51  ;;  %v5220_v61 = vld [vmem:[%s6502_s25 + $0xc8] sm:$0x1]  ;;  %v5032_v10 = vcombine.low %v6393_v41, %v7060_v17  ;;  %v2254_v21 = vshll.u32 %v6962_v40, 16 }
  0x97   : > { %6318 = vmatprep.subr.msk.bf16.mxu1 %vm707_vm0, %v7014_v7  ;;  %v5031_v48 = vcombine.low %v6391_v47, %v7040_v26  ;;  %v2867_v4 = vsel %vm6754_vm7, %v2865_v45, %v2866_v59  ;;  %v5301_v11 = vcombine.low %v2871_v58, %v2874_v54  ;;  %v2879_v8 = vrot.slane %v2877_v63, 4  ;;  %v1164_v45 = vld [vmem:[%s6502_s25] sm:$0xe]  ;;  %v1165_v59 = vld [vmem:[%s6502_s25 + $0xc] sm:$0xe] }
  0x98   : > { %v5300_v2 = vcombine.low %v2864_v57, %v2867_v4  ;;  %v2880_v23 = vrot.slane %v5220_v61, 5  ;;  %v2878_v31 = vsel %vm6754_vm7, %v5285_v6, %v2877_v63  ;;  %v7075_v27 = vrot.slane %v2254_v21, 5  ;;  %v1168_v41 = vld [vmem:[%s6502_s25 + $0x30] sm:$0xe] }
  0x99   : > { %v2260_v36 = vrot.slane %v2258_v25, 4  ;;  %v5035_v44 = vcombine.low %v6727_v19, %v6733_v35  ;;  %v2264_v47 = vshll.u32 %v6965_v55, 16  ;;  %v5059_v19 = vrot.slane %v1164_v45, 9 }
  0x9a   : > { %v2881_v38 = vsel %vm6754_vm7, %v2879_v8, %v2880_v23  ;;  %8322 = vst [vmem:[#allocation3_spill] sm:$0xff] %v7075_v27  ;;  %v5060_v35 = vrot.slane %v1165_v59, 9  ;;  %v1231_v4 = vrot.slane %v6999_v9, 5  ;;  %v1238_v12 = vrot.slane %v7035_v1, 5  ;;  %v1169_v8 = vld [vmem:[%s6502_s25 + $0x3c] sm:$0xe] }
  0x9b   : > { %v5302_v40 = vcombine.low %v2878_v31, %v2881_v38  ;;  %v2261_v49 = vor.u32 %v2260_v36, %v7075_v27  ;;  %v7095_v51 = vrot.slane %v2264_v47, 5  ;;  %v5036_v58 = vcombine.low %v6748_v0, %v6761_v29  ;;  %v1170_v31 = vld [vmem:[%s6502_s25 + $0x48] sm:$0xe]  ;;  %v6399_v59 = vld [vmem:[%s6502_s25 + $0x38] sm:$0x1] }
  0x9c   : > { %5944 = vmatmul.mubr.msk.bf16.gmra.mrb[20].mxu0 %vm658_vm3, %v5298_v60  ;;  %v5034_v60 = vcombine.low %v6696_v24, %v6702_v37  ;;  %v6396_v24 = vld [vmem:[%s6502_s25 + $0x14] sm:$0x1]  ;;  %v4066_v54 = vsel %vm707_vm0, %v6819_v22, 0  ;;  %v5037_v61 = vcombine.low %v6780_v53, %v6787_v16  ;;  %v5038_v6 = vcombine.low %v6806_v39, %v6814_v43  ;;  %v6397_v16 = vld [vmem:[%s6502_s25 + $0x20] sm:$0x1] }
  0x9d   : > { %5792 = vmatmul.mubr.msk.bf16.gmra.mrb[4].mxu1 %vm658_vm3, %v5030_v28  ;;  %5947 = vmatprep.mubr.msk.bf16.mxu0 %vm658_vm3, %v5299_v20  ;;  %v1224_v28 = vrot.slane %v6992_v34, 5  ;;  %v6343_v20 = vld [vmem:[%s6502_s25 + $0x18] sm:$0xff]   ;;  %v6395_v34 = vld [vmem:[%s6502_s25 + $0x8] sm:$0x1]  ;;  %v1227_v37 = vrot.slane %v6396_v24, 5  ;;  %8323 = vst [vmem:[#allocation4_spill] sm:$0xff] %v7095_v51  ;;  %v5039_v9 = vcombine.low %v6838_v5, %v6850_v30 }
  0x9e   : > { %5795 = vmatprep.mubr.msk.bf16.mxu1 %vm658_vm3, %v5031_v48  ;;  %v1217_v48 = vrot.slane %v6958_v15, 5  ;;  %v1220_v50 = vrot.slane %v6395_v34, 5  ;;  %v1166_v15 = vld [vmem:[%s6502_s25 + $0x18] sm:$0xe]  ;;  %v7100_v63 = vrot.slane %v2261_v49, 4  ;;  %v1234_v22 = vrot.slane %v6397_v16, 5 }
  0x9f   : > { %v1226_v55 = vrot.slane %v1224_v28, 4  ;;  %v5061_v1 = vrot.slane %v1166_v15, 9  ;;  %v7122_v29 = vsel %vm6754_vm7, %v5060_v35, %v1224_v28  ;;  %v1240_v25 = vrot.slane %v1238_v12, 4  ;;  %v5384_v24 = vld [vmem:[%s6502_s25 + $0x18] sm:$0xf] }
  0xa0   : > { %v1219_v57 = vrot.slane %v1217_v48, 4  ;;  %8324 = vst [vmem:[#allocation5_spill] sm:$0xff] %v7100_v63  ;;  %v7118_v0 = vsel %vm6754_vm7, %v5059_v19, %v1217_v48  ;;  %v1248_v47 = vrot.slane %v6399_v59, 5  ;;  %v7159_v49 = vsel %vm707_vm0, %v7014_v7, 0  ;;  %v5385_v7 = vld [vmem:[%s6502_s25 + $0x1c] sm:$0xf] }
  0xa1   : > { %v7126_v53 = vsel %vm6754_vm7, %v1226_v55, %v1227_v37  ;;  %v7163_v34 = vsel %vm6754_vm7, %v5061_v1, %v1231_v4  ;;  %v6349_v37 = vld [vmem:[%s6502_s25 + $0x3c] sm:$0xff]   ;;  %v5064_v35 = vrot.slane %v1169_v8, 9  ;;  %v6400_v55 = vld [vmem:[%s6502_s25 + $0x44] sm:$0x1]  ;;  %v3587_v8 = vshll.u32 %v5384_v24, 16 }
  0xa2   : > { %v7137_v23 = vsel %vm6754_vm7, %v1219_v57, %v1220_v50  ;;  %v1171_v50 = vld [vmem:[%s6502_s25 + $0x54] sm:$0xe]  ;;  %v1255_v15 = vrot.slane %v6400_v55, 5  ;;  %v5388_v39 = vld [vmem:[%s6502_s25 + $0x28] sm:$0xf] }
  0xa3   : > { %v6407_v5 = vld [vmem:[%s6502_s25 + $0x70] sm:$0xf] }
  0xa4   : > { %5948 = vmatmul.mubr.msk.bf16.gmra.mrb[24].mxu0 %vm658_vm3, %v5300_v2  ;;  %v1167_v2 = vld [vmem:[%s6502_s25 + $0x24] sm:$0xe]  ;;  %v1280_v30 = vrot.slane %v6407_v5, 5 }
  0xa5   : > { %5796 = vmatmul.mubr.msk.bf16.gmra.mrb[8].mxu1 %vm658_vm3, %v5032_v10  ;;  %5951 = vmatprep.mubr.msk.bf16.mxu0 %vm658_vm3, %v5301_v11  ;;  %v1245_v10 = vrot.slane %v7040_v26, 5  ;;  %v6347_v11 = vld [vmem:[%s6502_s25 + $0x30] sm:$0xff]   ;;  %v7133_v26 = vld [vmem:[%s8301_s1 + $0x20] sm:$0xf]  ;;  %v5062_v21 = vrot.slane %v1167_v2, 9 }
  0xa6   : > { %5799 = vmatprep.mubr.msk.bf16.mxu1 %vm658_vm3, %v5033_v18  ;;  %v1233_v18 = vrot.slane %v1231_v4, 4  ;;  %v1282_v48 = vrot.slane %v1280_v30, 4 }
  0xa7   : > { %v1247_v45 = vrot.slane %v1245_v10, 4  ;;  %v7170_v19 = vsel %vm6754_vm7, %v5062_v21, %v1238_v12  ;;  %v3597_v21 = vshrl.u32 %v5385_v7, 16 }
  0xa8   : > { %v7179_v4 = vsel %vm6754_vm7, %v1233_v18, %v1234_v22  ;;  %v3584_v22 = vshrl.u32 %v5384_v24, 16  ;;  %v3593_v18 = vshll.u32 %v5385_v7, 16  ;;  %v5387_v24 = vld [vmem:[%s6502_s25 + $0x24] sm:$0xf] }
  0xa9   : > { %v7192_v1 = vsel %vm6754_vm7, %v1247_v45, %v1248_v47 }
  0xaa   : > { %v3586_v43 = vrot.slane %v3584_v22, 4  ;;  %v7234_v7 = vrot.slane %v3593_v18, 5  ;;  %v3611_v22 = vshll.u32 %v5387_v24, 16  ;;  %v3621_v18 = vshrl.u32 %v5388_v39, 16 }
  0xac   : > { %5952 = vmatmul.mubr.msk.bf16.gmra.mrb[28].mxu0 %vm658_vm3, %v5302_v40  ;;  %v6398_v40 = vld [vmem:[%s6502_s25 + $0x2c] sm:$0x1]  ;;  %v3613_v27 = vrot.slane %v3611_v22, 5 }
  0xad   : > { %5800 = vmatmul.mubr.msk.bf16.gmra.mrb[12].mxu1 %vm658_vm3, %v5034_v60  ;;  %5957 = vmatprep.mubr.msk.bf16.mxu0 %vm658_vm3, %v6343_v20  ;;  %v1241_v28 = vrot.slane %v6398_v40, 5  ;;  %v1252_v60 = vrot.slane %v7060_v17, 5  ;;  %v6403_v40 = vld [vmem:[%s6502_s25 + $0x50] sm:$0x1]  ;;  %v6408_v17 = vld [vmem:[%s6502_s25 + $0x74] sm:$0x1] }
  0xae   : > { %5803 = vmatprep.mubr.msk.bf16.mxu1 %vm658_vm3, %v5035_v44  ;;  %v5063_v44 = vrot.slane %v1168_v41, 9  ;;  %v5066_v41 = vrot.slane %v1171_v50, 9  ;;  %v1172_v50 = vld [vmem:[%s6502_s25 + $0x60] sm:$0xe]  ;;  %v5389_v20 = vld [vmem:[%s6502_s25 + $0x2c] sm:$0x1] }
  0xaf   : > { %v1254_v12 = vrot.slane %v1252_v60, 4  ;;  %v7205_v45 = vsel %vm6754_vm7, %v5064_v35, %v1252_v60  ;;  %v6404_v35 = vld [vmem:[%s6502_s25 + $0x5c] sm:$0x1] }
  0xb0   : > { %v7188_v2 = vsel %vm6754_vm7, %v5063_v44, %v1245_v10  ;;  %v1269_v55 = vrot.slane %v6404_v35, 5  ;;  %v1173_v35 = vld [vmem:[%s6502_s25 + $0x6c] sm:$0xe] }
  0xb1   : > { %v7209_v59 = vsel %vm6754_vm7, %v1254_v12, %v1255_v15  ;;  %v6405_v15 = vld [vmem:[%s6502_s25 + $0x64] sm:$0xf]  ;;  %v3599_v12 = vrot.slane %v3597_v21, 4  ;;  %v5068_v5 = vrot.slane %v1173_v35, 9 }
  0xb2   : > { %v6355_v21 = vld [vmem:[%s6502_s25 + $0x60] sm:$0xff]  }
  0xb4   : > { %5958 = vmatmul.mubr.msk.bf16.vlgmr.msra.gmra.mrb[0].mxu0 %vm658_vm3, %v6345_v62  ;;  %v6401_v62 = vld [vmem:[%s6502_s25 + $0x4c] sm:$0xf] }
  0xb5   : > { %5804 = vmatmul.mubr.msk.bf16.gmra.mrb[16].mxu1 %vm658_vm3, %v5036_v58  ;;  %5990 = vmatpush3.bf16.msra.mxu0 %v4066_v54  ;;  %v1259_v57 = vrot.slane %v6401_v62, 5  ;;  %v7183_v58 = vsel %vm6754_vm7, %v1240_v25, %v1241_v28  ;;  %v5065_v54 = vrot.slane %v1170_v31, 9  ;;  %v1262_v28 = vrot.slane %v6403_v40, 5 }
  0xb6   : > { %5807 = vmatprep.mubr.msk.bf16.mxu1 %vm658_vm3, %v5037_v61  ;;  %5961 = vmatprep.mubr.msk.bf16.mxu0 %vm658_vm3, %v6347_v11  ;;  %v6351_v61 = vld [vmem:[%s6502_s25 + $0x48] sm:$0xff]   ;;  %v6402_v11 = vld [vmem:[%s6502_s25 + $0x58] sm:$0xf]  ;;  %v1273_v62 = vrot.slane %v6405_v15, 5  ;;  %v5391_v15 = vld [vmem:[%s6502_s25 + $0x34] sm:$0xf] }
  0xb7   : > { %6324 = vmatprep.subr.msk.bf16.mxu0 %vm707_vm0, %v7133_v26  ;;  %v1266_v16 = vrot.slane %v6402_v11, 5  ;;  %v1261_v31 = vrot.slane %v1259_v57, 4  ;;  %v7213_v47 = vsel %vm6754_vm7, %v5065_v54, %v1259_v57  ;;  %v5386_v57 = vld [vmem:[%s6502_s25 + $0x20] sm:$0x1]  ;;  %v5390_v54 = vld [vmem:[%s6502_s25 + $0x30] sm:$0xf] }
  0xb8   : > { %v5067_v11 = vrot.slane %v1172_v50, 9  ;;  %v3635_v50 = vshll.u32 %v5390_v54, 16  ;;  %v3603_v25 = vshll.u32 %v5386_v57, 16  ;;  %v3641_v36 = vshll.u32 %v5391_v15, 16 }
  0xb9   : > { %v7224_v60 = vsel %vm6754_vm7, %v5066_v41, %v1266_v16  ;;  %v7240_v41 = vsel %vm6754_vm7, %v1261_v31, %v1262_v28  ;;  %v1275_v31 = vrot.slane %v1273_v62, 4  ;;  %v3632_v28 = vshrl.u32 %v5390_v54, 16 }
  0xba   : > { %v7282_v35 = vrot.slane %v3641_v36, 5 }
  0xbc   : > { %5962 = vmatmul.mubr.msk.bf16.gmra.mrb[4].mxu0 %vm658_vm3, %v6349_v37  ;;  %v1268_v37 = vrot.slane %v1266_v16, 4  ;;  %v6406_v16 = vld [vmem:[%s6502_s25 + $0x68] sm:$0x1] }
  0xbd   : > { %5808 = vmatmul.mubr.msk.bf16.gmra.mrb[20].mxu1 %vm658_vm3, %v5038_v6  ;;  %5965 = vmatprep.mubr.msk.bf16.mxu0 %vm658_vm3, %v6351_v61  ;;  %v3589_v6 = vrot.slane %v3587_v8, 5  ;;  %v6353_v61 = vld [vmem:[%s6502_s25 + $0x54] sm:$0xff]   ;;  %v1276_v40 = vrot.slane %v6406_v16, 5  ;;  %v3617_v8 = vshll.u32 %v5388_v39, 16  ;;  %v3600_v16 = vor.u32 %v3599_v12, %v7234_v7 }
  0xbe   : > { %5811 = vmatprep.mubr.msk.bf16.mxu1 %vm658_vm3, %v5039_v9  ;;  %v3608_v9 = vshrl.u32 %v5387_v24, 16  ;;  %v7249_v44 = vsel %vm6754_vm7, %v1268_v37, %v1269_v55  ;;  %v1283_v24 = vrot.slane %v6408_v17, 5  ;;  %v3645_v39 = vshrl.u32 %v5391_v15, 16 }
  0xbf   : > { %v3590_v10 = vor.u32 %v3589_v6, %v3586_v43  ;;  %v7255_v37 = vrot.slane %v3617_v8, 5  ;;  %v3623_v55 = vrot.slane %v3621_v18, 4  ;;  %v8325_v43 = vcombine.low %v6859_v52, %v6870_v46  ;;  %v6409_v8 = vld [vmem:[%s6502_s25 + $0x7c] sm:$0xf]  ;;  %v7291_v18 = vld [vmem:[%s6502_s25 + $0x38] sm:$0x1] }
  0xc0   : > { %v3610_v38 = vrot.slane %v3608_v9, 4  ;;  %v7264_v17 = vsel %vm6754_vm7, %v5067_v11, %v1273_v62  ;;  %v7268_v57 = vsel %vm6754_vm7, %v1275_v31, %v1276_v40  ;;  %v3634_v6 = vrot.slane %v3632_v28, 4  ;;  %8327 = vst [vmem:[#allocation6_spill] sm:$0xff] %v7291_v18 }
  0xc1   : > { %v3637_v12 = vrot.slane %v3635_v50, 5  ;;  %v8326_v52 = vcombine.low %v6891_v33, %v6896_v56  ;;  %v3591_v46 = vrot.slane %v3590_v10, 4  ;;  %v3601_v54 = vrot.slane %v3600_v16, 4  ;;  %v6357_v33 = vld [vmem:[%s6502_s25 + $0x6c] sm:$0xff]   ;;  %v1175_v16 = vld [vmem:[%s6502_s25 + $0x84] sm:$0xe] }
  0xc2   : > { %v3627_v62 = vshll.u32 %v5389_v20, 16  ;;  %v7276_v11 = vsel %vm6754_vm7, %v5068_v5, %v1280_v30  ;;  %v7280_v40 = vsel %vm6754_vm7, %v1282_v48, %v1283_v24  ;;  %v3647_v9 = vrot.slane %v3645_v39, 4  ;;  %v6358_v48 = vld [vmem:[%s6502_s25 + $0x78] sm:$0xff]  }
  0xc3   : > { %v3614_v10 = vor.u32 %v3613_v27, %v3610_v38  ;;  %v3624_v20 = vor.u32 %v3623_v55, %v7255_v37  ;;  %v1287_v30 = vrot.slane %v6409_v8, 5  ;;  %v3638_v38 = vor.u32 %v3637_v12, %v3634_v6  ;;  %v5393_v5 = vld [vmem:[%s6502_s25 + $0x3c] sm:$0xf] }
  0xc4   : > { %5966 = vmatmul.mubr.msk.bf16.gmra.mrb[8].mxu0 %vm658_vm3, %v6353_v61  ;;  %v3605_v61 = vrot.slane %v3603_v25, 5  ;;  %v1174_v25 = vld [vmem:[%s6502_s25 + $0x78] sm:$0xe]  ;;  %v7307_v50 = vrot.slane %v3627_v62, 5  ;;  %v3648_v39 = vor.u32 %v3647_v9, %v7282_v35  ;;  %v3651_v55 = vshll.u32 %v7291_v18, 16 }
  0xc5   : > { %5812 = vmatmul.mubr.msk.bf16.gmra.mrb[24].mxu1 %vm658_vm3, %v8325_v43  ;;  %5969 = vmatprep.mubr.msk.bf16.mxu0 %vm658_vm3, %v6355_v21  ;;  %v3596_v21 = vsel %vm6528_vm4, %v3591_v46, %v7234_v7  ;;  %v5069_v24 = vrot.slane %v1174_v25, 9  ;;  %v6410_v43 = vld [vmem:[%s6502_s25 + $0x88] sm:$0xf]  ;;  %v7315_v7 = vld [vmem:[%s6502_s25 + $0x40] sm:$0xf]  ;;  %v3615_v12 = vrot.slane %v3614_v10, 4  ;;  %v8329_v62 = vcombine.low %v6911_v14, %v6920_v42 }
  0xc6   : > { %5815 = vmatprep.mubr.msk.bf16.mxu1 %vm658_vm3, %v8326_v52  ;;  %v3606_v31 = vsel %vm6528_vm4, %v3601_v54, %v3605_v61  ;;  %v1294_v6 = vrot.slane %v6410_v43, 5  ;;  %8328 = vst [vmem:[#allocation7_spill] sm:$0xff] %v7315_v7  ;;  %v3625_v52 = vrot.slane %v3624_v20, 4  ;;  %v1289_v46 = vrot.slane %v1287_v30, 4  ;;  %v6411_v54 = vld [vmem:[%s6502_s25 + $0x80] sm:$0x1] }
  0xc7   : > { %v1290_v61 = vrot.slane %v6411_v54, 5  ;;  %v3639_v9 = vrot.slane %v3638_v38, 4  ;;  %v5070_v25 = vrot.slane %v1175_v16, 9  ;;  %v3656_v8 = vshrl.u32 %v5393_v5, 16  ;;  %v6359_v10 = vld [vmem:[%s6502_s25 + $0x84] sm:$0xff]  }
  0xc8   : > { %v3659_v43 = vshll.u32 %v5393_v5, 16  ;;  %v7329_v20 = vcombine.low %v3596_v21, %v3606_v31  ;;  %v7333_v14 = vsel %vm707_vm0, %v7133_v26, 0  ;;  %v3669_v38 = vshrl.u32 %v7315_v7, 16  ;;  %v6360_v21 = vld [vmem:[%s6502_s25 + $0x90] sm:$0xff]   ;;  %v6416_v18 = vld [vmem:[%s6502_s25 + $0xa0] sm:$0xf] }
  0xc9   : > { %v3649_v16 = vrot.slane %v3648_v39, 4  ;;  %v3653_v5 = vrot.slane %v3651_v55, 5  ;;  %v1296_v54 = vrot.slane %v1294_v6, 4  ;;  %v3620_v31 = vsel %vm6528_vm4, %v3615_v12, %v7255_v37 }
  0xca   : > { %v3630_v26 = vsel %vm6528_vm4, %v3625_v52, %v7307_v50  ;;  %v7348_v39 = vsel %vm6754_vm7, %v5069_v24, %v1287_v30  ;;  %v7352_v55 = vsel %vm6754_vm7, %v1289_v46, %v1290_v61  ;;  %v3644_v37 = vsel %vm6528_vm4, %v3639_v9, %v7282_v35  ;;  %v5399_v30 = vld [vmem:[%s6502_s25 + $0x54] sm:$0xf]  ;;  %v7369_v24 = vld [vmem:[%s6502_s25 + $0x58] sm:$0xf]  ;;  %v7374_v61 = vld [vmem:[%s6502_s25 + $0x90] sm:$0xe] }
  0xcb   : > { %v7365_v12 = vsel %vm6754_vm7, %v5070_v25, %v1294_v6  ;;  %v3658_v50 = vrot.slane %v3656_v8, 4  ;;  %v3661_v52 = vrot.slane %v3659_v43, 5  ;;  %v3671_v46 = vrot.slane %v3669_v38, 4 }
  0xcc   : > { %5970 = vmatmul.mubr.msk.bf16.gmra.mrb[12].mxu0 %vm658_vm3, %v6357_v33  ;;  %v8330_v33 = vcombine.low %v7118_v0, %v7137_v23  ;;  %v6412_v0 = vld [vmem:[%s6502_s25 + $0x8c] sm:$0x1]  ;;  %v3654_v36 = vsel %vm6528_vm4, %v3649_v16, %v3653_v5  ;;  %v3704_v25 = vshrl.u32 %v5399_v30, 16  ;;  %v3707_v8 = vshll.u32 %v5399_v30, 16 }
  0xcd   : > { %5816 = vmatmul.mubr.msk.bf16.gmra.mrb[28].mxu1 %vm658_vm3, %v8329_v62  ;;  %5973 = vmatprep.mubr.msk.bf16.mxu0 %vm658_vm3, %v6358_v48  ;;  %v3665_v48 = vshll.u32 %v7315_v7, 16  ;;  %v1297_v23 = vrot.slane %v6412_v0, 5  ;;  %v5396_v62 = vld [vmem:[%s6502_s25 + $0x48] sm:$0xf]  ;;  %v7358_v0 = vld [vmem:[%s6502_s25 + $0x4c] sm:$0xf]  ;;  %v8332_v38 = vcombine.low %v7122_v29, %v7126_v53  ;;  %v7392_v16 = vcombine.low %v3620_v31, %v3630_v26 }
  0xce   : > { %5821 = vmatprep.mubr.msk.bf16.mxu1 %vm658_vm3, %v8330_v33  ;;  %v7355_v33 = vld [vmem:[%s6502_s25 + $0x44] sm:$0x1]  ;;  %v3680_v27 = vshrl.u32 %v5396_v62, 16  ;;  %v3683_v15 = vshll.u32 %v5396_v62, 16  ;;  %v3689_v6 = vshll.u32 %v7358_v0, 16  ;;  %v3693_v9 = vshrl.u32 %v7358_v0, 16 }
  0xcf   : > { %8331 = vst [vmem:[#allocation8_spill] sm:$0xff] %v7355_v33  ;;  %v7371_v28 = vrot.slane %v3665_v48, 5  ;;  %v7380_v35 = vsel %vm6754_vm7, %v1296_v54, %v1297_v23  ;;  %v3713_v43 = vshll.u32 %v7369_v24, 16  ;;  %v3717_v48 = vshrl.u32 %v7369_v24, 16  ;;  %v5402_v31 = vld [vmem:[%s6502_s25 + $0x60] sm:$0xf] }
  0xd0   : > { %v3675_v5 = vshll.u32 %v7355_v33, 16  ;;  %v5071_v54 = vrot.slane %v7374_v61, 9  ;;  %v8333_v23 = vcombine.low %v7163_v34, %v7179_v4  ;;  %v7403_v29 = vcombine.low %v3644_v37, %v3654_v36  ;;  %v6361_v26 = vld [vmem:[%s6502_s25 + $0x9c] sm:$0xff]   ;;  %v6362_v30 = vld [vmem:[%s6502_s25 + $0xa8] sm:$0xff]   ;;  %v6413_v36 = vld [vmem:[%s8301_s1 + $0x10] sm:$0xf] }
  0xd1   : > { %v3662_v53 = vor.u32 %v3661_v52, %v3658_v50  ;;  %v3682_v62 = vrot.slane %v3680_v27, 4  ;;  %v7414_v34 = vrot.slane %v3689_v6, 5  ;;  %v3695_v4 = vrot.slane %v3693_v9, 4  ;;  %v6414_v6 = vld [vmem:[%s6502_s25 + $0x94] sm:$0xf] }
  0xd2   : > { %v3706_v27 = vrot.slane %v3704_v25, 4  ;;  %v3709_v37 = vrot.slane %v3707_v8, 5  ;;  %v7423_v50 = vrot.slane %v3713_v43, 5  ;;  %v3719_v52 = vrot.slane %v3717_v48, 4  ;;  %v7429_v9 = vld [vmem:[%s6502_s25 + $0x64] sm:$0xf] }
  0xd3   : > { %8334 = vst [vmem:[#allocation9_spill] sm:$0xff] %v7429_v9  ;;  %v3728_v61 = vshrl.u32 %v5402_v31, 16  ;;  %v7431_v22 = vrot.slane %v3662_v53, 4  ;;  %v1308_v25 = vrot.slane %v6416_v18, 5  ;;  %v3696_v43 = vor.u32 %v3695_v4, %v7414_v34 }
  0xd4   : > { %5974 = vmatmul.mubr.msk.bf16.gmra.mrb[16].mxu0 %vm658_vm3, %v6359_v10  ;;  %v3731_v10 = vshll.u32 %v5402_v31, 16  ;;  %v3710_v31 = vor.u32 %v3709_v37, %v3706_v27  ;;  %v3720_v53 = vor.u32 %v3719_v52, %v7423_v50  ;;  %v8335_v18 = vcombine.low %v7170_v19, %v7183_v58  ;;  %v6363_v37 = vld [vmem:[%s6502_s25 + $0xb4] sm:$0xff]  }
  0xd5   : > { %5822 = vmatmul.mubr.msk.bf16.vlgmr.msra.gmra.mrb[0].mxu1 %vm658_vm3, %v8332_v38  ;;  %5977 = vmatprep.mubr.msk.bf16.mxu0 %vm658_vm3, %v6360_v21  ;;  %v3685_v21 = vrot.slane %v3683_v15, 5  ;;  %v7412_v38 = vld [vmem:[%s6502_s25 + $0x50] sm:$0x1]  ;;  %v7421_v15 = vld [vmem:[%s6502_s25 + $0x5c] sm:$0x1]  ;;  %v8336_v27 = vcombine.low %v7188_v2, %v7192_v1  ;;  %v1310_v52 = vrot.slane %v1308_v25, 4 }
  0xd6   : > { %5854 = vmatpush3.bf16.msra.mxu1 %v7159_v49  ;;  %5825 = vmatprep.mubr.msk.bf16.mxu1 %vm658_vm3, %v8333_v23  ;;  %v3672_v49 = vor.u32 %v3671_v46, %v7371_v28  ;;  %v7425_v46 = vrot.slane %v3675_v5, 5  ;;  %v1301_v23 = vrot.slane %v6414_v6, 5  ;;  %v3699_v48 = vshll.u32 %v7412_v38, 16  ;;  %v1177_v5 = vld [vmem:[%s6502_s25 + $0x9c] sm:$0xe] }
  0xd7   : > { %6320 = vmatprep.subr.msk.bf16.mxu1 %vm707_vm0, %v6413_v36  ;;  %v6415_v36 = vld [vmem:[%s6502_s25 + $0x98] sm:$0x1]  ;;  %v3686_v7 = vor.u32 %v3685_v21, %v3682_v62  ;;  %v3723_v6 = vshll.u32 %v7421_v15, 16  ;;  %v3741_v62 = vshrl.u32 %v7429_v9, 16  ;;  %v3733_v4 = vrot.slane %v3731_v10, 5 }
  0xd8   : > { %v1304_v33 = vrot.slane %v6415_v36, 5  ;;  %v3673_v8 = vrot.slane %v3672_v49, 4  ;;  %v3737_v36 = vshll.u32 %v7429_v9, 16  ;;  %v7450_v21 = vsel %vm6754_vm7, %v5071_v54, %v1301_v23  ;;  %v7461_v2 = vld [vmem:[%s6502_s25 + $0x68] sm:$0x1] }
  0xd9   : > { %v3730_v49 = vrot.slane %v3728_v61, 4  ;;  %v3687_v19 = vrot.slane %v3686_v7, 4  ;;  %v5072_v58 = vrot.slane %v1177_v5, 9  ;;  %v3697_v3 = vrot.slane %v3696_v43, 4  ;;  %8337 = vst [vmem:[#allocation10_spill] sm:$0xff] %v7461_v2  ;;  %v6364_v5 = vld [vmem:[%s6502_s25 + $0xc0] sm:$0xff]  }
  0xda   : > { %v3701_v54 = vrot.slane %v3699_v48, 5  ;;  %v3725_v63 = vrot.slane %v3723_v6, 5  ;;  %v1315_v61 = vrot.slane %v6896_v56, 5  ;;  %v3711_v10 = vrot.slane %v3710_v31, 4  ;;  %v1179_v31 = vld [vmem:[%s6502_s25 + $0xb4] sm:$0xe] }
  0xdb   : > { %v3721_v51 = vrot.slane %v3720_v53, 4  ;;  %v7463_v1 = vrot.slane %v3737_v36, 5  ;;  %v3743_v7 = vrot.slane %v3741_v62, 4  ;;  %v3668_v43 = vsel %vm6528_vm4, %v7431_v22, %v7371_v28  ;;  %v6418_v62 = vld [vmem:[%s6502_s25 + $0xb0] sm:$0x1] }
  0xdc   : > { %5978 = vmatmul.mubr.msk.bf16.gmra.mrb[20].mxu0 %vm658_vm3, %v6361_v26  ;;  %v1303_v26 = vrot.slane %v1301_v23, 4  ;;  %v1178_v23 = vld [vmem:[%s6502_s25 + $0xa8] sm:$0xe]  ;;  %v3678_v48 = vsel %vm6528_vm4, %v3673_v8, %v7425_v46  ;;  %v3734_v6 = vor.u32 %v3733_v4, %v3730_v49  ;;  %v3692_v53 = vsel %vm6528_vm4, %v3687_v19, %v7414_v34  ;;  %v5405_v46 = vld [vmem:[%s6502_s25 + $0x6c] sm:$0xf] }
  0xdd   : > { %5826 = vmatmul.mubr.msk.bf16.gmra.mrb[4].mxu1 %vm658_vm3, %v8335_v18  ;;  %5981 = vmatprep.mubr.msk.bf16.mxu0 %vm658_vm3, %v6362_v30  ;;  %v6417_v18 = vld [vmem:[%s6502_s25 + $0xa4] sm:$0x1]  ;;  %v7483_v36 = vsel %vm6754_vm7, %v5072_v58, %v1308_v25  ;;  %v5073_v28 = vrot.slane %v1178_v23, 9  ;;  %v1317_v8 = vrot.slane %v1315_v61, 4  ;;  %v3747_v49 = vshll.u32 %v7461_v2, 16 }
  0xde   : > { %5829 = vmatprep.mubr.msk.bf16.mxu1 %vm658_vm3, %v8336_v27  ;;  %v1311_v30 = vrot.slane %v6417_v18, 5  ;;  %v7475_v56 = vsel %vm6754_vm7, %v1303_v26, %v1304_v33  ;;  %v3702_v33 = vsel %vm6528_vm4, %v3697_v3, %v3701_v54  ;;  %v1318_v26 = vrot.slane %v6418_v62, 5  ;;  %v5408_v18 = vld [vmem:[%s6502_s25 + $0x78] sm:$0xf]  ;;  %v7538_v54 = vld [vmem:[%s6502_s25 + $0xbc] sm:$0x1] }
  0xdf   : > { %v3716_v34 = vsel %vm6528_vm4, %v3711_v10, %v7423_v50  ;;  %v3726_v25 = vsel %vm6528_vm4, %v3721_v51, %v3725_v63  ;;  %v3744_v4 = vor.u32 %v3743_v7, %v7463_v1  ;;  %v5074_v27 = vrot.slane %v1179_v31, 9  ;;  %v7512_v51 = vld [vmem:[%s6502_s25 + $0x70] sm:$0xf]  ;;  %v7542_v10 = vld [vmem:[%s6502_s25 + $0x7c] sm:$0xf] }
  0xe0   : > { %v7487_v22 = vsel %vm6754_vm7, %v1310_v52, %v1311_v30  ;;  %v8339_v3 = vcombine.low %v7205_v45, %v7209_v59  ;;  %v7508_v19 = vrot.slane %v3734_v6, 4  ;;  %v1322_v50 = vrot.slane %v6920_v42, 5  ;;  %8340 = vst [vmem:[#allocation12_spill] sm:$0xff] %v7512_v51  ;;  %8342 = vst [vmem:[#allocation13_spill] sm:$0xff] %v7542_v10  ;;  %v5411_v7 = vld [vmem:[%s6502_s25 + $0x84] sm:$0xf] }
  0xe1   : > { %8338 = vst [vmem:[#allocation11_spill] sm:$0xff] %v7487_v22  ;;  %v3752_v63 = vshrl.u32 %v5405_v46, 16  ;;  %v8341_v45 = vcombine.low %v7213_v47, %v7240_v41  ;;  %v7520_v58 = vcombine.low %v3692_v53, %v3702_v33  ;;  %v7526_v42 = vsel %vm6754_vm7, %v5073_v28, %v1315_v61  ;;  %v6365_v61 = vld [vmem:[%s6502_s25 + $0xcc] sm:$0xff]   ;;  %v7554_v31 = vld [vmem:[%s6502_s25 + $0x88] sm:$0xf] }
  0xe2   : > { %v7529_v30 = vcombine.low %v3716_v34, %v3726_v25  ;;  %v7533_v47 = vsel %vm6754_vm7, %v1317_v8, %v1318_v26  ;;  %v7535_v41 = vrot.slane %v3747_v49, 5  ;;  %v3761_v6 = vshll.u32 %v7512_v51, 16  ;;  %8343 = vst [vmem:[#allocation14_spill] sm:$0xff] %v7554_v31  ;;  %v5414_v62 = vld [vmem:[%s6502_s25 + $0x90] sm:$0xf] }
  0xe3   : > { %v7560_v28 = vrot.slane %v1322_v50, 4  ;;  %v7562_v33 = vrot.slane %v3752_v63, 4  ;;  %v3765_v8 = vshrl.u32 %v7512_v51, 16  ;;  %v3776_v26 = vshrl.u32 %v5408_v18, 16  ;;  %v7569_v25 = vld [vmem:[%s6502_s25 + $0x94] sm:$0xf] }
  0xe4   : > { %5982 = vmatmul.mubr.msk.bf16.gmra.mrb[24].mxu0 %vm658_vm3, %v6363_v37  ;;  %v7506_v37 = vcombine.low %v3668_v43, %v3678_v48  ;;  %v7550_v43 = vsel %vm6754_vm7, %v5074_v27, %v1322_v50  ;;  %v3755_v48 = vshll.u32 %v5405_v46, 16  ;;  %v3779_v49 = vshll.u32 %v5408_v18, 16  ;;  %8344 = vst [vmem:[#allocation15_spill] sm:$0xff] %v7569_v25  ;;  %v7607_v2 = vld [vmem:[%s6502_s25 + $0x8c] sm:$0x1] }
  0xe5   : > { %5830 = vmatmul.mubr.msk.bf16.gmra.mrb[8].mxu1 %vm658_vm3, %v8339_v3  ;;  %5985 = vmatprep.mubr.msk.bf16.mxu0 %vm658_vm3, %v6364_v5  ;;  %v7546_v5 = vrot.slane %v3744_v4, 4  ;;  %v3785_v46 = vshll.u32 %v7542_v10, 16  ;;  %v3789_v34 = vshrl.u32 %v7542_v10, 16  ;;  %v3800_v4 = vshrl.u32 %v5411_v7, 16 }
  0xe6   : > { %5833 = vmatprep.mubr.msk.bf16.mxu1 %vm658_vm3, %v8341_v45  ;;  %v3803_v27 = vshll.u32 %v5411_v7, 16  ;;  %v3809_v3 = vshll.u32 %v7554_v31, 16  ;;  %v3813_v50 = vshrl.u32 %v7554_v31, 16  ;;  %v7579_v45 = vld [vmem:[%s6502_s25 + $0x74] sm:$0x1]  ;;  %v3757_v18 = vrot.slane %v3755_v48, 5 }
  0xe7   : > { %v3824_v52 = vshrl.u32 %v5414_v62, 16  ;;  %v3827_v53 = vshll.u32 %v5414_v62, 16  ;;  %v8345_v7 = vcombine.low %v7224_v60, %v7249_v44  ;;  %v3767_v59 = vrot.slane %v3765_v8, 4  ;;  %v5417_v48 = vld [vmem:[%s6502_s25 + $0x9c] sm:$0xf] }
  0xe8   : > { %v3833_v63 = vshll.u32 %v7569_v25, 16  ;;  %v3837_v23 = vshrl.u32 %v7569_v25, 16  ;;  %v8346_v62 = vcombine.low %v7264_v17, %v7268_v57  ;;  %v7597_v44 = vld [vmem:[%s6502_s25 + $0x80] sm:$0x1]  ;;  %v3778_v60 = vrot.slane %v3776_v26, 4 }
  0xe9   : > { %8347 = vst [vmem:[#allocation16_spill] sm:$0xff] %v7597_v44  ;;  %v3802_v31 = vrot.slane %v3800_v4, 4  ;;  %v3805_v8 = vrot.slane %v3803_v27, 5  ;;  %v7601_v10 = vrot.slane %v3809_v3, 5  ;;  %v3815_v51 = vrot.slane %v3813_v50, 4 }
  0xea   : > { %v7604_v25 = vld [vmem:[%s6502_s25 + $0xa0] sm:$0xf]  ;;  %v3826_v17 = vrot.slane %v3824_v52, 4  ;;  %v3829_v57 = vrot.slane %v3827_v53, 5  ;;  %v3851_v9 = vshll.u32 %v5417_v48, 16  ;;  %v3758_v26 = vor.u32 %v3757_v18, %v7562_v33 }
  0xeb   : > { %v3795_v27 = vshll.u32 %v7597_v44, 16  ;;  %v7616_v3 = vld [vmem:[%s6502_s25 + $0x98] sm:$0x1]  ;;  %v3857_v50 = vshll.u32 %v7604_v25, 16  ;;  %v3861_v52 = vshrl.u32 %v7604_v25, 16  ;;  %v3806_v22 = vor.u32 %v3805_v8, %v3802_v31 }
  0xec   : > { %5986 = vmatmul.mubr.msk.bf16.gmra.mrb[28].mxu0 %vm658_vm3, %v6365_v61  ;;  %v7587_v61 = vrot.slane %v3761_v6, 5  ;;  %v3791_v6 = vrot.slane %v3789_v34, 4  ;;  %v3839_v34 = vrot.slane %v3837_v23, 4  ;;  %v3819_v33 = vshll.u32 %v7607_v2, 16 }
  0xed   : > { %5834 = vmatmul.mubr.msk.bf16.gmra.mrb[12].mxu1 %vm658_vm3, %v8345_v7  ;;  %5991 = vmatprep.mubr.msk.bf16.mxu0 %vm658_vm3, %v7329_v20  ;;  %v3781_v7 = vrot.slane %v3779_v49, 5  ;;  %v7599_v20 = vrot.slane %v3785_v46, 5  ;;  %v3771_v49 = vshll.u32 %v7579_v45, 16  ;;  %v7611_v46 = vrot.slane %v3833_v63, 5 }
  0xee   : > { %5837 = vmatprep.mubr.msk.bf16.mxu1 %vm658_vm3, %v8346_v62  ;;  %v3848_v62 = vshrl.u32 %v5417_v48, 16  ;;  %v3768_v4 = vor.u32 %v3767_v59, %v7587_v61  ;;  %v3816_v23 = vor.u32 %v3815_v51, %v7601_v10  ;;  %v3830_v59 = vor.u32 %v3829_v57, %v3826_v17  ;;  %v7649_v57 = vld [vmem:[%s6502_s25 + $0xa4] sm:$0x1] }
  0xef   : > { %v3782_v53 = vor.u32 %v3781_v7, %v3778_v60  ;;  %v3792_v48 = vor.u32 %v3791_v6, %v7599_v20  ;;  %v3853_v18 = vrot.slane %v3851_v9, 5  ;;  %v8348_v44 = vcombine.low %v7276_v11, %v7280_v40 }
  0xf0   : > { %v3850_v63 = vrot.slane %v3848_v62, 4  ;;  %v8349_v31 = vrot.slane %v7538_v54, 5  ;;  %v3773_v51 = vrot.slane %v3771_v49, 5  ;;  %v3840_v60 = vor.u32 %v3839_v34, %v7611_v46  ;;  %v7652_v34 = vld [vmem:[%s6502_s25 + $0xac] sm:$0xf] }
  0xf1   : > { %v3843_v9 = vshll.u32 %v7616_v3, 16  ;;  %v8350_v11 = vcombine.low %v7348_v39, %v7352_v55  ;;  %v3759_v40 = vrot.slane %v3758_v26, 4  ;;  %v7645_v54 = vrot.slane %v3857_v50, 5 }
  0xf2   : > { %v3783_v7 = vrot.slane %v3782_v53, 4  ;;  %v3793_v6 = vrot.slane %v3792_v48, 4  ;;  %v3797_v8 = vrot.slane %v3795_v27, 5  ;;  %v3821_v17 = vrot.slane %v3819_v33, 5  ;;  %v7662_v48 = vld [vmem:[%s6502_s25 + $0xb0] sm:$0x1] }
  0xf3   : > { %v3807_v39 = vrot.slane %v3806_v22, 4  ;;  %v3817_v55 = vrot.slane %v3816_v23, 4  ;;  %v3831_v62 = vrot.slane %v3830_v59, 4  ;;  %v3854_v49 = vor.u32 %v3853_v18, %v3850_v63 }
  0xf4   : > { %5992 = vmatmul.mubr.msk.bf16.vlgmr.msra.gmra.mrb[0].mxu0 %vm658_vm3, %v7392_v16  ;;  %v7635_v16 = vsel %vm6754_vm7, %v7560_v28, %v8349_v31  ;;  %v3863_v28 = vrot.slane %v3861_v52, 4  ;;  %v3845_v26 = vrot.slane %v3843_v9, 5  ;;  %v3764_v52 = vsel %vm6528_vm4, %v3759_v40, %v7587_v61 }
  0xf5   : > { %5838 = vmatmul.mubr.msk.bf16.gmra.mrb[16].mxu1 %vm658_vm3, %v8348_v44  ;;  %6024 = vmatpush3.bf16.msra.mxu0 %v7333_v14  ;;  %v3769_v14 = vrot.slane %v3768_v4, 4  ;;  %v5420_v44 = vld [vmem:[%s6502_s25 + $0xa8] sm:$0xf]  ;;  %v3867_v22 = vshll.u32 %v7649_v57, 16  ;;  %v3788_v33 = vsel %vm6528_vm4, %v3783_v7, %v7599_v20  ;;  %v3798_v23 = vsel %vm6528_vm4, %v3793_v6, %v3797_v8 }
  0xf6   : > { %5841 = vmatprep.mubr.msk.bf16.mxu1 %vm658_vm3, %v8350_v11  ;;  %5995 = vmatprep.mubr.msk.bf16.mxu0 %vm658_vm3, %v7403_v29  ;;  %v3841_v29 = vrot.slane %v3840_v60, 4  ;;  %v3872_v4 = vshrl.u32 %v5420_v44, 16  ;;  %v3875_v50 = vshll.u32 %v5420_v44, 16  ;;  %v3864_v53 = vor.u32 %v3863_v28, %v7645_v54  ;;  %v5469_v11 = vld [vmem:[%s6502_s25 + $0x48] sm:$0xe] }
  0xf7   : > { %v3774_v27 = vsel %vm6528_vm4, %v3769_v14, %v3773_v51  ;;  %v3881_v59 = vshll.u32 %v7652_v34, 16  ;;  %v3885_v61 = vshrl.u32 %v7652_v34, 16  ;;  %v3812_v63 = vsel %vm6528_vm4, %v3807_v39, %v7601_v10  ;;  %v7727_v39 = vld [vmem:[%s6502_s25 + $0xb8] sm:$0xf] }
  0xf8   : > { %v3822_v18 = vsel %vm6528_vm4, %v3817_v55, %v3821_v17  ;;  %v3836_v20 = vsel %vm6528_vm4, %v3831_v62, %v7611_v46  ;;  %v3855_v31 = vrot.slane %v3854_v49, 4  ;;  %v8351_v51 = vcombine.low %v7365_v12, %v7380_v35 }
  0xf9   : > { %v3874_v10 = vrot.slane %v3872_v4, 4  ;;  %v3877_v60 = vrot.slane %v3875_v50, 5  ;;  %v3891_v9 = vshll.u32 %v7662_v48, 16  ;;  %v8352_v46 = vcombine.low %v7450_v21, %v7475_v56  ;;  %v5423_v21 = vld [vmem:[%s6502_s25 + $0xb4] sm:$0xf] }
  0xfa   : > { %v5090_v12 = vcombine.low %v7526_v42, %v7533_v47  ;;  %v8353_v35 = vsel %vm6528_vm4, %v7546_v5, %v7535_v41  ;;  %v3865_v14 = vrot.slane %v3864_v53, 4  ;;  %v3869_v28 = vrot.slane %v3867_v22, 5  ;;  %v5471_v4 = vld [vmem:[%s6502_s25 + $0x60] sm:$0xe]  ;;  %v5472_v53 = vld [vmem:[%s6502_s25 + $0x6c] sm:$0xe] }
  0xfb   : > { %v5091_v56 = vcombine.low %v7550_v43, %v7635_v16  ;;  %v7710_v44 = vcombine.low %v3764_v52, %v3774_v27  ;;  %v7712_v42 = vrot.slane %v3881_v59, 5  ;;  %v3887_v47 = vrot.slane %v3885_v61, 4  ;;  %v8362_v16 = vld [vmem:[#allocation4_spill] sm:$0xff] }
  0xfc   : > { %5996 = vmatmul.mubr.msk.bf16.gmra.mrb[4].mxu0 %vm658_vm3, %v7506_v37  ;;  %v3846_v37 = vsel %vm6528_vm4, %v3841_v29, %v3845_v26  ;;  %v7714_v41 = vcombine.low %v3788_v33, %v3798_v23  ;;  %v7716_v5 = vcombine.low %v3812_v63, %v3822_v18  ;;  %v3860_v6 = vsel %vm6528_vm4, %v3855_v31, %v7645_v54  ;;  %v8355_v23 = vld [vmem:[#allocation11_spill] sm:$0xff]  ;;  %v5426_v63 = vld [vmem:[%s6502_s25 + $0xc0] sm:$0xf]  ;;  %v8357_v18 = vld [vmem:[#allocation9_spill] sm:$0xff] }
  0xfd   : > { %5842 = vmatmul.mubr.msk.bf16.gmra.mrb[20].mxu1 %vm658_vm3, %v8351_v51  ;;  %5999 = vmatprep.mubr.msk.bf16.mxu0 %vm658_vm3, %v7520_v58  ;;  %v8354_v58 = vsel %vm6528_vm4, %v7508_v19, %v7463_v1  ;;  %v7718_v7 = vcombine.low %v3836_v20, %v3846_v37  ;;  %v5485_v1 = vrot.slane %v5469_v11, 9  ;;  %v5470_v19 = vld [vmem:[%s6502_s25 + $0x54] sm:$0xe]  ;;  %v3878_v8 = vor.u32 %v3877_v60, %v3874_v10  ;;  %v8358_v31 = vld [vmem:[#allocation10_spill] sm:$0xff] }
  0xfe   : > { %5845 = vmatprep.mubr.msk.bf16.mxu1 %vm658_vm3, %v8352_v46  ;;  %v5439_v40 = vcombine.low %v8354_v58, %v8353_v35  ;;  %v7724_v17 = vrot.slane %v3891_v9, 5  ;;  %v3896_v55 = vshrl.u32 %v5423_v21, 16  ;;  %v3870_v62 = vsel %vm6528_vm4, %v3865_v14, %v3869_v28  ;;  %v8359_v9 = vld [vmem:[#allocation12_spill] sm:$0xff]  ;;  %v7776_v35 = vld [vmem:[%s6502_s25 + $0xbc] sm:$0x1] }
  0xff   : > { %v3899_v49 = vshll.u32 %v5423_v21, 16  ;;  %v4355_v29 = vrot.slane %v7358_v0, 5  ;;  %v4358_v26 = vrot.slane %v7412_v38, 5  ;;  %v3888_v50 = vor.u32 %v3887_v47, %v7712_v42  ;;  %v7779_v58 = vld [vmem:[%s6502_s25 + $0xc4] sm:$0xf] }
 0x100   : > { %v5486_v52 = vrot.slane %v5470_v19, 9  ;;  %v4362_v54 = vrot.slane %v7369_v24, 5  ;;  %v4365_v27 = vrot.slane %v7421_v15, 5  ;;  %v3905_v22 = vshll.u32 %v7727_v39, 16  ;;  %v5473_v19 = vld [vmem:[%s6502_s25 + $0x78] sm:$0xe] }
 0x101   : > { %v3909_v33 = vshrl.u32 %v7727_v39, 16  ;;  %v7744_v0 = vsel %vm6754_vm7, %v5485_v1, %v4355_v29  ;;  %v4357_v38 = vrot.slane %v4355_v29, 4  ;;  %v8356_v59 = vcombine.low %v7483_v36, %v8355_v23  ;;  %v8360_v23 = vld [vmem:[#allocation13_spill] sm:$0xff] }
 0x102   : > { %v7751_v24 = vcombine.low %v3860_v6, %v3870_v62  ;;  %v7755_v15 = vsel %vm6754_vm7, %v5486_v52, %v4362_v54  ;;  %v5487_v61 = vrot.slane %v5471_v4, 9  ;;  %v4369_v20 = vrot.slane %v8357_v18, 5  ;;  %v6366_v6 = vld [vmem:[%s6502_s25 + $0xc] sm:$0xff]  }
 0x103   : > { %v7761_v36 = vsel %vm6754_vm7, %v4357_v38, %v4358_v26  ;;  %v4372_v51 = vrot.slane %v8358_v31, 5  ;;  %v5488_v37 = vrot.slane %v5472_v53, 9  ;;  %v4376_v11 = vrot.slane %v8359_v9, 5 }
 0x104   : > { %6000 = vmatmul.mubr.msk.bf16.gmra.mrb[8].mxu0 %vm658_vm3, %v7529_v30  ;;  %v4364_v30 = vrot.slane %v4362_v54, 4  ;;  %v5502_v10 = vcombine.low %v7744_v0, %v7761_v36  ;;  %v4379_v46 = vrot.slane %v7579_v45, 5  ;;  %v7785_v14 = vsel %vm6754_vm7, %v5487_v61, %v4369_v20 }
 0x105   : > { %5846 = vmatmul.mubr.msk.bf16.gmra.mrb[24].mxu1 %vm658_vm3, %v8356_v59  ;;  %6003 = vmatprep.mubr.msk.bf16.mxu0 %vm658_vm3, %v5439_v40  ;;  %v4371_v28 = vrot.slane %v4369_v20, 4  ;;  %v7787_v21 = vrot.slane %v3896_v55, 4  ;;  %v3920_v47 = vshrl.u32 %v5426_v63, 16  ;;  %v7791_v45 = vsel %vm6754_vm7, %v5488_v37, %v4376_v11  ;;  %v5200_v55 = vld [vmem:[%s6502_s25 + $0x78] sm:$0xf]  ;;  %v8361_v59 = vld [vmem:[#allocation16_spill] sm:$0xff] }
 0x106   : > { %5849 = vmatprep.mubr.msk.bf16.mxu1 %vm658_vm3, %v5090_v12  ;;  %v7769_v60 = vsel %vm6754_vm7, %v4364_v30, %v4365_v27  ;;  %v7773_v12 = vrot.slane %v3878_v8, 4  ;;  %v4378_v1 = vrot.slane %v4376_v11, 4  ;;  %v7795_v8 = vrot.slane %v3888_v50, 4 }
 0x107   : > { %v5503_v40 = vcombine.low %v7755_v15, %v7769_v60  ;;  %v7797_v62 = vrot.slane %v3899_v49, 5  ;;  %v3923_v29 = vshll.u32 %v5426_v63, 16  ;;  %v7801_v26 = vsel %vm6754_vm7, %v4371_v28, %v4372_v51  ;;  %v8364_v28 = vld [vmem:[#allocation14_spill] sm:$0xff] }
 0x108   : > { %v7804_v4 = vrot.slane %v3905_v22, 5  ;;  %v7806_v52 = vrot.slane %v3909_v33, 4  ;;  %v5504_v54 = vcombine.low %v7785_v14, %v7801_v26  ;;  %v7812_v27 = vsel %vm6754_vm7, %v4378_v1, %v4379_v46  ;;  %v5474_v33 = vld [vmem:[%s6502_s25 + $0x84] sm:$0xe]  ;;  %v6367_v1 = vld [vmem:[%s6502_s25 + $0x18] sm:$0xff]  }
 0x109   : > { %v3915_v49 = vshll.u32 %v7776_v35, 16  ;;  %v3929_v50 = vshll.u32 %v7779_v58, 16  ;;  %v5505_v53 = vcombine.low %v7791_v45, %v7812_v27  ;;  %v5489_v22 = vrot.slane %v5473_v19, 9  ;;  %v6429_v60 = vld [vmem:[%s6502_s25 + $0xa0] sm:$0xf] }
 0x10a   : > { %v3922_v38 = vrot.slane %v3920_v47, 4  ;;  %v4386_v30 = vrot.slane %v8361_v59, 5  ;;  %v2245_v61 = vshrl.u32 %v5200_v55, 16  ;;  %v3925_v63 = vrot.slane %v3923_v29, 5  ;;  %v5429_v29 = vld [vmem:[%s6502_s25 + $0xcc] sm:$0xf] }
 0x10b   : > { %v3933_v18 = vshrl.u32 %v7779_v58, 16  ;;  %v2248_v43 = vshll.u32 %v5200_v55, 16  ;;  %v5490_v37 = vrot.slane %v5474_v33, 9  ;;  %v3884_v9 = vsel %vm6528_vm4, %v7773_v12, %v7712_v42  ;;  %v7855_v55 = vld [vmem:[%s6502_s25 + $0xd0] sm:$0xf] }
 0x10c   : > { %6004 = vmatmul.mubr.msk.bf16.gmra.mrb[12].mxu0 %vm658_vm3, %v7710_v44  ;;  %v4383_v44 = vrot.slane %v8360_v23, 5  ;;  %v2247_v51 = vrot.slane %v2245_v61, 4  ;;  %v3902_v11 = vor.u32 %v7797_v62, %v7787_v21  ;;  %v4390_v47 = vrot.slane %v8364_v28, 5  ;;  %v6368_v21 = vld [vmem:[%s6502_s25 + $0x24] sm:$0xff]   ;;  %v6433_v27 = vld [vmem:[%s6502_s25 + $0xac] sm:$0xf] }
 0x10d   : > { %5850 = vmatmul.mubr.msk.bf16.gmra.mrb[28].mxu1 %vm658_vm3, %v5091_v56  ;;  %6007 = vmatprep.mubr.msk.bf16.mxu0 %vm658_vm3, %v7714_v41  ;;  %v8363_v56 = vld [vmem:[#allocation5_spill] sm:$0xff]  ;;  %v2250_v46 = vrot.slane %v2248_v43, 5  ;;  %v3894_v19 = vsel %vm6528_vm4, %v7795_v8, %v7724_v17  ;;  %v4393_v12 = vrot.slane %v7607_v2, 5  ;;  %v7863_v62 = vrot.slane %v3929_v50, 5  ;;  %v5475_v8 = vld [vmem:[%s6502_s25 + $0x90] sm:$0xe] }
 0x10e   : > { %5855 = vmatprep.mubr.msk.bf16.mxu1 %vm658_vm3, %v6366_v6  ;;  %v2267_v41 = vsel %vm6528_vm4, %v8363_v56, %v8362_v16  ;;  %v7837_v20 = vsel %vm6754_vm7, %v5489_v22, %v4383_v44  ;;  %v4385_v31 = vrot.slane %v4383_v44, 4  ;;  %v3912_v6 = vor.u32 %v7806_v52, %v7804_v4  ;;  %v7869_v52 = vld [vmem:[%s6502_s25 + $0xc8] sm:$0x1]  ;;  %v8366_v16 = vld [vmem:[#allocation2_spill] sm:$0xff] }
 0x10f   : > { %v3935_v22 = vrot.slane %v3933_v18, 4  ;;  %v2251_v17 = vor.u32 %v2250_v46, %v2247_v51  ;;  %v3917_v23 = vrot.slane %v3915_v49, 5  ;;  %v3926_v44 = vor.u32 %v3925_v63, %v3922_v38  ;;  %v8367_v51 = vld [vmem:[#allocation3_spill] sm:$0xff] }
 0x110   : > { %v7859_v42 = vsel %vm6754_vm7, %v4385_v31, %v4386_v30  ;;  %v7873_v59 = vsel %vm6754_vm7, %v5490_v37, %v4390_v47  ;;  %v4392_v30 = vrot.slane %v4390_v47, 4  ;;  %v3944_v2 = vshrl.u32 %v5429_v29, 16 }
 0x111   : > { %v5506_v33 = vcombine.low %v7837_v20, %v7859_v42  ;;  %v3947_v50 = vshll.u32 %v5429_v29, 16  ;;  %v3953_v61 = vshll.u32 %v7855_v55, 16  ;;  %v2252_v18 = vrot.slane %v2251_v17, 4  ;;  %v6369_v29 = vld [vmem:[%s6502_s25 + $0x30] sm:$0xff]  }
 0x112   : > { %v3957_v49 = vshrl.u32 %v7855_v55, 16  ;;  %v7884_v38 = vsel %vm6754_vm7, %v4392_v30, %v4393_v12  ;;  %v5491_v63 = vrot.slane %v5475_v8, 9  ;;  %v3936_v56 = vor.u32 %v3935_v22, %v7863_v62 }
 0x113   : > { %v3939_v31 = vshll.u32 %v7869_v52, 16  ;;  %v5507_v37 = vcombine.low %v7873_v59, %v7884_v38  ;;  %v5445_v46 = vcombine.low %v3884_v9, %v3894_v19  ;;  %v3903_v28 = vrot.slane %v3902_v11, 4  ;;  %v5476_v11 = vld [vmem:[%s6502_s25 + $0x9c] sm:$0xe] }
 0x114   : > { %6008 = vmatmul.mubr.msk.bf16.gmra.mrb[16].mxu0 %vm658_vm3, %v7716_v5  ;;  %v8365_v5 = vld [vmem:[#allocation15_spill] sm:$0xff]  ;;  %v3913_v47 = vrot.slane %v3912_v6, 4  ;;  %v3927_v12 = vrot.slane %v3926_v44, 4  ;;  %v4400_v8 = vrot.slane %v7616_v3, 5  ;;  %v3946_v30 = vrot.slane %v3944_v2, 4  ;;  %v6370_v19 = vld [vmem:[%s6502_s25 + $0x3c] sm:$0xff]  }
 0x115   : > { %5856 = vmatmul.mubr.msk.bf16.vlgmr.msra.gmra.mrb[0].mxu1 %vm658_vm3, %v6367_v1  ;;  %6011 = vmatprep.mubr.msk.bf16.mxu0 %vm658_vm3, %v7718_v7  ;;  %v4397_v43 = vrot.slane %v8365_v5, 5  ;;  %v2257_v7 = vsel %vm6528_vm4, %v2252_v18, %v8367_v51  ;;  %v3949_v18 = vrot.slane %v3947_v50, 5  ;;  %v7907_v5 = vrot.slane %v3953_v61, 5 }
 0x116   : > { %6058 = vmatpush3.bf16.msra.mxu1 %v8366_v16  ;;  %5859 = vmatprep.mubr.msk.bf16.mxu1 %vm658_vm3, %v6368_v21  ;;  %v7896_v1 = vcombine.low %v2257_v7, %v2267_v41  ;;  %v7900_v21 = vld [vmem:[%s6502_s25 + $0xd4] sm:$0x1]  ;;  %v3959_v9 = vrot.slane %v3957_v49, 4  ;;  %v3937_v41 = vrot.slane %v3936_v56, 4  ;;  %v3941_v6 = vrot.slane %v3939_v31, 5 }
 0x117   : > { %v7904_v22 = vsel %vm6754_vm7, %v5491_v63, %v4397_v43  ;;  %v4399_v17 = vrot.slane %v4397_v43, 4  ;;  %v3908_v63 = vsel %vm6528_vm4, %v3903_v28, %v7804_v4  ;;  %v3918_v2 = vsel %vm6528_vm4, %v3913_v47, %v3917_v23  ;;  %v6420_v16 = vld [vmem:[%s6502_s25 + $0x1c] sm:$0xf]  ;;  %v5477_v28 = vld [vmem:[%s6502_s25 + $0xa8] sm:$0xe] }
 0x118   : > { %v3963_v50 = vshll.u32 %v7900_v21, 16  ;;  %v5492_v61 = vrot.slane %v5476_v11, 9  ;;  %v4404_v49 = vrot.slane %v7604_v25, 5  ;;  %v3932_v4 = vsel %vm6528_vm4, %v3927_v12, %v7863_v62  ;;  %v5465_v62 = vld [vmem:[%s6502_s25 + $0x18] sm:$0xe]  ;;  %v6371_v47 = vld [vmem:[%s6502_s25 + $0x48] sm:$0xff]  }
 0x119   : > { %v7913_v44 = vsel %vm6754_vm7, %v4399_v17, %v4400_v8  ;;  %v3960_v43 = vor.u32 %v3959_v9, %v7907_v5  ;;  %v4407_v23 = vrot.slane %v7649_v57, 5  ;;  %v3942_v25 = vsel %vm6528_vm4, %v3937_v41, %v3941_v6  ;;  %v6421_v11 = vld [vmem:[%s6502_s25 + $0x20] sm:$0x1] }
 0x11a   : > { %v5508_v3 = vcombine.low %v7904_v22, %v7913_v44  ;;  %v4327_v56 = vrot.slane %v6420_v16, 5  ;;  %v7939_v31 = vsel %vm6754_vm7, %v5492_v61, %v4404_v49  ;;  %v4406_v51 = vrot.slane %v4404_v49, 4  ;;  %v5478_v49 = vld [vmem:[%s6502_s25 + $0xb4] sm:$0xe] }
 0x11b   : > { %v5446_v7 = vcombine.low %v3908_v63, %v3918_v2  ;;  %v3961_v17 = vrot.slane %v3960_v43, 4  ;;  %v5493_v41 = vrot.slane %v5477_v28, 9  ;;  %v4411_v6 = vrot.slane %v7652_v34, 5  ;;  %v5466_v2 = vld [vmem:[%s6502_s25 + $0x24] sm:$0xe] }
 0x11c   : > { %6012 = vmatmul.mubr.msk.bf16.gmra.mrb[20].mxu0 %vm658_vm3, %v7751_v24  ;;  %v3950_v24 = vor.u32 %v3949_v18, %v3946_v30  ;;  %v7944_v57 = vsel %vm6754_vm7, %v4406_v51, %v4407_v23  ;;  %v6372_v30 = vld [vmem:[%s6502_s25 + $0x54] sm:$0xff]   ;;  %v5481_v18 = vrot.slane %v5465_v62, 9  ;;  %v4329_v9 = vrot.slane %v4327_v56, 4  ;;  %v6424_v28 = vld [vmem:[%s6502_s25 + $0x2c] sm:$0x1] }
 0x11d   : > { %5860 = vmatmul.mubr.msk.bf16.gmra.mrb[4].mxu1 %vm658_vm3, %v6369_v29  ;;  %6015 = vmatprep.mubr.msk.bf16.mxu0 %vm658_vm3, %v5445_v46  ;;  %v3965_v46 = vrot.slane %v3963_v50, 5  ;;  %v5447_v29 = vcombine.low %v3932_v4, %v3942_v25  ;;  %v5509_v8 = vcombine.low %v7939_v31, %v7944_v57  ;;  %v4414_v63 = vrot.slane %v7662_v48, 5  ;;  %v6422_v50 = vld [vmem:[%s6502_s25 + $0x28] sm:$0xf]  ;;  %v5467_v25 = vld [vmem:[%s6502_s25 + $0x30] sm:$0xe] }
 0x11e   : > { %5863 = vmatprep.mubr.msk.bf16.mxu1 %vm658_vm3, %v6370_v19  ;;  %v3951_v12 = vrot.slane %v3950_v24, 4  ;;  %v4330_v19 = vrot.slane %v6421_v11, 5  ;;  %v4334_v61 = vrot.slane %v6422_v50, 5  ;;  %v7967_v48 = vsel %vm6754_vm7, %v5493_v41, %v4411_v6  ;;  %v6374_v11 = vld [vmem:[%s6502_s25 + $0x6c] sm:$0xff]   ;;  %v8368_v41 = vld [vmem:[#allocation6_spill] sm:$0xff] }
 0x11f   : > { %v3966_v34 = vsel %vm6528_vm4, %v3961_v17, %v3965_v46  ;;  %v4413_v24 = vrot.slane %v4411_v6, 4  ;;  %v4328_v43 = vsel %vm6754_vm7, %v5481_v18, %v4327_v56  ;;  %v5482_v51 = vrot.slane %v5466_v2, 9  ;;  %v5479_v50 = vld [vmem:[%s6502_s25 + $0xc0] sm:$0xe]  ;;  %v6438_v31 = vld [vmem:[%s6502_s25 + $0xc8] sm:$0x1] }
 0x120   : > { %v3956_v4 = vsel %vm6528_vm4, %v3951_v12, %v7907_v5  ;;  %v4331_v23 = vsel %vm6754_vm7, %v4329_v9, %v4330_v19  ;;  %v6423_v5 = vld [vmem:[%s6502_s25 + $0x34] sm:$0xf]  ;;  %v6373_v12 = vld [vmem:[%s6502_s25 + $0x60] sm:$0xff]   ;;  %v5483_v18 = vrot.slane %v5467_v25, 9  ;;  %v4421_v9 = vrot.slane %v7776_v35, 5 }
 0x121   : > { %v4341_v16 = vrot.slane %v6423_v5, 5  ;;  %v7978_v62 = vsel %vm6754_vm7, %v4413_v24, %v4414_v63  ;;  %v5448_v46 = vcombine.low %v3956_v4, %v3966_v34  ;;  %v5498_v17 = vcombine.low %v4328_v43, %v4331_v23  ;;  %v5468_v24 = vld [vmem:[%s6502_s25 + $0x3c] sm:$0xe] }
 0x122   : > { %v5510_v56 = vcombine.low %v7967_v48, %v7978_v62  ;;  %v4344_v6 = vrot.slane %v8368_v41, 5  ;;  %v4335_v35 = vsel %vm6754_vm7, %v5482_v51, %v4334_v61  ;;  %v5495_v5 = vrot.slane %v5479_v50, 9 }
 0x123   : > { %v4343_v19 = vrot.slane %v4341_v16, 4  ;;  %v4342_v23 = vsel %vm6754_vm7, %v5483_v18, %v4341_v16  ;;  %v4428_v51 = vrot.slane %v7869_v52, 5  ;;  %v2408_v57 = vshll.u32 %v6438_v31, 16 }
 0x124   : > { %6016 = vmatmul.mubr.msk.bf16.gmra.mrb[24].mxu0 %vm658_vm3, %v5446_v7  ;;  %v5494_v7 = vrot.slane %v5478_v49, 9 }
 0x125   : > { %5864 = vmatmul.mubr.msk.bf16.gmra.mrb[8].mxu1 %vm658_vm3, %v6371_v47  ;;  %6019 = vmatprep.mubr.msk.bf16.mxu0 %vm658_vm3, %v5447_v29  ;;  %v4337_v47 = vrot.slane %v6424_v28, 5  ;;  %v4418_v29 = vrot.slane %v7727_v39, 5  ;;  %v8369_v39 = vld [vmem:[#allocation7_spill] sm:$0xff]  ;;  %v4345_v25 = vsel %vm6754_vm7, %v4343_v19, %v4344_v6  ;;  %v5484_v28 = vrot.slane %v5468_v24, 9 }
 0x126   : > { %5867 = vmatprep.mubr.msk.bf16.mxu1 %vm658_vm3, %v6372_v30  ;;  %v4336_v30 = vrot.slane %v4334_v61, 4  ;;  %v4348_v49 = vrot.slane %v8369_v39, 5  ;;  %v4425_v61 = vrot.slane %v7779_v58, 5  ;;  %v6425_v39 = vld [vmem:[%s6502_s25 + $0x70] sm:$0xf]  ;;  %v4432_v24 = vrot.slane %v7855_v55, 5 }
 0x127   : > { %v7990_v63 = vsel %vm6754_vm7, %v5494_v7, %v4418_v29  ;;  %v4420_v2 = vrot.slane %v4418_v29, 4  ;;  %v5197_v7 = vld [vmem:[%s6502_s25 + $0x6c] sm:$0xf]  ;;  %v8370_v29 = vld [vmem:[#allocation8_spill] sm:$0xff] }
 0x128   : > { %v4338_v34 = vsel %vm6754_vm7, %v4336_v30, %v4337_v47  ;;  %v4350_v47 = vrot.slane %v4348_v49, 4  ;;  %v6375_v30 = vld [vmem:[%s6502_s25 + $0x78] sm:$0xff]   ;;  %v8021_v16 = vsel %vm6754_vm7, %v5495_v5, %v4425_v61  ;;  %v4427_v18 = vrot.slane %v4425_v61, 4 }
 0x129   : > { %v7997_v4 = vsel %vm6754_vm7, %v4420_v2, %v4421_v9  ;;  %v5500_v9 = vcombine.low %v4342_v23, %v4345_v25  ;;  %v2221_v19 = vshrl.u32 %v5197_v7, 16  ;;  %v2224_v41 = vshll.u32 %v5197_v7, 16 }
 0x12a   : > { %v5511_v43 = vcombine.low %v7990_v63, %v7997_v4  ;;  %v8026_v58 = vsel %vm6754_vm7, %v4427_v18, %v4428_v51  ;;  %v4349_v6 = vsel %vm6754_vm7, %v5484_v28, %v4348_v49  ;;  %v4435_v49 = vrot.slane %v7900_v21, 5  ;;  %v6377_v51 = vld [vmem:[%s6502_s25 + $0x90] sm:$0xff]   ;;  %v6378_v21 = vld [vmem:[%s6502_s25 + $0x9c] sm:$0xff]  }
 0x12b   : > { %v5512_v50 = vcombine.low %v8021_v16, %v8026_v58  ;;  %v2223_v23 = vrot.slane %v2221_v19, 4  ;;  %v2226_v25 = vrot.slane %v2224_v41, 5  ;;  %v4434_v7 = vrot.slane %v4432_v24, 4 }
 0x12c   : > { %6020 = vmatmul.mubr.msk.bf16.gmra.mrb[28].mxu0 %vm658_vm3, %v5448_v46  ;;  %v5499_v46 = vcombine.low %v4335_v35, %v4338_v34  ;;  %v2230_v35 = vshll.u32 %v6425_v39, 16  ;;  %v2234_v34 = vshrl.u32 %v6425_v39, 16 }
 0x12d   : > { %5868 = vmatmul.mubr.msk.bf16.gmra.mrb[12].mxu1 %vm658_vm3, %v6373_v12  ;;  %6025 = vmatprep.mubr.msk.bf16.mxu0 %vm658_vm3, %v5498_v17  ;;  %v4351_v12 = vrot.slane %v8370_v29, 5  ;;  %v5480_v17 = vld [vmem:[%s6502_s25 + $0xcc] sm:$0xe]  ;;  %v8048_v55 = vsel %vm6754_vm7, %v4434_v7, %v4435_v49 }
 0x12e   : > { %5871 = vmatprep.mubr.msk.bf16.mxu1 %vm658_vm3, %v6374_v11  ;;  %v6376_v11 = vld [vmem:[%s6502_s25 + $0x84] sm:$0xff]   ;;  %v5496_v52 = vrot.slane %v5480_v17, 9  ;;  %v2236_v28 = vrot.slane %v2234_v34, 4  ;;  %v6426_v17 = vld [vmem:[%s6502_s25 + $0x74] sm:$0x1] }
 0x12f   : > { %v4352_v2 = vsel %vm6754_vm7, %v4350_v47, %v4351_v12  ;;  %v5203_v47 = vld [vmem:[%s6502_s25 + $0x84] sm:$0xf]  ;;  %v2227_v12 = vor.u32 %v2226_v25, %v2223_v23  ;;  %v6380_v34 = vld [vmem:[%s6502_s25 + $0xb4] sm:$0xff]  }
 0x130   : > { %v8043_v5 = vsel %vm6754_vm7, %v5496_v52, %v4432_v24  ;;  %v5501_v61 = vcombine.low %v4349_v6, %v4352_v2  ;;  %v2272_v18 = vshll.u32 %v5203_v47, 16  ;;  %v5206_v6 = vld [vmem:[%s6502_s25 + $0x90] sm:$0xf]  ;;  %v6379_v2 = vld [vmem:[%s6502_s25 + $0xa8] sm:$0xff]  }
 0x131   : > { %v5513_v29 = vcombine.low %v8043_v5, %v8048_v55  ;;  %v2228_v52 = vrot.slane %v2227_v12, 4  ;;  %v2293_v23 = vshrl.u32 %v5206_v6, 16  ;;  %v2296_v25 = vshll.u32 %v5206_v6, 16 }
 0x132   : > { %v2326_v12 = vshll.u32 %v6429_v60, 16 }
 0x133   : > { %v2298_v14 = vrot.slane %v2296_v25, 5  ;;  %v6432_v25 = vld [vmem:[%s6502_s25 + $0xa4] sm:$0x1] }
 0x134   : > { %6026 = vmatmul.mubr.msk.bf16.vlgmr.msra.gmra.mrb[0].mxu0 %vm658_vm3, %v5499_v46  ;;  %v2232_v46 = vrot.slane %v2230_v35, 5  ;;  %v5209_v35 = vld [vmem:[%s6502_s25 + $0x9c] sm:$0xf]  ;;  %v8090_v6 = vrot.slane %v2326_v12, 5 }
 0x135   : > { %5872 = vmatmul.mubr.msk.bf16.gmra.mrb[16].mxu1 %vm658_vm3, %v6375_v30  ;;  %6029 = vmatprep.mubr.msk.bf16.mxu0 %vm658_vm3, %v5500_v9  ;;  %v2240_v30 = vshll.u32 %v6426_v17, 16  ;;  %v2269_v9 = vshrl.u32 %v5203_v47, 16  ;;  %v2320_v47 = vshll.u32 %v5209_v35, 16  ;;  %v6430_v17 = vld [vmem:[%s6502_s25 + $0x8c] sm:$0x1] }
 0x136   : > { %5875 = vmatprep.mubr.msk.bf16.mxu1 %vm658_vm3, %v6376_v11  ;;  %v2237_v13 = vor.u32 %v2236_v28, %v2232_v46  ;;  %v6427_v11 = vld [vmem:[%s6502_s25 + $0x88] sm:$0xf]  ;;  %v2233_v7 = vsel %vm6528_vm4, %v2228_v52, %v2232_v46 }
 0x137   : > { %v2278_v19 = vshll.u32 %v6427_v11, 16  ;;  %v2282_v41 = vshrl.u32 %v6427_v11, 16  ;;  %v2242_v0 = vrot.slane %v2240_v30, 5  ;;  %v2271_v36 = vrot.slane %v2269_v9, 4 }
 0x138   : > { %v2238_v39 = vrot.slane %v2237_v13, 4  ;;  %v2288_v30 = vshll.u32 %v6430_v17, 16  ;;  %v2295_v9 = vrot.slane %v2293_v23, 4  ;;  %v2322_v11 = vrot.slane %v2320_v47, 5 }
 0x139   : > { %v8067_v24 = vrot.slane %v2278_v19, 5  ;;  %v2284_v49 = vrot.slane %v2282_v41, 4  ;;  %v6381_v19 = vld [vmem:[%s6502_s25 + $0xc0] sm:$0xff]  }
 0x13a   : > { %v2243_v46 = vsel %vm6528_vm4, %v2238_v39, %v2242_v0  ;;  %v5212_v39 = vld [vmem:[%s6502_s25 + $0xa8] sm:$0xf] }
 0x13b   : > { %v2285_v13 = vor.u32 %v2284_v49, %v8067_v24  ;;  %v5230_v41 = vcombine.low %v2233_v7, %v2243_v46  ;;  %v2336_v7 = vshll.u32 %v6432_v25, 16  ;;  %v2344_v45 = vshll.u32 %v5212_v39, 16 }
 0x13c   : > { %6030 = vmatmul.mubr.msk.bf16.gmra.mrb[4].mxu0 %vm658_vm3, %v5501_v61  ;;  %v6428_v61 = vld [vmem:[%s6502_s25 + $0x94] sm:$0xf] }
 0x13d   : > { %5876 = vmatmul.mubr.msk.bf16.gmra.mrb[20].mxu1 %vm658_vm3, %v6377_v51  ;;  %6033 = vmatprep.mubr.msk.bf16.mxu0 %vm658_vm3, %v5502_v10  ;;  %v2274_v10 = vrot.slane %v2272_v18, 5  ;;  %v2302_v51 = vshll.u32 %v6428_v61, 16  ;;  %v2306_v28 = vshrl.u32 %v6428_v61, 16  ;;  %v2286_v0 = vrot.slane %v2285_v13, 4 }
 0x13e   : > { %5879 = vmatprep.mubr.msk.bf16.mxu1 %vm658_vm3, %v6378_v21  ;;  %v2317_v21 = vshrl.u32 %v5209_v35, 16  ;;  %v6431_v35 = vld [vmem:[%s6502_s25 + $0x98] sm:$0x1]  ;;  %v2341_v61 = vshrl.u32 %v5212_v39, 16  ;;  %v5218_v39 = vld [vmem:[%s6502_s25 + $0xc0] sm:$0xf] }
 0x13f   : > { %v2275_v15 = vor.u32 %v2274_v10, %v2271_v36  ;;  %v8087_v26 = vrot.slane %v2302_v51, 5  ;;  %v2290_v36 = vrot.slane %v2288_v30, 5  ;;  %v2299_v10 = vor.u32 %v2298_v14, %v2295_v9  ;;  %v5215_v51 = vld [vmem:[%s6502_s25 + $0xb4] sm:$0xf] }
 0x140   : > { %v2319_v18 = vrot.slane %v2317_v21, 4  ;;  %v2354_v21 = vshrl.u32 %v6433_v27, 16  ;;  %v2365_v20 = vshrl.u32 %v5215_v51, 16  ;;  %v2368_v42 = vshll.u32 %v5215_v51, 16 }
 0x141   : > { %v2276_v52 = vrot.slane %v2275_v15, 4  ;;  %v2291_v46 = vsel %vm6528_vm4, %v2286_v0, %v2290_v36  ;;  %v2300_v15 = vrot.slane %v2299_v10, 4  ;;  %v2338_v30 = vrot.slane %v2336_v7, 5 }
 0x142   : > { %v2323_v23 = vor.u32 %v2322_v11, %v2319_v18  ;;  %v2343_v9 = vrot.slane %v2341_v61, 4  ;;  %v2356_v11 = vrot.slane %v2354_v21, 4  ;;  %v6437_v61 = vld [vmem:[%s6502_s25 + $0xbc] sm:$0x1] }
 0x143   : > { %v2281_v47 = vsel %vm6528_vm4, %v2276_v52, %v8067_v24  ;;  %v2305_v0 = vsel %vm6528_vm4, %v2300_v15, %v8087_v26  ;;  %v2384_v22 = vshll.u32 %v6437_v61, 16 }
 0x144   : > { %6034 = vmatmul.mubr.msk.bf16.gmra.mrb[8].mxu0 %vm658_vm3, %v5503_v40  ;;  %v2330_v40 = vshrl.u32 %v6429_v60, 16  ;;  %v2324_v17 = vrot.slane %v2323_v23, 4  ;;  %v5232_v24 = vcombine.low %v2281_v47, %v2291_v46 }
 0x145   : > { %5880 = vmatmul.mubr.msk.bf16.gmra.mrb[24].mxu1 %vm658_vm3, %v6379_v2  ;;  %6037 = vmatprep.mubr.msk.bf16.mxu0 %vm658_vm3, %v5504_v54  ;;  %v2308_v54 = vrot.slane %v2306_v28, 4 }
 0x146   : > { %5883 = vmatprep.mubr.msk.bf16.mxu1 %vm658_vm3, %v6380_v34  ;;  %v2332_v2 = vrot.slane %v2330_v40, 4  ;;  %v2312_v34 = vshll.u32 %v6431_v35, 16  ;;  %v2329_v10 = vsel %vm6528_vm4, %v2324_v17, %v8090_v6  ;;  %v2410_v17 = vrot.slane %v2408_v57, 5 }
 0x147   : > { %v2309_v49 = vor.u32 %v2308_v54, %v8087_v26  ;;  %v2346_v54 = vrot.slane %v2344_v45, 5  ;;  %v6435_v26 = vld [vmem:[%s6502_s25 + $0xb0] sm:$0x1] }
 0x148   : > { %v2333_v28 = vor.u32 %v2332_v2, %v8090_v6  ;;  %v2314_v60 = vrot.slane %v2312_v34, 5  ;;  %v2360_v35 = vshll.u32 %v6435_v26, 16  ;;  %v2389_v34 = vshrl.u32 %v5218_v39, 16 }
 0x149   : > { %v2310_v13 = vrot.slane %v2309_v49, 4  ;;  %v2347_v38 = vor.u32 %v2346_v54, %v2343_v9  ;;  %v2392_v6 = vshll.u32 %v5218_v39, 16  ;;  %v6436_v49 = vld [vmem:[%s6502_s25 + $0xc4] sm:$0xf] }
 0x14a   : > { %v2334_v14 = vrot.slane %v2333_v28, 4  ;;  %v2398_v23 = vshll.u32 %v6436_v49, 16  ;;  %v2402_v25 = vshrl.u32 %v6436_v49, 16  ;;  %v2362_v45 = vrot.slane %v2360_v35, 5 }
 0x14b   : > { %v2315_v36 = vsel %vm6528_vm4, %v2310_v13, %v2314_v60  ;;  %v2348_v51 = vrot.slane %v2347_v38, 4  ;;  %v2386_v60 = vrot.slane %v2384_v22, 5 }
 0x14c   : > { %6038 = vmatmul.mubr.msk.bf16.gmra.mrb[12].mxu0 %vm658_vm3, %v5505_v53  ;;  %v2350_v53 = vshll.u32 %v6433_v27, 16  ;;  %v2339_v59 = vsel %vm6528_vm4, %v2334_v14, %v2338_v30  ;;  %v5233_v44 = vcombine.low %v2305_v0, %v2315_v36  ;;  %v2391_v27 = vrot.slane %v2389_v34, 4 }
 0x14d   : > { %5884 = vmatmul.mubr.msk.bf16.gmra.mrb[28].mxu1 %vm658_vm3, %v6381_v19  ;;  %6041 = vmatprep.mubr.msk.bf16.mxu0 %vm658_vm3, %v5506_v33  ;;  %v6434_v33 = vld [vmem:[%s6502_s25 + $0xb8] sm:$0xf]  ;;  %v2367_v19 = vrot.slane %v2365_v20, 4  ;;  %v2400_v21 = vrot.slane %v2398_v23, 5  ;;  %v2404_v47 = vrot.slane %v2402_v25, 4 }
 0x14e   : > { %5905 = vmatprep.mubr.msk.bf16.mxu1 %vm658_vm3, %v5230_v41  ;;  %v2374_v12 = vshll.u32 %v6434_v33, 16  ;;  %v2378_v40 = vshrl.u32 %v6434_v33, 16  ;;  %v2352_v18 = vrot.slane %v2350_v53, 5  ;;  %v2370_v41 = vrot.slane %v2368_v42, 5 }
 0x14f   : > { %v2394_v53 = vrot.slane %v2392_v6, 5 }
 0x150   : > { %v2376_v52 = vrot.slane %v2374_v12, 5  ;;  %v2380_v2 = vrot.slane %v2378_v40, 4  ;;  %v2353_v20 = vsel %vm6528_vm4, %v2348_v51, %v2352_v18  ;;  %v2405_v12 = vor.u32 %v2404_v47, %v2400_v21 }
 0x151   : > { %v2395_v33 = vor.u32 %v2394_v53, %v2391_v27 }
 0x152   : > { %v2381_v7 = vor.u32 %v2380_v2, %v2376_v52  ;;  %v2406_v13 = vrot.slane %v2405_v12, 4  ;;  %v8189_v2 = vld [vmem:[%s8302_s2] ss:$0 sm:$0xff] }
 0x153   : > { %v2396_v40 = vrot.slane %v2395_v33, 4 }
 0x154   : > { %6042 = vmatmul.mubr.msk.bf16.gmra.mrb[16].mxu0 %vm658_vm3, %v5507_v37  ;;  %v2357_v37 = vor.u32 %v2356_v11, %v2352_v18  ;;  %v2382_v15 = vrot.slane %v2381_v7, 4  ;;  %v2411_v9 = vsel %vm6528_vm4, %v2406_v13, %v2410_v17 }
 0x155   : > { %5906 = vmatmul.mubr.msk.bf16.vlgmr.msra.gmra.mrb[16].mxu1 %vm658_vm3, %v7896_v1  ;;  %6045 = vmatprep.mubr.msk.bf16.mxu0 %vm658_vm3, %v5508_v3  ;;  %v2371_v1 = vor.u32 %v2370_v41, %v2367_v19  ;;  %v5234_v3 = vcombine.low %v2329_v10, %v2339_v59  ;;  %v2401_v30 = vsel %vm6528_vm4, %v2396_v40, %v2400_v21 }
 0x156   : > { %5909 = vmatprep.mubr.msk.bf16.mxu1 %vm658_vm3, %v5232_v24  ;;  %v2358_v28 = vrot.slane %v2357_v37, 4  ;;  %v2387_v48 = vsel %vm6528_vm4, %v2382_v15, %v2386_v60  ;;  %v5237_v14 = vcombine.low %v2401_v30, %v2411_v9 }
 0x157   : > { %v2372_v46 = vrot.slane %v2371_v1, 4 }
 0x158   : > { %v2363_v42 = vsel %vm6528_vm4, %v2358_v28, %v2362_v45 }
 0x159   : > { %v5235_v62 = vcombine.low %v2353_v20, %v2363_v42 }
 0x15c   : > { %6046 = vmatmul.mubr.msk.bf16.gmra.mrb[20].mxu0 %vm658_vm3, %v5509_v8  ;;  %v2377_v8 = vsel %vm6528_vm4, %v2372_v46, %v2376_v52 }
 0x15d   : > { %5910 = vmatmul.mubr.msk.bf16.gmra.mrb[20].mxu1 %vm658_vm3, %v5233_v44  ;;  %6049 = vmatprep.mubr.msk.bf16.mxu0 %vm658_vm3, %v5510_v56  ;;  %v5236_v56 = vcombine.low %v2377_v8, %v2387_v48 }
 0x15e   : > { %5913 = vmatprep.mubr.msk.bf16.mxu1 %vm658_vm3, %v5234_v3 }
 0x164   : > { %6050 = vmatmul.mubr.msk.bf16.gmra.mrb[24].mxu0 %vm658_vm3, %v5511_v43 }
 0x165   : > { %5914 = vmatmul.mubr.msk.bf16.gmra.mrb[24].mxu1 %vm658_vm3, %v5235_v62  ;;  %6053 = vmatprep.mubr.msk.bf16.mxu0 %vm658_vm3, %v5512_v50 }
 0x166   : > { %5917 = vmatprep.mubr.msk.bf16.mxu1 %vm658_vm3, %v5236_v56 }
 0x16c   : > { %6054 = vmatmul.mubr.msk.bf16.gmra.mrb[28].mxu0 %vm658_vm3, %v5513_v29 }
 0x16d   : > { %5918 = vmatmul.mubr.msk.bf16.gmra.mrb[28].mxu1 %vm658_vm3, %v5237_v14 }
 0x1e8   : > { %v5857_v63 = vpop.f32.mrb[0].mxu1 }
 0x1e9   : > { %v1821_v4 = vpop.f32.mrb[1].mxu1 }
 0x1ea   : > { %v5858_v43 = vpop.f32.mrb[2].mxu1 }
 0x1eb   : > { %v1824_v16 = vpop.f32.mrb[3].mxu1 }
 0x1f0   : > { %v5861_v58 = vpop.f32.mrb[4].mxu1 }
 0x1f1   : > { %v1837_v50 = vpop.f32.mrb[5].mxu1 }
 0x1f2   : > { %v5862_v54 = vpop.f32.mrb[6].mxu1 }
 0x1f3   : > { %v1840_v18 = vpop.f32.mrb[7].mxu1 }
 0x1f8   : > { %v5865_v11 = vpop.f32.mrb[8].mxu1 }
 0x1f9   : > { %v1853_v32 = vpop.f32.mrb[9].mxu1 }
 0x1fa   : > { %v5866_v24 = vpop.f32.mrb[10].mxu1 }
 0x1fb   : > { %v1856_v19 = vpop.f32.mrb[11].mxu1 }
 0x200   : > { %v8178_v41 = vpop.f32.mrb[12].mxu1 }
 0x201   : > { %v8180_v5 = vpop.f32.mrb[13].mxu1 }
 0x202   : > { %v8182_v55 = vpop.f32.mrb[14].mxu1 }
 0x203   : > { %v8184_v29 = vpop.f32.mrb[15].mxu1 }
 0x207   : > { %v6027_v52 = vpop.f32.mrb[0].mxu0 }
 0x208   : > { %v6059_v39 = vadd.f32 %v6027_v52, %v5857_v63  ;;  %v4572_v0 = vpop.f32.mrb[1].mxu0 }
 0x209   : > { %v6060_v36 = vadd.f32 %v4572_v0, %v1821_v4  ;;  %v6028_v10 = vpop.f32.mrb[2].mxu0 }
 0x20a   : > { %v4740_v59 = vadd.f32 %v6059_v39, %v8189_v2  ;;  %v6061_v38 = vadd.f32 %v6028_v10, %v5858_v43  ;;  %v4575_v37 = vpop.f32.mrb[3].mxu0 }
 0x20b   : > { %v4738_v26 = vadd.f32 %v6060_v36, %v8189_v2  ;;  %v6062_v35 = vadd.f32 %v4575_v37, %v1824_v16 }
 0x20c   : > { %v5568_v34 = vpack.c.bf16 %v4740_v59, %v4740_v59  ;;  %v4741_v6 = vadd.f32 %v6061_v38, %v8189_v2 }
 0x20d   : > { %v5566_v49 = vpack.c.bf16 %v4738_v26, %v4738_v26  ;;  %v4739_v23 = vadd.f32 %v6062_v35, %v8189_v2 }
 0x20e   : > { %4901 = vst.msk [vmem:[%s8196_s20 + $0x8] sm:$0xf] %vm4898_vm8, %v5568_v34  ;;  %v5569_v25 = vpack.c.bf16 %v4741_v6, %v4741_v6 }
 0x20f   : > { %4899 = vst.msk [vmem:[%s8196_s20] sm:$0xf] %vm4898_vm8, %v5566_v49  ;;  %v5567_v1 = vpack.c.bf16 %v4739_v23, %v4739_v23  ;;  %v6031_v7 = vpop.f32.mrb[4].mxu0 }
 0x210   : > { %4902 = vst.msk [vmem:[%s8196_s20 + $0xc] sm:$0xf] %vm4898_vm8, %v5569_v25  ;;  %v6063_v61 = vadd.f32 %v6031_v7, %v5861_v58  ;;  %v4588_v22 = vpop.f32.mrb[5].mxu0 }
 0x211   : > { %4900 = vst.msk [vmem:[%s8196_s20 + $0x4] sm:$0xf] %vm4898_vm8, %v5567_v1  ;;  %v6064_v44 = vadd.f32 %v4588_v22, %v1837_v50  ;;  %v6032_v3 = vpop.f32.mrb[6].mxu0 }
 0x212   : > { %v4744_v51 = vadd.f32 %v6063_v61, %v8189_v2  ;;  %v6065_v28 = vadd.f32 %v6032_v3, %v5862_v54  ;;  %v4591_v45 = vpop.f32.mrb[7].mxu0 }
 0x213   : > { %v4742_v27 = vadd.f32 %v6064_v44, %v8189_v2  ;;  %v6066_v53 = vadd.f32 %v4591_v45, %v1840_v18 }
 0x214   : > { %v5572_v21 = vpack.c.bf16 %v4744_v51, %v4744_v51  ;;  %v4745_v47 = vadd.f32 %v6065_v28, %v8189_v2 }
 0x215   : > { %v5570_v46 = vpack.c.bf16 %v4742_v27, %v4742_v27  ;;  %v4743_v15 = vadd.f32 %v6066_v53, %v8189_v2 }
 0x216   : > { %4905 = vst.msk [vmem:[%s8196_s20 + $0x18] sm:$0xf] %vm4898_vm8, %v5572_v21  ;;  %v5573_v60 = vpack.c.bf16 %v4745_v47, %v4745_v47 }
 0x217   : > { %4903 = vst.msk [vmem:[%s8196_s20 + $0x10] sm:$0xf] %vm4898_vm8, %v5570_v46  ;;  %v5571_v20 = vpack.c.bf16 %v4743_v15, %v4743_v15  ;;  %v6035_v42 = vpop.f32.mrb[8].mxu0 }
 0x218   : > { %4906 = vst.msk [vmem:[%s8196_s20 + $0x1c] sm:$0xf] %vm4898_vm8, %v5573_v60  ;;  %v6067_v33 = vadd.f32 %v6035_v42, %v5865_v11  ;;  %v4604_v12 = vpop.f32.mrb[9].mxu0 }
 0x219   : > { %4904 = vst.msk [vmem:[%s8196_s20 + $0x14] sm:$0xf] %vm4898_vm8, %v5571_v20  ;;  %v6068_v31 = vadd.f32 %v4604_v12, %v1853_v32  ;;  %v6036_v57 = vpop.f32.mrb[10].mxu0 }
 0x21a   : > { %v4748_v8 = vadd.f32 %v6067_v33, %v8189_v2  ;;  %v6069_v48 = vadd.f32 %v6036_v57, %v5866_v24  ;;  %v4607_v62 = vpop.f32.mrb[11].mxu0 }
 0x21b   : > { %v4746_v56 = vadd.f32 %v6068_v31, %v8189_v2  ;;  %v6070_v40 = vadd.f32 %v4607_v62, %v1856_v19 }
 0x21c   : > { %v5576_v13 = vpack.c.bf16 %v4748_v8, %v4748_v8  ;;  %v4749_v17 = vadd.f32 %v6069_v48, %v8189_v2 }
 0x21d   : > { %v5574_v30 = vpack.c.bf16 %v4746_v56, %v4746_v56  ;;  %v4747_v9 = vadd.f32 %v6070_v40, %v8189_v2 }
 0x21e   : > { %4909 = vst.msk [vmem:[%s8196_s20 + $0x28] sm:$0xf] %vm4898_vm8, %v5576_v13  ;;  %v5577_v14 = vpack.c.bf16 %v4749_v17, %v4749_v17 }
 0x21f   : > { %4907 = vst.msk [vmem:[%s8196_s20 + $0x20] sm:$0xf] %vm4898_vm8, %v5574_v30  ;;  %v5575_v63 = vpack.c.bf16 %v4747_v9, %v4747_v9  ;;  %v6039_v4 = vpop.f32.mrb[12].mxu0 }
 0x220   : > { %4910 = vst.msk [vmem:[%s8196_s20 + $0x2c] sm:$0xf] %vm4898_vm8, %v5577_v14  ;;  %v6071_v43 = vadd.f32 %v6039_v4, %v8178_v41  ;;  %v4620_v16 = vpop.f32.mrb[13].mxu0 }
 0x221   : > { %4908 = vst.msk [vmem:[%s8196_s20 + $0x24] sm:$0xf] %vm4898_vm8, %v5575_v63  ;;  %v6072_v58 = vadd.f32 %v4620_v16, %v8180_v5  ;;  %v6040_v50 = vpop.f32.mrb[14].mxu0 }
 0x222   : > { %v4752_v54 = vadd.f32 %v6071_v43, %v8189_v2  ;;  %v6073_v18 = vadd.f32 %v6040_v50, %v8182_v55  ;;  %v4623_v11 = vpop.f32.mrb[15].mxu0 }
 0x223   : > { %v4750_v32 = vadd.f32 %v6072_v58, %v8189_v2  ;;  %v6074_v24 = vadd.f32 %v4623_v11, %v8184_v29 }
 0x224   : > { %v5580_v19 = vpack.c.bf16 %v4752_v54, %v4752_v54  ;;  %v4753_v41 = vadd.f32 %v6073_v18, %v8189_v2 }
 0x225   : > { %v5578_v52 = vpack.c.bf16 %v4750_v32, %v4750_v32  ;;  %v4751_v39 = vadd.f32 %v6074_v24, %v8189_v2 }
 0x226   : > { %4913 = vst.msk [vmem:[%s8196_s20 + $0x38] sm:$0xf] %vm4898_vm8, %v5580_v19  ;;  %v5581_v5 = vpack.c.bf16 %v4753_v41, %v4753_v41 }
 0x227   : > { %4911 = vst.msk [vmem:[%s8196_s20 + $0x30] sm:$0xf] %vm4898_vm8, %v5578_v52  ;;  %v5579_v0 = vpack.c.bf16 %v4751_v39, %v4751_v39  ;;  %v6043_v36 = vpop.f32.mrb[16].mxu0 }
 0x228   : > { %4914 = vst.msk [vmem:[%s8196_s20 + $0x3c] sm:$0xf] %vm4898_vm8, %v5581_v5  ;;  %v5907_v55 = vpop.f32.mrb[16].mxu1  ;;  %v4636_v10 = vpop.f32.mrb[17].mxu0 }
 0x229   : > { %4912 = vst.msk [vmem:[%s8196_s20 + $0x34] sm:$0xf] %vm4898_vm8, %v5579_v0  ;;  %v6075_v29 = vadd.f32 %v6043_v36, %v5907_v55  ;;  %v2611_v59 = vpop.f32.mrb[17].mxu1  ;;  %v6044_v38 = vpop.f32.mrb[18].mxu0 }
 0x22a   : > { %v6076_v37 = vadd.f32 %v4636_v10, %v2611_v59  ;;  %v5908_v26 = vpop.f32.mrb[18].mxu1  ;;  %v4639_v35 = vpop.f32.mrb[19].mxu0 }
 0x22b   : > { %v4756_v34 = vadd.f32 %v6075_v29, %v8189_v2  ;;  %v6077_v6 = vadd.f32 %v6044_v38, %v5908_v26  ;;  %v2614_v49 = vpop.f32.mrb[19].mxu1 }
 0x22c   : > { %v4754_v23 = vadd.f32 %v6076_v37, %v8189_v2  ;;  %v6078_v25 = vadd.f32 %v4639_v35, %v2614_v49 }
 0x22d   : > { %v5584_v1 = vpack.c.bf16 %v4756_v34, %v4756_v34  ;;  %v4757_v7 = vadd.f32 %v6077_v6, %v8189_v2 }
 0x22e   : > { %v5582_v61 = vpack.c.bf16 %v4754_v23, %v4754_v23  ;;  %v4755_v22 = vadd.f32 %v6078_v25, %v8189_v2 }
 0x22f   : > { %4917 = vst.msk [vmem:[%s8196_s20 + $0x48] sm:$0xf] %vm4898_vm8, %v5584_v1  ;;  %v5585_v44 = vpack.c.bf16 %v4757_v7, %v4757_v7  ;;  %v6047_v3 = vpop.f32.mrb[20].mxu0 }
 0x230   : > { %4915 = vst.msk [vmem:[%s8196_s20 + $0x40] sm:$0xf] %vm4898_vm8, %v5582_v61  ;;  %v5583_v51 = vpack.c.bf16 %v4755_v22, %v4755_v22  ;;  %v5911_v28 = vpop.f32.mrb[20].mxu1  ;;  %v4652_v45 = vpop.f32.mrb[21].mxu0 }
 0x231   : > { %4918 = vst.msk [vmem:[%s8196_s20 + $0x4c] sm:$0xf] %vm4898_vm8, %v5585_v44  ;;  %v6079_v27 = vadd.f32 %v6047_v3, %v5911_v28  ;;  %v2627_v53 = vpop.f32.mrb[21].mxu1  ;;  %v6048_v21 = vpop.f32.mrb[22].mxu0 }
 0x232   : > { %4916 = vst.msk [vmem:[%s8196_s20 + $0x44] sm:$0xf] %vm4898_vm8, %v5583_v51  ;;  %v6080_v47 = vadd.f32 %v4652_v45, %v2627_v53  ;;  %v5912_v46 = vpop.f32.mrb[22].mxu1  ;;  %v4655_v15 = vpop.f32.mrb[23].mxu0 }
 0x233   : > { %v4760_v60 = vadd.f32 %v6079_v27, %v8189_v2  ;;  %v6081_v20 = vadd.f32 %v6048_v21, %v5912_v46  ;;  %v2630_v42 = vpop.f32.mrb[23].mxu1 }
 0x234   : > { %v4758_v33 = vadd.f32 %v6080_v47, %v8189_v2  ;;  %v6082_v12 = vadd.f32 %v4655_v15, %v2630_v42 }
 0x235   : > { %v5588_v31 = vpack.c.bf16 %v4760_v60, %v4760_v60  ;;  %v4761_v57 = vadd.f32 %v6081_v20, %v8189_v2 }
 0x236   : > { %v5586_v8 = vpack.c.bf16 %v4758_v33, %v4758_v33  ;;  %v4759_v48 = vadd.f32 %v6082_v12, %v8189_v2 }
 0x237   : > { %4921 = vst.msk [vmem:[%s8196_s20 + $0x58] sm:$0xf] %vm4898_vm8, %v5588_v31  ;;  %v5589_v62 = vpack.c.bf16 %v4761_v57, %v4761_v57  ;;  %v6051_v56 = vpop.f32.mrb[24].mxu0 }
 0x238   : > { %4919 = vst.msk [vmem:[%s8196_s20 + $0x50] sm:$0xf] %vm4898_vm8, %v5586_v8  ;;  %v5587_v40 = vpack.c.bf16 %v4759_v48, %v4759_v48  ;;  %v5915_v13 = vpop.f32.mrb[24].mxu1  ;;  %v4668_v17 = vpop.f32.mrb[25].mxu0 }
 0x239   : > { %4922 = vst.msk [vmem:[%s8196_s20 + $0x5c] sm:$0xf] %vm4898_vm8, %v5589_v62  ;;  %v6083_v30 = vadd.f32 %v6051_v56, %v5915_v13  ;;  %v2643_v9 = vpop.f32.mrb[25].mxu1  ;;  %v6052_v14 = vpop.f32.mrb[26].mxu0 }
 0x23a   : > { %4920 = vst.msk [vmem:[%s8196_s20 + $0x54] sm:$0xf] %vm4898_vm8, %v5587_v40  ;;  %v6084_v63 = vadd.f32 %v4668_v17, %v2643_v9  ;;  %v5916_v4 = vpop.f32.mrb[26].mxu1  ;;  %v4671_v43 = vpop.f32.mrb[27].mxu0 }
 0x23b   : > { %v4764_v16 = vadd.f32 %v6083_v30, %v8189_v2  ;;  %v6085_v58 = vadd.f32 %v6052_v14, %v5916_v4  ;;  %v2646_v50 = vpop.f32.mrb[27].mxu1 }
 0x23c   : > { %v4762_v54 = vadd.f32 %v6084_v63, %v8189_v2  ;;  %v6086_v18 = vadd.f32 %v4671_v43, %v2646_v50 }
 0x23d   : > { %v5592_v11 = vpack.c.bf16 %v4764_v16, %v4764_v16  ;;  %v4765_v32 = vadd.f32 %v6085_v58, %v8189_v2 }
 0x23e   : > { %v5590_v24 = vpack.c.bf16 %v4762_v54, %v4762_v54  ;;  %v4763_v19 = vadd.f32 %v6086_v18, %v8189_v2 }
 0x23f   : > { %4925 = vst.msk [vmem:[%s8196_s20 + $0x68] sm:$0xf] %vm4898_vm8, %v5592_v11  ;;  %v5593_v41 = vpack.c.bf16 %v4765_v32, %v4765_v32  ;;  %v6055_v52 = vpop.f32.mrb[28].mxu0 }
 0x240   : > { %4923 = vst.msk [vmem:[%s8196_s20 + $0x60] sm:$0xf] %vm4898_vm8, %v5590_v24  ;;  %v5591_v39 = vpack.c.bf16 %v4763_v19, %v4763_v19  ;;  %v5919_v5 = vpop.f32.mrb[28].mxu1  ;;  %v4684_v0 = vpop.f32.mrb[29].mxu0 }
 0x241   : > { %4926 = vst.msk [vmem:[%s8196_s20 + $0x6c] sm:$0xf] %vm4898_vm8, %v5593_v41  ;;  %v6087_v36 = vadd.f32 %v6055_v52, %v5919_v5  ;;  %v2659_v55 = vpop.f32.mrb[29].mxu1  ;;  %v6056_v10 = vpop.f32.mrb[30].mxu0 }
 0x242   : > { %4924 = vst.msk [vmem:[%s8196_s20 + $0x64] sm:$0xf] %vm4898_vm8, %v5591_v39  ;;  %v6088_v29 = vadd.f32 %v4684_v0, %v2659_v55  ;;  %v5920_v59 = vpop.f32.mrb[30].mxu1  ;;  %v4687_v38 = vpop.f32.mrb[31].mxu0 }
 0x243   : > { %v4768_v37 = vadd.f32 %v6087_v36, %v8189_v2  ;;  %v6089_v26 = vadd.f32 %v6056_v10, %v5920_v59  ;;  %v2662_v35 = vpop.f32.mrb[31].mxu1 }
 0x244   : > { %v4766_v34 = vadd.f32 %v6088_v29, %v8189_v2  ;;  %v6090_v6 = vadd.f32 %v4687_v38, %v2662_v35 }
 0x245   : > { %v5596_v49 = vpack.c.bf16 %v4768_v37, %v4768_v37  ;;  %v4769_v23 = vadd.f32 %v6089_v26, %v8189_v2 }
 0x246   : > { %v5594_v25 = vpack.c.bf16 %v4766_v34, %v4766_v34  ;;  %v4767_v1 = vadd.f32 %v6090_v6, %v8189_v2 }
 0x247   : > { %4929 = vst.msk [vmem:[%s8196_s20 + $0x78] sm:$0xf] %vm4898_vm8, %v5596_v49  ;;  %v5597_v7 = vpack.c.bf16 %v4769_v23, %v4769_v23 }
 0x248   : > { %4927 = vst.msk [vmem:[%s8196_s20 + $0x70] sm:$0xf] %vm4898_vm8, %v5594_v25  ;;  %v5595_v61 = vpack.c.bf16 %v4767_v1, %v4767_v1 }
 0x249   : > { %4930 = vst.msk [vmem:[%s8196_s20 + $0x7c] sm:$0xf] %vm4898_vm8, %v5597_v7 }
 0x24a   : > { %4928 = vst.msk [vmem:[%s8196_s20 + $0x74] sm:$0xf] %vm4898_vm8, %v5595_v61 }
 0x24b PF: > { %s13_s12 = sadd.s32 1, %s6445_s12  }
 0x24c   : > { %p10_p4 = scmp.ge.s32.totalorder %s13_s12, 6  }
 0x24e   :  { %12 = sbr.rel (!%p10_p4) target bundleno = 1 (0x1), region = 72 }

</bundles_post_ra>
